<compile_context>
chip_gen: v6e
topology: v6e:2x2x1
jax: 0.10.0
libtpu: 0.0.40
codegen_flags: <defaults>
</compile_context>

<pallas_src>
import jax
import jax.numpy as jnp
import numpy as np
from jax import lax
from jax.experimental import pallas as pl
from jax.experimental.pallas import tpu as pltpu


def _apply_lstm_gates(gates, c_prev):
    """PyTorch LSTM gate nonlinearity. Gate order: i, f, g, o."""
    H = c_prev.shape[-1]
    i = jax.nn.sigmoid(gates[:, 0 * H:1 * H])
    f = jax.nn.sigmoid(gates[:, 1 * H:2 * H])
    g = jnp.tanh(gates[:, 2 * H:3 * H])
    o = jax.nn.sigmoid(gates[:, 3 * H:4 * H])
    c_new = f * c_prev + i * g
    h_new = o * jnp.tanh(c_new)
    return h_new, c_new


# --------------------------------------------------------------------------
# Kernel 1: the sequential BUTD recurrence.  Grid = (batch_blocks, time_blocks)
# with semantics ("parallel", "arbitrary"); h/c for both LSTMs live in VMEM
# scratch across time blocks (re-initialized at t_blk == 0 for each batch
# block) and in registers inside the unrolled U-step inner loop.
# Outputs are the per-step hidden states h1/h2 (time-major); the heavy vocab
# projections are done outside by a separate batched GEMM kernel.
# --------------------------------------------------------------------------
def butd_recurrence_kernel(emb_ref, vmat_ref, vproj_ref, vgate1_ref,
                           w1h2_ref, w1e_ref, w_hh1_ref,
                           w2av_ref, w2h1_ref, w_hh2_ref, b2_ref,
                           wha_ref, bha_ref, wa_ref,
                           h1_out_ref, h2_out_ref,
                           h1_sc, c1_sc, h2_sc, c2_sc):
    t_blk = pl.program_id(1)

    @pl.when(t_blk == 0)
    def _():
        h1_sc[...] = jnp.zeros_like(h1_sc)
        c1_sc[...] = jnp.zeros_like(c1_sc)
        h2_sc[...] = jnp.zeros_like(h2_sc)
        c2_sc[...] = jnp.zeros_like(c2_sc)

    # Grid-invariant operands (stay VMEM resident; same block every time step).
    vmat = vmat_ref[...]        # (BB, R, D)
    vproj = vproj_ref[...]      # (BB, R, P)  time-invariant Vmat projection
    vgate1 = vgate1_ref[...]    # (BB, 4*H1)  time-invariant vfeats gate term + b1
    w1h2, w1e, w_hh1 = w1h2_ref[...], w1e_ref[...], w_hh1_ref[...]
    w2av, w2h1, w_hh2 = w2av_ref[...], w2h1_ref[...], w_hh2_ref[...]
    wha = wha_ref[...]

    BB = h1_sc.shape[0]
    R = vmat.shape[1]
    P = vproj.shape[2]

    # Broadcasts hoisted out of the U-step loop (JAX does not CSE
    # broadcast_in_dim; a static unroll would re-emit them U times).
    b2_b = jnp.broadcast_to(b2_ref[...], (BB, b2_ref.shape[1]))   # (BB, 4*H2)
    bha_b = jnp.broadcast_to(bha_ref[...], (BB, P))               # (BB, P)
    wa_b = jnp.broadcast_to(wa_ref[...], (BB, R, P))              # (BB, R, P)

    U = emb_ref.shape[0]

    def step(u, carry):
        h1, c1, h2, c2 = carry
        emb_t = emb_ref[u]                                        # (BB, E)

        # --- TopDownAttentionLSTM: [h2, vfeats, emb] via partial dots -------
        g1 = (jnp.dot(h2, w1h2, preferred_element_type=jnp.float32)
              + jnp.dot(emb_t, w1e, preferred_element_type=jnp.float32)
              + jnp.dot(h1, w_hh1, preferred_element_type=jnp.float32)
              + vgate1)
        h1, c1 = _apply_lstm_gates(g1, c1)

        # --- additive attention over regions (dropout=identity in eval) -----
        hproj = jnp.dot(h1, wha, preferred_element_type=jnp.float32) + bha_b
        feat = jnp.tanh(vproj + hproj[:, None, :])                # (BB, R, P)
        # linear_wa's bias is constant across regions -> cancels in softmax.
        logit = jnp.sum(feat * wa_b, axis=-1)                     # (BB, R)
        logit = logit - jnp.max(logit, axis=-1, keepdims=True)
        e = jnp.exp(logit)
        s = jnp.sum(e, axis=-1, keepdims=True)
        r = pl.reciprocal(s, approx=True)                         # EUP slot
        r = r * (2.0 - s * r)                                     # Newton refine
        atten = e * r                                             # (BB, R)
        # Weighted region read-out as a batched MXU contraction over R.
        atten_vf = jnp.einsum('bqr,brd->bqd', atten[:, None, :], vmat,
                              preferred_element_type=jnp.float32)[:, 0, :]

        # --- LanguageLSTM: [atten_vfeats, h1] via partial dots ---------------
        g2 = (jnp.dot(atten_vf, w2av, preferred_element_type=jnp.float32)
              + jnp.dot(h1, w2h1, preferred_element_type=jnp.float32)
              + jnp.dot(h2, w_hh2, preferred_element_type=jnp.float32)
              + b2_b)
        h2, c2 = _apply_lstm_gates(g2, c2)

        # Per-step hidden states; the big vocab GEMMs happen outside.
        h1_out_ref[u] = h1
        h2_out_ref[u] = h2
        return (h1, c1, h2, c2)

    carry0 = (h1_sc[...], c1_sc[...], h2_sc[...], c2_sc[...])
    h1, c1, h2, c2 = lax.fori_loop(0, U, step, carry0, unroll=True)

    h1_sc[...], c1_sc[...] = h1, c1
    h2_sc[...], c2_sc[...] = h2, c2


# --------------------------------------------------------------------------
# Kernel 2: batched vocab projection (B*T, H) @ (H, Vp) + bias, tiled over the
# lane-aligned vocab axis.  One call for `linear` (h2) and one for
# `linear_mid` (h1): M = B*T instead of B, lane-dense unmasked stores.
# --------------------------------------------------------------------------
def vocab_proj_kernel(x_ref, w_ref, b_ref, o_ref):
    o_ref[...] = (jnp.dot(x_ref[...], w_ref[...],
                          preferred_element_type=jnp.float32)
                  + b_ref[...])


def _vocab_projection(x, w, b):
    M, H = x.shape
    _, Vp = w.shape
    bn = max(n for n in (1024, 512, 256, 128) if Vp % n == 0)
    vmem_limit = int(min(2 * 4 * (M * H + H * bn + bn + M * bn) + (8 << 20),
                         128 << 20))
    return pl.pallas_call(
        vocab_proj_kernel,
        grid=(Vp // bn,),
        in_specs=[pl.BlockSpec((M, H), lambda j: (0, 0)),
                  pl.BlockSpec((H, bn), lambda j: (0, j)),
                  pl.BlockSpec((1, bn), lambda j: (0, j))],
        out_specs=pl.BlockSpec((M, bn), lambda j: (0, j)),
        out_shape=jax.ShapeDtypeStruct((M, Vp), jnp.float32),
        compiler_params=pltpu.CompilerParams(
            dimension_semantics=("parallel",),
            vmem_limit_bytes=vmem_limit),
    )(x, w, b)


def decoder_topdown_forward(params, Vmat, union_vfeats, captions,
                            unroll=4, batch_block=None):
    """Equivalent of DecoderTopDown.forward -> (outputs, mid_outs), eval mode.

    T = captions.shape[1] plays the role of max(lengths); enc_features is
    unused by the reference forward.  Dropout is identity (eval), num_layers=1.
    """
    B, T = captions.shape
    vocab_size, E = params['embed'].shape
    H1 = params['w_hh1_t'].shape[0]
    H2 = params['w_hh2_t'].shape[0]
    _, R, D = Vmat.shape
    P = params['wva_t'].shape[1]

    U = max(1, min(unroll, T))                      # keep U modest (2-4)
    Tp = ((T + U - 1) // U) * U                     # pad time to a multiple of U
    Vp = ((vocab_size + 127) // 128) * 128          # lane-align vocab

    # Batch-block axis: "parallel" leading grid dim (use B//2 on v7x to engage
    # the second TensorCore).  Block second-to-last dims must stay (8,·)-tiled.
    BB = B if batch_block is None else int(batch_block)
    assert B % BB == 0 and (BB == B or BB % 8 == 0)

    # Embedding lookup (gather) is glue kept in plain JAX; time-major layout.
    emb = params['embed'][captions]                 # (B, T, E)
    emb_tbe = jnp.transpose(emb, (1, 0, 2))         # (T, B, E)
    if Tp != T:
        emb_tbe = jnp.pad(emb_tbe, ((0, Tp - T), (0, 0), (0, 0)))

    # ---- hoist all time-invariant work out of the recurrence (one-shot) ----
    vproj = Vmat @ params['wva_t'] + params['bva']          # (B, R, P)
    w_ih1 = params['w_ih1_t']                               # rows: [h2 | vfeats | emb]
    w1_h2 = w_ih1[:H2]
    w1_v = w_ih1[H2:H2 + D]
    w1_e = w_ih1[H2 + D:]
    vgate1 = union_vfeats @ w1_v + params['b1']             # (B, 4*H1) const gate term
    w_ih2 = params['w_ih2_t']                               # rows: [atten_vfeats | h1]
    w2_av = w_ih2[:D]
    w2_h1 = w_ih2[D:]

    consts = [Vmat, vproj, vgate1,
              w1_h2, w1_e, params['w_hh1_t'],
              w2_av, w2_h1, params['w_hh2_t'], params['b2'],
              params['wha_t'], params['bha'], params['wa_row']]
    batch_major = {0, 1, 2}      # Vmat, vproj, vgate1 carry a leading batch dim

    def const_spec(idx, a):
        # TODO(synk): at real BUTD weight sizes on v7x add
        # pipeline_mode=pl.Buffered(1) here (grid-invariant weights don't need
        # double buffering); irrelevant at these toy sizes.
        if idx in batch_major:
            shp = (BB,) + a.shape[1:]
            return pl.BlockSpec(shp,
                                lambda b, t, _n=a.ndim: (b,) + (0,) * (_n - 1))
        return pl.BlockSpec(a.shape, lambda b, t, _n=a.ndim: (0,) * _n)

    # Explicit VMEM budget (scoped default is only 16/32 MiB on v5e/v6e-v7x).
    def _blk_elems(idx, a):
        shp = ((BB,) + a.shape[1:]) if idx in batch_major else a.shape
        return int(np.prod(shp))
    const_bytes = 4 * sum(_blk_elems(i, a) for i, a in enumerate(consts))
    stream_bytes = 4 * (U * BB * E + U * BB * H1 + U * BB * H2)
    scratch_bytes = 4 * 2 * BB * (H1 + H2)
    vmem_limit = int(min(2 * (const_bytes + stream_bytes) + scratch_bytes
                         + (8 << 20), 128 << 20))

    h1_all, h2_all = pl.pallas_call(
        butd_recurrence_kernel,
        grid=(B // BB, Tp // U),
        in_specs=[pl.BlockSpec((U, BB, E), lambda b, t: (t, b, 0))]
                 + [const_spec(i, a) for i, a in enumerate(consts)],
        out_specs=[pl.BlockSpec((U, BB, H1), lambda b, t: (t, b, 0)),
                   pl.BlockSpec((U, BB, H2), lambda b, t: (t, b, 0))],
        out_shape=[jax.ShapeDtypeStruct((Tp, B, H1), jnp.float32),
                   jax.ShapeDtypeStruct((Tp, B, H2), jnp.float32)],
        scratch_shapes=[pltpu.VMEM((BB, H1), jnp.float32),
                        pltpu.VMEM((BB, H1), jnp.float32),
                        pltpu.VMEM((BB, H2), jnp.float32),
                        pltpu.VMEM((BB, H2), jnp.float32)],
        compiler_params=pltpu.CompilerParams(
            dimension_semantics=("parallel", "arbitrary"),
            vmem_limit_bytes=vmem_limit),
    )(emb_tbe, *consts)
    # Note: h/c state keeps evolving over padded time steps inside the last
    # block; the padded rows are sliced off below and state is never exported.

    # ---- batched vocab projections (hoisted out of the recurrence) ----------
    # Only the small hidden states are transposed (no full-vocab transpose);
    # the GEMM then produces batch-major (B, T, V) logits directly.
    h1_bt = jnp.transpose(h1_all[:T], (1, 0, 2)).reshape(B * T, H1)
    h2_bt = jnp.transpose(h2_all[:T], (1, 0, 2)).reshape(B * T, H2)

    def pad_vocab(w):
        return jnp.pad(w, ((0, 0), (0, Vp - vocab_size)))

    out = _vocab_projection(h2_bt, pad_vocab(params['wlin_t']),
                            pad_vocab(params['blin']))
    mid = _vocab_projection(h1_bt, pad_vocab(params['wmid_t']),
                            pad_vocab(params['bmid']))
    out = out[:, :vocab_size].reshape(B, T, vocab_size)
    mid = mid[:, :vocab_size].reshape(B, T, vocab_size)
    return out, mid


def reference_forward(params, Vmat, union_vfeats, captions):
    """Pure-JAX reference of the same math (for correctness check)."""
    emb = params['embed'][captions]
    B, T, _ = emb.shape
    H1 = params['w_hh1_t'].shape[0]
    H2 = params['w_hh2_t'].shape[0]
    h1 = jnp.zeros((B, H1)); c1 = jnp.zeros((B, H1))
    h2 = jnp.zeros((B, H2)); c2 = jnp.zeros((B, H2))

    def lstm(x, h, c, wi, wh, b):
        H = h.shape[-1]
        g = x @ wi + h @ wh + b
        i = jax.nn.sigmoid(g[:, :H]); f = jax.nn.sigmoid(g[:, H:2 * H])
        gg = jnp.tanh(g[:, 2 * H:3 * H]); o = jax.nn.sigmoid(g[:, 3 * H:])
        c = f * c + i * gg
        return o * jnp.tanh(c), c

    outs, mids = [], []
    for t in range(T):
        x1 = jnp.concatenate([h2, union_vfeats, emb[:, t, :]], axis=1)
        h1, c1 = lstm(x1, h1, c1, params['w_ih1_t'], params['w_hh1_t'], params['b1'])
        vproj = Vmat @ params['wva_t'] + params['bva']
        hproj = h1 @ params['wha_t'] + params['bha']
        feat = jnp.tanh(vproj + hproj[:, None, :])
        logit = jnp.sum(feat * params['wa_row'], axis=-1) + params['bwa'][0, 0]
        atten = jax.nn.softmax(logit, axis=-1)
        av = jnp.einsum('br,brd->bd', atten, Vmat)
        x2 = jnp.concatenate([av, h1], axis=1)
        h2, c2 = lstm(x2, h2, c2, params['w_ih2_t'], params['w_hh2_t'], params['b2'])
        outs.append(h2 @ params['wlin_t'] + params['blin'])
        mids.append(h1 @ params['wmid_t'] + params['bmid'])
    return jnp.stack(outs, 1), jnp.stack(mids, 1)


def init_params(key, *, embed_size, vdim, hidden_size1, hidden_size2,
                vocab_size, paramH):
    ks = jax.random.split(key, 17)

    def lin(k, fan_in, fan_out):
        return (jax.random.normal(k, (fan_in, fan_out), jnp.float32)
                * (1.0 / np.sqrt(fan_in)))

    in1 = hidden_size2 + vdim + embed_size
    in2 = hidden_size1 + vdim
    p = {}
    p['embed'] = jax.random.normal(ks[0], (vocab_size, embed_size), jnp.float32) * 0.1
    p['w_ih1_t'] = lin(ks[1], in1, 4 * hidden_size1)
    p['w_hh1_t'] = lin(ks[2], hidden_size1, 4 * hidden_size1)
    p['b1'] = jax.random.normal(ks[3], (1, 4 * hidden_size1), jnp.float32) * 0.01
    p['w_ih2_t'] = lin(ks[4], in2, 4 * hidden_size2)
    p['w_hh2_t'] = lin(ks[5], hidden_size2, 4 * hidden_size2)
    p['b2'] = jax.random.normal(ks[6], (1, 4 * hidden_size2), jnp.float32) * 0.01
    p['wva_t'] = lin(ks[7], vdim, paramH)
    p['bva'] = jax.random.normal(ks[8], (1, paramH), jnp.float32) * 0.01
    p['wha_t'] = lin(ks[9], hidden_size1, paramH)
    p['bha'] = jax.random.normal(ks[10], (1, paramH), jnp.float32) * 0.01
    p['wa_row'] = jnp.transpose(lin(ks[11], paramH, 1))          # (1, paramH)
    p['bwa'] = jax.random.normal(ks[12], (1, 1), jnp.float32) * 0.01
    p['wlin_t'] = lin(ks[13], hidden_size2, vocab_size)
    p['blin'] = jax.random.normal(ks[14], (1, vocab_size), jnp.float32) * 0.01
    p['wmid_t'] = lin(ks[15], hidden_size1, vocab_size)
    p['bmid'] = jax.random.normal(ks[16], (1, vocab_size), jnp.float32) * 0.01
    return p


if __name__ == "__main__":
    # Small shapes consistent with the module (num_layers=1, eval-mode dropout).
    # T=10 with unroll=4 exercises multi-grid-step state carry AND time padding.
    B, T, R = 8, 10, 8
    embed_size = vdim = hidden_size1 = hidden_size2 = paramH = 32
    vocab_size = 64

    key = jax.random.PRNGKey(0)
    kp, kv, ku, kc = jax.random.split(key, 4)
    params = init_params(kp, embed_size=embed_size, vdim=vdim,
                         hidden_size1=hidden_size1, hidden_size2=hidden_size2,
                         vocab_size=vocab_size, paramH=paramH)
    Vmat = jax.random.normal(kv, (B, R, vdim), jnp.float32)
    union_vfeats = jax.random.normal(ku, (B, vdim), jnp.float32)
    captions = jax.random.randint(kc, (B, T), 0, vocab_size)
    # lengths = [T]*B  -> max(lengths) == T (the kernel iterates over T)

    out, mid = jax.jit(decoder_topdown_forward)(params, Vmat, union_vfeats, captions)
    jax.block_until_ready((out, mid))

    ref_out, ref_mid = reference_forward(params, Vmat, union_vfeats, captions)
    assert out.shape == (B, T, vocab_size) and mid.shape == (B, T, vocab_size)
    # The EUP reciprocal is Newton-refined, so the dominant residual error is
    # just f32 matmul/transcendental noise through the 10-step recurrence.
    assert np.allclose(np.asarray(out), np.asarray(ref_out), atol=2e-3, rtol=2e-3)
    assert np.allclose(np.asarray(mid), np.asarray(ref_mid), atol=2e-3, rtol=2e-3)
    # TODO(synk): sample()/sample_with_answer_BUTD()/BeamSearch2() use host-side
    # greedy/beam control flow (BeamQueue, python lists) and are not expressible
    # as a Pallas kernel.
    print("KERNEL_OK")
</pallas_src>

<mosaic_0001>
module attributes {stable_mosaic.version = 11 : i64} {
  func.func @vocab_proj_kernel(%arg0: i32, %arg1: memref<80x32xf32, #tpu.memory_space<vmem>>, %arg2: memref<32x128xf32, #tpu.memory_space<vmem>>, %arg3: memref<1x128xf32, #tpu.memory_space<vmem>>, %arg4: memref<80x128xf32, #tpu.memory_space<vmem>>) attributes {dimension_semantics = [#tpu.dimension_semantics<parallel>], iteration_bounds = array<i64: 1>, scalar_prefetch = 0 : i64, scratch_operands = 0 : i64, tpu.core_type = #tpu.core_type<tc>, window_params = [{pipeline_mode = #tpu.pipeline_mode<synchronous>, transform_indices = @transform_0, window_bounds = array<i64: 80, 32>}, {transform_indices = @transform_1, window_bounds = array<i64: 32, 128>}, {transform_indices = @transform_2, window_bounds = array<i64: 1, 128>}, {transform_indices = @transform_3, window_bounds = array<i64: 80, 128>}]} {
    %c0 = arith.constant 0 : index
    %c0_0 = arith.constant 0 : index
    %0 = vector.load %arg1[%c0, %c0_0] : memref<80x32xf32, #tpu.memory_space<vmem>>, vector<80x32xf32>
    %c0_1 = arith.constant 0 : index
    %c0_2 = arith.constant 0 : index
    %1 = vector.load %arg2[%c0_1, %c0_2] : memref<32x128xf32, #tpu.memory_space<vmem>>, vector<32x128xf32>
    %cst = arith.constant dense<0.000000e+00> : vector<80x128xf32>
    %2 = tpu.matmul %0, %1, %cst {dimension_numbers = #tpu.dot_dimension_numbers<[1], [0], [0], [1], [0, 0, 1, 1], [], []>} : vector<80x32xf32>, vector<32x128xf32>, vector<80x128xf32> -> vector<80x128xf32>
    %c0_3 = arith.constant 0 : index
    %c0_4 = arith.constant 0 : index
    %3 = vector.load %arg3[%c0_3, %c0_4] : memref<1x128xf32, #tpu.memory_space<vmem>>, vector<1x128xf32>
    %4 = vector.broadcast %3 : vector<1x128xf32> to vector<80x128xf32>
    %5 = arith.addf %2, %4 : vector<80x128xf32>
    %c0_5 = arith.constant 0 : index
    %c0_6 = arith.constant 0 : index
    %6 = vector.load %arg4[%c0_5, %c0_6] : memref<80x128xf32, #tpu.memory_space<vmem>>, vector<80x128xf32>
    tpu.vector_store %arg4[%c0_5, %c0_6], %5 {strides = array<i32>} : memref<80x128xf32, #tpu.memory_space<vmem>>, vector<80x128xf32>,
    return
  }
  func.func @transform_0(%arg0: i32) -> (i32, i32) {
    %c0_i32 = arith.constant 0 : i32
    %c0_i32_0 = arith.constant 0 : i32
    %c0_i32_1 = arith.constant 0 : i32
    return %c0_i32, %c0_i32_0 : i32, i32
  }
  func.func @transform_1(%arg0: i32) -> (i32, i32) {
    %c0_i32 = arith.constant 0 : i32
    %c0_i32_0 = arith.constant 0 : i32
    return %c0_i32, %arg0 : i32, i32
  }
  func.func @transform_2(%arg0: i32) -> (i32, i32) {
    %c0_i32 = arith.constant 0 : i32
    %c0_i32_0 = arith.constant 0 : i32
    return %c0_i32, %arg0 : i32, i32
  }
  func.func @transform_3(%arg0: i32) -> (i32, i32) {
    %c0_i32 = arith.constant 0 : i32
    %c0_i32_0 = arith.constant 0 : i32
    return %c0_i32, %arg0 : i32, i32
  }
}

module attributes {stable_mosaic.version = 11 : i64} {
  func.func @butd_recurrence_kernel(%arg0: i32, %arg1: i32, %arg2: memref<4x8x32xf32, #tpu.memory_space<vmem>>, %arg3: memref<8x8x32xf32, #tpu.memory_space<vmem>>, %arg4: memref<8x8x32xf32, #tpu.memory_space<vmem>>, %arg5: memref<8x128xf32, #tpu.memory_space<vmem>>, %arg6: memref<32x128xf32, #tpu.memory_space<vmem>>, %arg7: memref<32x128xf32, #tpu.memory_space<vmem>>, %arg8: memref<32x128xf32, #tpu.memory_space<vmem>>, %arg9: memref<32x128xf32, #tpu.memory_space<vmem>>, %arg10: memref<32x128xf32, #tpu.memory_space<vmem>>, %arg11: memref<32x128xf32, #tpu.memory_space<vmem>>, %arg12: memref<1x128xf32, #tpu.memory_space<vmem>>, %arg13: memref<32x32xf32, #tpu.memory_space<vmem>>, %arg14: memref<1x32xf32, #tpu.memory_space<vmem>>, %arg15: memref<1x32xf32, #tpu.memory_space<vmem>>, %arg16: memref<4x8x32xf32, #tpu.memory_space<vmem>>, %arg17: memref<4x8x32xf32, #tpu.memory_space<vmem>>, %arg18: memref<8x32xf32, #tpu.memory_space<vmem>>, %arg19: memref<8x32xf32, #tpu.memory_space<vmem>>, %arg20: memref<8x32xf32, #tpu.memory_space<vmem>>, %arg21: memref<8x32xf32, #tpu.memory_space<vmem>>) attributes {dimension_semantics = [#tpu.dimension_semantics<parallel>, #tpu.dimension_semantics<arbitrary>], iteration_bounds = array<i64: 1, 3>, scalar_prefetch = 0 : i64, scratch_operands = 4 : i64, tpu.core_type = #tpu.core_type<tc>, window_params = [{transform_indices = @transform_0, window_bounds = array<i64: 4, 8, 32>}, {transform_indices = @transform_1, window_bounds = array<i64: 8, 8, 32>}, {transform_indices = @transform_2, window_bounds = array<i64: 8, 8, 32>}, {transform_indices = @transform_3, window_bounds = array<i64: 8, 128>}, {pipeline_mode = #tpu.pipeline_mode<synchronous>, transform_indices = @transform_4, window_bounds = array<i64: 32, 128>}, {pipeline_mode = #tpu.pipeline_mode<synchronous>, transform_indices = @transform_5, window_bounds = array<i64: 32, 128>}, {pipeline_mode = #tpu.pipeline_mode<synchronous>, transform_indices = @transform_6, window_bounds = array<i64: 32, 128>}, {pipeline_mode = #tpu.pipeline_mode<synchronous>, transform_indices = @transform_7, window_bounds = array<i64: 32, 128>}, {pipeline_mode = #tpu.pipeline_mode<synchronous>, transform_indices = @transform_8, window_bounds = array<i64: 32, 128>}, {pipeline_mode = #tpu.pipeline_mode<synchronous>, transform_indices = @transform_9, window_bounds = array<i64: 32, 128>}, {pipeline_mode = #tpu.pipeline_mode<synchronous>, transform_indices = @transform_10, window_bounds = array<i64: 1, 128>}, {pipeline_mode = #tpu.pipeline_mode<synchronous>, transform_indices = @transform_11, window_bounds = array<i64: 32, 32>}, {pipeline_mode = #tpu.pipeline_mode<synchronous>, transform_indices = @transform_12, window_bounds = array<i64: 1, 32>}, {pipeline_mode = #tpu.pipeline_mode<synchronous>, transform_indices = @transform_13, window_bounds = array<i64: 1, 32>}, {transform_indices = @transform_14, window_bounds = array<i64: 4, 8, 32>}, {transform_indices = @transform_15, window_bounds = array<i64: 4, 8, 32>}]} {
    %c0_i32 = arith.constant 0 : i32
    %0 = arith.cmpi eq, %arg1, %c0_i32 : i32
    %1 = arith.extui %0 : i1 to i32
    %c0_i32_0 = arith.constant 0 : i32
    %2 = arith.cmpi ne, %1, %c0_i32_0 : i32
    scf.if %2 {
      %cst_140 = arith.constant 0.000000e+00 : f32
      %422 = vector.broadcast %cst_140 : f32 to vector<8x32xf32>
      %c0_141 = arith.constant 0 : index
      %c0_142 = arith.constant 0 : index
      %423 = vector.load %arg18[%c0_141, %c0_142] : memref<8x32xf32, #tpu.memory_space<vmem>>, vector<8x32xf32>
      tpu.vector_store %arg18[%c0_141, %c0_142], %422 {strides = array<i32>} : memref<8x32xf32, #tpu.memory_space<vmem>>, vector<8x32xf32>,
      %cst_143 = arith.constant 0.000000e+00 : f32
      %424 = vector.broadcast %cst_143 : f32 to vector<8x32xf32>
      %c0_144 = arith.constant 0 : index
      %c0_145 = arith.constant 0 : index
      %425 = vector.load %arg19[%c0_144, %c0_145] : memref<8x32xf32, #tpu.memory_space<vmem>>, vector<8x32xf32>
      tpu.vector_store %arg19[%c0_144, %c0_145], %424 {strides = array<i32>} : memref<8x32xf32, #tpu.memory_space<vmem>>, vector<8x32xf32>,
      %cst_146 = arith.constant 0.000000e+00 : f32
      %426 = vector.broadcast %cst_146 : f32 to vector<8x32xf32>
      %c0_147 = arith.constant 0 : index
      %c0_148 = arith.constant 0 : index
      %427 = vector.load %arg20[%c0_147, %c0_148] : memref<8x32xf32, #tpu.memory_space<vmem>>, vector<8x32xf32>
      tpu.vector_store %arg20[%c0_147, %c0_148], %426 {strides = array<i32>} : memref<8x32xf32, #tpu.memory_space<vmem>>, vector<8x32xf32>,
      %cst_149 = arith.constant 0.000000e+00 : f32
      %428 = vector.broadcast %cst_149 : f32 to vector<8x32xf32>
      %c0_150 = arith.constant 0 : index
      %c0_151 = arith.constant 0 : index
      %429 = vector.load %arg21[%c0_150, %c0_151] : memref<8x32xf32, #tpu.memory_space<vmem>>, vector<8x32xf32>
      tpu.vector_store %arg21[%c0_150, %c0_151], %428 {strides = array<i32>} : memref<8x32xf32, #tpu.memory_space<vmem>>, vector<8x32xf32>,
    } else {
    }
    %c0 = arith.constant 0 : index
    %c0_1 = arith.constant 0 : index
    %c0_2 = arith.constant 0 : index
    %3 = vector.load %arg3[%c0, %c0_1, %c0_2] : memref<8x8x32xf32, #tpu.memory_space<vmem>>, vector<8x8x32xf32>
    %c0_3 = arith.constant 0 : index
    %c0_4 = arith.constant 0 : index
    %c0_5 = arith.constant 0 : index
    %4 = vector.load %arg4[%c0_3, %c0_4, %c0_5] : memref<8x8x32xf32, #tpu.memory_space<vmem>>, vector<8x8x32xf32>
    %c0_6 = arith.constant 0 : index
    %c0_7 = arith.constant 0 : index
    %5 = vector.load %arg5[%c0_6, %c0_7] : memref<8x128xf32, #tpu.memory_space<vmem>>, vector<8x128xf32>
    %c0_8 = arith.constant 0 : index
    %c0_9 = arith.constant 0 : index
    %6 = vector.load %arg6[%c0_8, %c0_9] : memref<32x128xf32, #tpu.memory_space<vmem>>, vector<32x128xf32>
    %c0_10 = arith.constant 0 : index
    %c0_11 = arith.constant 0 : index
    %7 = vector.load %arg7[%c0_10, %c0_11] : memref<32x128xf32, #tpu.memory_space<vmem>>, vector<32x128xf32>
    %c0_12 = arith.constant 0 : index
    %c0_13 = arith.constant 0 : index
    %8 = vector.load %arg8[%c0_12, %c0_13] : memref<32x128xf32, #tpu.memory_space<vmem>>, vector<32x128xf32>
    %c0_14 = arith.constant 0 : index
    %c0_15 = arith.constant 0 : index
    %9 = vector.load %arg9[%c0_14, %c0_15] : memref<32x128xf32, #tpu.memory_space<vmem>>, vector<32x128xf32>
    %c0_16 = arith.constant 0 : index
    %c0_17 = arith.constant 0 : index
    %10 = vector.load %arg10[%c0_16, %c0_17] : memref<32x128xf32, #tpu.memory_space<vmem>>, vector<32x128xf32>
    %c0_18 = arith.constant 0 : index
    %c0_19 = arith.constant 0 : index
    %11 = vector.load %arg11[%c0_18, %c0_19] : memref<32x128xf32, #tpu.memory_space<vmem>>, vector<32x128xf32>
    %c0_20 = arith.constant 0 : index
    %c0_21 = arith.constant 0 : index
    %12 = vector.load %arg13[%c0_20, %c0_21] : memref<32x32xf32, #tpu.memory_space<vmem>>, vector<32x32xf32>
    %c0_22 = arith.constant 0 : index
    %c0_23 = arith.constant 0 : index
    %13 = vector.load %arg12[%c0_22, %c0_23] : memref<1x128xf32, #tpu.memory_space<vmem>>, vector<1x128xf32>
    %14 = vector.shape_cast %13 : vector<1x128xf32> to vector<1x128xf32>
    %15 = vector.broadcast %14 : vector<1x128xf32> to vector<8x128xf32>
    %c0_24 = arith.constant 0 : index
    %c0_25 = arith.constant 0 : index
    %16 = vector.load %arg14[%c0_24, %c0_25] : memref<1x32xf32, #tpu.memory_space<vmem>>, vector<1x32xf32>
    %17 = vector.shape_cast %16 : vector<1x32xf32> to vector<1x32xf32>
    %18 = vector.broadcast %17 : vector<1x32xf32> to vector<8x32xf32>
    %c0_26 = arith.constant 0 : index
    %c0_27 = arith.constant 0 : index
    %19 = vector.load %arg15[%c0_26, %c0_27] : memref<1x32xf32, #tpu.memory_space<vmem>>, vector<1x32xf32>
    %20 = vector.shape_cast %19 : vector<1x32xf32> to vector<1x1x32xf32>
    %21 = vector.broadcast %20 : vector<1x1x32xf32> to vector<8x8x32xf32>
    %c0_28 = arith.constant 0 : index
    %c0_29 = arith.constant 0 : index
    %22 = vector.load %arg18[%c0_28, %c0_29] : memref<8x32xf32, #tpu.memory_space<vmem>>, vector<8x32xf32>
    %c0_30 = arith.constant 0 : index
    %c0_31 = arith.constant 0 : index
    %23 = vector.load %arg19[%c0_30, %c0_31] : memref<8x32xf32, #tpu.memory_space<vmem>>, vector<8x32xf32>
    %c0_32 = arith.constant 0 : index
    %c0_33 = arith.constant 0 : index
    %24 = vector.load %arg20[%c0_32, %c0_33] : memref<8x32xf32, #tpu.memory_space<vmem>>, vector<8x32xf32>
    %c0_34 = arith.constant 0 : index
    %c0_35 = arith.constant 0 : index
    %25 = vector.load %arg21[%c0_34, %c0_35] : memref<8x32xf32, #tpu.memory_space<vmem>>, vector<8x32xf32>
    %c0_i32_36 = arith.constant 0 : i32
    %26 = arith.index_cast %c0_i32_36 : i32 to index
    %c0_37 = arith.constant 0 : index
    %c0_38 = arith.constant 0 : index
    %27 = vector.load %arg2[%26, %c0_37, %c0_38] : memref<4x8x32xf32, #tpu.memory_space<vmem>>, vector<1x8x32xf32>
    %28 = vector.shape_cast %27 : vector<1x8x32xf32> to vector<8x32xf32>
    %cst = arith.constant dense<0.000000e+00> : vector<8x128xf32>
    %29 = tpu.matmul %24, %6, %cst {dimension_numbers = #tpu.dot_dimension_numbers<[1], [0], [0], [1], [0, 0, 1, 1], [], []>} : vector<8x32xf32>, vector<32x128xf32>, vector<8x128xf32> -> vector<8x128xf32>
    %cst_39 = arith.constant dense<0.000000e+00> : vector<8x128xf32>
    %30 = tpu.matmul %28, %7, %cst_39 {dimension_numbers = #tpu.dot_dimension_numbers<[1], [0], [0], [1], [0, 0, 1, 1], [], []>} : vector<8x32xf32>, vector<32x128xf32>, vector<8x128xf32> -> vector<8x128xf32>
    %31 = arith.addf %29, %30 : vector<8x128xf32>
    %cst_40 = arith.constant dense<0.000000e+00> : vector<8x128xf32>
    %32 = tpu.matmul %22, %8, %cst_40 {dimension_numbers = #tpu.dot_dimension_numbers<[1], [0], [0], [1], [0, 0, 1, 1], [], []>} : vector<8x32xf32>, vector<32x128xf32>, vector<8x128xf32> -> vector<8x128xf32>
    %33 = arith.addf %31, %32 : vector<8x128xf32>
    %34 = arith.addf %33, %5 : vector<8x128xf32>
    %35 = vector.extract_strided_slice %34 {offsets = [0, 0], sizes = [8, 32], strides = [1, 1]} : vector<8x128xf32> to vector<8x32xf32>
    %36 = arith.negf %35 : vector<8x32xf32>
    %37 = math.exp %36 : vector<8x32xf32>
    %cst_41 = arith.constant 1.000000e+00 : f32
    %38 = vector.broadcast %cst_41 : f32 to vector<8x32xf32>
    %39 = arith.addf %38, %37 : vector<8x32xf32>
    %40 = arith.divf %38, %39 : vector<8x32xf32>
    %41 = vector.extract_strided_slice %34 {offsets = [0, 32], sizes = [8, 32], strides = [1, 1]} : vector<8x128xf32> to vector<8x32xf32>
    %42 = arith.negf %41 : vector<8x32xf32>
    %43 = math.exp %42 : vector<8x32xf32>
    %cst_42 = arith.constant 1.000000e+00 : f32
    %44 = vector.broadcast %cst_42 : f32 to vector<8x32xf32>
    %45 = arith.addf %44, %43 : vector<8x32xf32>
    %46 = arith.divf %44, %45 : vector<8x32xf32>
    %47 = vector.extract_strided_slice %34 {offsets = [0, 64], sizes = [8, 32], strides = [1, 1]} : vector<8x128xf32> to vector<8x32xf32>
    %48 = math.tanh %47 : vector<8x32xf32>
    %49 = vector.extract_strided_slice %34 {offsets = [0, 96], sizes = [8, 32], strides = [1, 1]} : vector<8x128xf32> to vector<8x32xf32>
    %50 = arith.negf %49 : vector<8x32xf32>
    %51 = math.exp %50 : vector<8x32xf32>
    %cst_43 = arith.constant 1.000000e+00 : f32
    %52 = vector.broadcast %cst_43 : f32 to vector<8x32xf32>
    %53 = arith.addf %52, %51 : vector<8x32xf32>
    %54 = arith.divf %52, %53 : vector<8x32xf32>
    %55 = arith.mulf %46, %23 : vector<8x32xf32>
    %56 = arith.mulf %40, %48 : vector<8x32xf32>
    %57 = arith.addf %55, %56 : vector<8x32xf32>
    %58 = math.tanh %57 : vector<8x32xf32>
    %59 = arith.mulf %54, %58 : vector<8x32xf32>
    %cst_44 = arith.constant dense<0.000000e+00> : vector<8x32xf32>
    %60 = tpu.matmul %59, %12, %cst_44 {dimension_numbers = #tpu.dot_dimension_numbers<[1], [0], [0], [1], [0, 0, 1, 1], [], []>} : vector<8x32xf32>, vector<32x32xf32>, vector<8x32xf32> -> vector<8x32xf32>
    %61 = arith.addf %60, %18 : vector<8x32xf32>
    %62 = vector.shape_cast %61 : vector<8x32xf32> to vector<8x1x32xf32>
    %63 = vector.broadcast %62 : vector<8x1x32xf32> to vector<8x8x32xf32>
    %64 = arith.addf %4, %63 : vector<8x8x32xf32>
    %65 = math.tanh %64 : vector<8x8x32xf32>
    %66 = arith.mulf %65, %21 : vector<8x8x32xf32>
    %cst_45 = arith.constant dense<0.000000e+00> : vector<8x8xf32>
    %67 = vector.multi_reduction <add>, %66, %cst_45 [2] : vector<8x8x32xf32> to vector<8x8xf32>
    %cst_46 = arith.constant dense<0xFF800000> : vector<8xf32>
    %68 = vector.multi_reduction <maximumf>, %67, %cst_46 [1] : vector<8x8xf32> to vector<8xf32>
    %69 = vector.shape_cast %68 : vector<8xf32> to vector<8x1xf32>
    %70 = vector.broadcast %69 : vector<8x1xf32> to vector<8x8xf32>
    %71 = arith.subf %67, %70 : vector<8x8xf32>
    %72 = math.exp %71 : vector<8x8xf32>
    %cst_47 = arith.constant dense<0.000000e+00> : vector<8xf32>
    %73 = vector.multi_reduction <add>, %72, %cst_47 [1] : vector<8x8xf32> to vector<8xf32>
    %74 = vector.shape_cast %73 : vector<8xf32> to vector<8x1xf32>
    %75 = tpu.reciprocal %74 {approx = true} : vector<8x1xf32> -> vector<8x1xf32>
    %76 = arith.mulf %74, %75 : vector<8x1xf32>
    %cst_48 = arith.constant 2.000000e+00 : f32
    %77 = vector.broadcast %cst_48 : f32 to vector<8x1xf32>
    %78 = arith.subf %77, %76 : vector<8x1xf32>
    %79 = arith.mulf %75, %78 : vector<8x1xf32>
    %80 = vector.broadcast %79 : vector<8x1xf32> to vector<8x8xf32>
    %81 = arith.mulf %72, %80 : vector<8x8xf32>
    %82 = vector.shape_cast %81 : vector<8x8xf32> to vector<8x1x8xf32>
    "tpu.trace_start"() <{level = 10 : i32, message = "bqr,brd->bqd"}> : () -> ()
    %cst_49 = arith.constant dense<0.000000e+00> : vector<8x1x32xf32>
    %83 = tpu.matmul %82, %3, %cst_49 {dimension_numbers = #tpu.dot_dimension_numbers<[2], [1], [1], [2], [0, 0, 0, 1, 1, 2], [0], [0]>} : vector<8x1x8xf32>, vector<8x8x32xf32>, vector<8x1x32xf32> -> vector<8x1x32xf32>
    "tpu.trace_stop"() : () -> ()
    %84 = vector.shape_cast %83 : vector<8x1x32xf32> to vector<8x32xf32>
    %cst_50 = arith.constant dense<0.000000e+00> : vector<8x128xf32>
    %85 = tpu.matmul %84, %9, %cst_50 {dimension_numbers = #tpu.dot_dimension_numbers<[1], [0], [0], [1], [0, 0, 1, 1], [], []>} : vector<8x32xf32>, vector<32x128xf32>, vector<8x128xf32> -> vector<8x128xf32>
    %cst_51 = arith.constant dense<0.000000e+00> : vector<8x128xf32>
    %86 = tpu.matmul %59, %10, %cst_51 {dimension_numbers = #tpu.dot_dimension_numbers<[1], [0], [0], [1], [0, 0, 1, 1], [], []>} : vector<8x32xf32>, vector<32x128xf32>, vector<8x128xf32> -> vector<8x128xf32>
    %87 = arith.addf %85, %86 : vector<8x128xf32>
    %cst_52 = arith.constant dense<0.000000e+00> : vector<8x128xf32>
    %88 = tpu.matmul %24, %11, %cst_52 {dimension_numbers = #tpu.dot_dimension_numbers<[1], [0], [0], [1], [0, 0, 1, 1], [], []>} : vector<8x32xf32>, vector<32x128xf32>, vector<8x128xf32> -> vector<8x128xf32>
    %89 = arith.addf %87, %88 : vector<8x128xf32>
    %90 = arith.addf %89, %15 : vector<8x128xf32>
    %91 = vector.extract_strided_slice %90 {offsets = [0, 0], sizes = [8, 32], strides = [1, 1]} : vector<8x128xf32> to vector<8x32xf32>
    %92 = arith.negf %91 : vector<8x32xf32>
    %93 = math.exp %92 : vector<8x32xf32>
    %cst_53 = arith.constant 1.000000e+00 : f32
    %94 = vector.broadcast %cst_53 : f32 to vector<8x32xf32>
    %95 = arith.addf %94, %93 : vector<8x32xf32>
    %96 = arith.divf %94, %95 : vector<8x32xf32>
    %97 = vector.extract_strided_slice %90 {offsets = [0, 32], sizes = [8, 32], strides = [1, 1]} : vector<8x128xf32> to vector<8x32xf32>
    %98 = arith.negf %97 : vector<8x32xf32>
    %99 = math.exp %98 : vector<8x32xf32>
    %cst_54 = arith.constant 1.000000e+00 : f32
    %100 = vector.broadcast %cst_54 : f32 to vector<8x32xf32>
    %101 = arith.addf %100, %99 : vector<8x32xf32>
    %102 = arith.divf %100, %101 : vector<8x32xf32>
    %103 = vector.extract_strided_slice %90 {offsets = [0, 64], sizes = [8, 32], strides = [1, 1]} : vector<8x128xf32> to vector<8x32xf32>
    %104 = math.tanh %103 : vector<8x32xf32>
    %105 = vector.extract_strided_slice %90 {offsets = [0, 96], sizes = [8, 32], strides = [1, 1]} : vector<8x128xf32> to vector<8x32xf32>
    %106 = arith.negf %105 : vector<8x32xf32>
    %107 = math.exp %106 : vector<8x32xf32>
    %cst_55 = arith.constant 1.000000e+00 : f32
    %108 = vector.broadcast %cst_55 : f32 to vector<8x32xf32>
    %109 = arith.addf %108, %107 : vector<8x32xf32>
    %110 = arith.divf %108, %109 : vector<8x32xf32>
    %111 = arith.mulf %102, %25 : vector<8x32xf32>
    %112 = arith.mulf %96, %104 : vector<8x32xf32>
    %113 = arith.addf %111, %112 : vector<8x32xf32>
    %114 = math.tanh %113 : vector<8x32xf32>
    %115 = arith.mulf %110, %114 : vector<8x32xf32>
    %116 = arith.index_cast %c0_i32_36 : i32 to index
    %c0_56 = arith.constant 0 : index
    %c0_57 = arith.constant 0 : index
    %117 = vector.load %arg16[%116, %c0_56, %c0_57] : memref<4x8x32xf32, #tpu.memory_space<vmem>>, vector<1x8x32xf32>
    %118 = vector.shape_cast %117 : vector<1x8x32xf32> to vector<8x32xf32>
    %119 = vector.shape_cast %59 : vector<8x32xf32> to vector<1x8x32xf32>
    tpu.vector_store %arg16[%116, %c0_56, %c0_57], %119 {strides = array<i32>} : memref<4x8x32xf32, #tpu.memory_space<vmem>>, vector<1x8x32xf32>,
    %120 = arith.index_cast %c0_i32_36 : i32 to index
    %c0_58 = arith.constant 0 : index
    %c0_59 = arith.constant 0 : index
    %121 = vector.load %arg17[%120, %c0_58, %c0_59] : memref<4x8x32xf32, #tpu.memory_space<vmem>>, vector<1x8x32xf32>
    %122 = vector.shape_cast %121 : vector<1x8x32xf32> to vector<8x32xf32>
    %123 = vector.shape_cast %115 : vector<8x32xf32> to vector<1x8x32xf32>
    tpu.vector_store %arg17[%120, %c0_58, %c0_59], %123 {strides = array<i32>} : memref<4x8x32xf32, #tpu.memory_space<vmem>>, vector<1x8x32xf32>,
    %c1_i32 = arith.constant 1 : i32
    %124 = arith.index_cast %c1_i32 : i32 to index
    %c0_60 = arith.constant 0 : index
    %c0_61 = arith.constant 0 : index
    %125 = vector.load %arg2[%124, %c0_60, %c0_61] : memref<4x8x32xf32, #tpu.memory_space<vmem>>, vector<1x8x32xf32>
    %126 = vector.shape_cast %125 : vector<1x8x32xf32> to vector<8x32xf32>
    %cst_62 = arith.constant dense<0.000000e+00> : vector<8x128xf32>
    %127 = tpu.matmul %115, %6, %cst_62 {dimension_numbers = #tpu.dot_dimension_numbers<[1], [0], [0], [1], [0, 0, 1, 1], [], []>} : vector<8x32xf32>, vector<32x128xf32>, vector<8x128xf32> -> vector<8x128xf32>
    %cst_63 = arith.constant dense<0.000000e+00> : vector<8x128xf32>
    %128 = tpu.matmul %126, %7, %cst_63 {dimension_numbers = #tpu.dot_dimension_numbers<[1], [0], [0], [1], [0, 0, 1, 1], [], []>} : vector<8x32xf32>, vector<32x128xf32>, vector<8x128xf32> -> vector<8x128xf32>
    %129 = arith.addf %127, %128 : vector<8x128xf32>
    %cst_64 = arith.constant dense<0.000000e+00> : vector<8x128xf32>
    %130 = tpu.matmul %59, %8, %cst_64 {dimension_numbers = #tpu.dot_dimension_numbers<[1], [0], [0], [1], [0, 0, 1, 1], [], []>} : vector<8x32xf32>, vector<32x128xf32>, vector<8x128xf32> -> vector<8x128xf32>
    %131 = arith.addf %129, %130 : vector<8x128xf32>
    %132 = arith.addf %131, %5 : vector<8x128xf32>
    %133 = vector.extract_strided_slice %132 {offsets = [0, 0], sizes = [8, 32], strides = [1, 1]} : vector<8x128xf32> to vector<8x32xf32>
    %134 = arith.negf %133 : vector<8x32xf32>
    %135 = math.exp %134 : vector<8x32xf32>
    %cst_65 = arith.constant 1.000000e+00 : f32
    %136 = vector.broadcast %cst_65 : f32 to vector<8x32xf32>
    %137 = arith.addf %136, %135 : vector<8x32xf32>
    %138 = arith.divf %136, %137 : vector<8x32xf32>
    %139 = vector.extract_strided_slice %132 {offsets = [0, 32], sizes = [8, 32], strides = [1, 1]} : vector<8x128xf32> to vector<8x32xf32>
    %140 = arith.negf %139 : vector<8x32xf32>
    %141 = math.exp %140 : vector<8x32xf32>
    %cst_66 = arith.constant 1.000000e+00 : f32
    %142 = vector.broadcast %cst_66 : f32 to vector<8x32xf32>
    %143 = arith.addf %142, %141 : vector<8x32xf32>
    %144 = arith.divf %142, %143 : vector<8x32xf32>
    %145 = vector.extract_strided_slice %132 {offsets = [0, 64], sizes = [8, 32], strides = [1, 1]} : vector<8x128xf32> to vector<8x32xf32>
    %146 = math.tanh %145 : vector<8x32xf32>
    %147 = vector.extract_strided_slice %132 {offsets = [0, 96], sizes = [8, 32], strides = [1, 1]} : vector<8x128xf32> to vector<8x32xf32>
    %148 = arith.negf %147 : vector<8x32xf32>
    %149 = math.exp %148 : vector<8x32xf32>
    %cst_67 = arith.constant 1.000000e+00 : f32
    %150 = vector.broadcast %cst_67 : f32 to vector<8x32xf32>
    %151 = arith.addf %150, %149 : vector<8x32xf32>
    %152 = arith.divf %150, %151 : vector<8x32xf32>
    %153 = arith.mulf %144, %57 : vector<8x32xf32>
    %154 = arith.mulf %138, %146 : vector<8x32xf32>
    %155 = arith.addf %153, %154 : vector<8x32xf32>
    %156 = math.tanh %155 : vector<8x32xf32>
    %157 = arith.mulf %152, %156 : vector<8x32xf32>
    %cst_68 = arith.constant dense<0.000000e+00> : vector<8x32xf32>
    %158 = tpu.matmul %157, %12, %cst_68 {dimension_numbers = #tpu.dot_dimension_numbers<[1], [0], [0], [1], [0, 0, 1, 1], [], []>} : vector<8x32xf32>, vector<32x32xf32>, vector<8x32xf32> -> vector<8x32xf32>
    %159 = arith.addf %158, %18 : vector<8x32xf32>
    %160 = vector.shape_cast %159 : vector<8x32xf32> to vector<8x1x32xf32>
    %161 = vector.broadcast %160 : vector<8x1x32xf32> to vector<8x8x32xf32>
    %162 = arith.addf %4, %161 : vector<8x8x32xf32>
    %163 = math.tanh %162 : vector<8x8x32xf32>
    %164 = arith.mulf %163, %21 : vector<8x8x32xf32>
    %cst_69 = arith.constant dense<0.000000e+00> : vector<8x8xf32>
    %165 = vector.multi_reduction <add>, %164, %cst_69 [2] : vector<8x8x32xf32> to vector<8x8xf32>
    %cst_70 = arith.constant dense<0xFF800000> : vector<8xf32>
    %166 = vector.multi_reduction <maximumf>, %165, %cst_70 [1] : vector<8x8xf32> to vector<8xf32>
    %167 = vector.shape_cast %166 : vector<8xf32> to vector<8x1xf32>
    %168 = vector.broadcast %167 : vector<8x1xf32> to vector<8x8xf32>
    %169 = arith.subf %165, %168 : vector<8x8xf32>
    %170 = math.exp %169 : vector<8x8xf32>
    %cst_71 = arith.constant dense<0.000000e+00> : vector<8xf32>
    %171 = vector.multi_reduction <add>, %170, %cst_71 [1] : vector<8x8xf32> to vector<8xf32>
    %172 = vector.shape_cast %171 : vector<8xf32> to vector<8x1xf32>
    %173 = tpu.reciprocal %172 {approx = true} : vector<8x1xf32> -> vector<8x1xf32>
    %174 = arith.mulf %172, %173 : vector<8x1xf32>
    %cst_72 = arith.constant 2.000000e+00 : f32
    %175 = vector.broadcast %cst_72 : f32 to vector<8x1xf32>
    %176 = arith.subf %175, %174 : vector<8x1xf32>
    %177 = arith.mulf %173, %176 : vector<8x1xf32>
    %178 = vector.broadcast %177 : vector<8x1xf32> to vector<8x8xf32>
    %179 = arith.mulf %170, %178 : vector<8x8xf32>
    %180 = vector.shape_cast %179 : vector<8x8xf32> to vector<8x1x8xf32>
    "tpu.trace_start"() <{level = 10 : i32, message = "bqr,brd->bqd"}> : () -> ()
    %cst_73 = arith.constant dense<0.000000e+00> : vector<8x1x32xf32>
    %181 = tpu.matmul %180, %3, %cst_73 {dimension_numbers = #tpu.dot_dimension_numbers<[2], [1], [1], [2], [0, 0, 0, 1, 1, 2], [0], [0]>} : vector<8x1x8xf32>, vector<8x8x32xf32>, vector<8x1x32xf32> -> vector<8x1x32xf32>
    "tpu.trace_stop"() : () -> ()
    %182 = vector.shape_cast %181 : vector<8x1x32xf32> to vector<8x32xf32>
    %cst_74 = arith.constant dense<0.000000e+00> : vector<8x128xf32>
    %183 = tpu.matmul %182, %9, %cst_74 {dimension_numbers = #tpu.dot_dimension_numbers<[1], [0], [0], [1], [0, 0, 1, 1], [], []>} : vector<8x32xf32>, vector<32x128xf32>, vector<8x128xf32> -> vector<8x128xf32>
    %cst_75 = arith.constant dense<0.000000e+00> : vector<8x128xf32>
    %184 = tpu.matmul %157, %10, %cst_75 {dimension_numbers = #tpu.dot_dimension_numbers<[1], [0], [0], [1], [0, 0, 1, 1], [], []>} : vector<8x32xf32>, vector<32x128xf32>, vector<8x128xf32> -> vector<8x128xf32>
    %185 = arith.addf %183, %184 : vector<8x128xf32>
    %cst_76 = arith.constant dense<0.000000e+00> : vector<8x128xf32>
    %186 = tpu.matmul %115, %11, %cst_76 {dimension_numbers = #tpu.dot_dimension_numbers<[1], [0], [0], [1], [0, 0, 1, 1], [], []>} : vector<8x32xf32>, vector<32x128xf32>, vector<8x128xf32> -> vector<8x128xf32>
    %187 = arith.addf %185, %186 : vector<8x128xf32>
    %188 = arith.addf %187, %15 : vector<8x128xf32>
    %189 = vector.extract_strided_slice %188 {offsets = [0, 0], sizes = [8, 32], strides = [1, 1]} : vector<8x128xf32> to vector<8x32xf32>
    %190 = arith.negf %189 : vector<8x32xf32>
    %191 = math.exp %190 : vector<8x32xf32>
    %cst_77 = arith.constant 1.000000e+00 : f32
    %192 = vector.broadcast %cst_77 : f32 to vector<8x32xf32>
    %193 = arith.addf %192, %191 : vector<8x32xf32>
    %194 = arith.divf %192, %193 : vector<8x32xf32>
    %195 = vector.extract_strided_slice %188 {offsets = [0, 32], sizes = [8, 32], strides = [1, 1]} : vector<8x128xf32> to vector<8x32xf32>
    %196 = arith.negf %195 : vector<8x32xf32>
    %197 = math.exp %196 : vector<8x32xf32>
    %cst_78 = arith.constant 1.000000e+00 : f32
    %198 = vector.broadcast %cst_78 : f32 to vector<8x32xf32>
    %199 = arith.addf %198, %197 : vector<8x32xf32>
    %200 = arith.divf %198, %199 : vector<8x32xf32>
    %201 = vector.extract_strided_slice %188 {offsets = [0, 64], sizes = [8, 32], strides = [1, 1]} : vector<8x128xf32> to vector<8x32xf32>
    %202 = math.tanh %201 : vector<8x32xf32>
    %203 = vector.extract_strided_slice %188 {offsets = [0, 96], sizes = [8, 32], strides = [1, 1]} : vector<8x128xf32> to vector<8x32xf32>
    %204 = arith.negf %203 : vector<8x32xf32>
    %205 = math.exp %204 : vector<8x32xf32>
    %cst_79 = arith.constant 1.000000e+00 : f32
    %206 = vector.broadcast %cst_79 : f32 to vector<8x32xf32>
    %207 = arith.addf %206, %205 : vector<8x32xf32>
    %208 = arith.divf %206, %207 : vector<8x32xf32>
    %209 = arith.mulf %200, %113 : vector<8x32xf32>
    %210 = arith.mulf %194, %202 : vector<8x32xf32>
    %211 = arith.addf %209, %210 : vector<8x32xf32>
    %212 = math.tanh %211 : vector<8x32xf32>
    %213 = arith.mulf %208, %212 : vector<8x32xf32>
    %214 = arith.index_cast %c1_i32 : i32 to index
    %c0_80 = arith.constant 0 : index
    %c0_81 = arith.constant 0 : index
    %215 = vector.load %arg16[%214, %c0_80, %c0_81] : memref<4x8x32xf32, #tpu.memory_space<vmem>>, vector<1x8x32xf32>
    %216 = vector.shape_cast %215 : vector<1x8x32xf32> to vector<8x32xf32>
    %217 = vector.shape_cast %157 : vector<8x32xf32> to vector<1x8x32xf32>
    tpu.vector_store %arg16[%214, %c0_80, %c0_81], %217 {strides = array<i32>} : memref<4x8x32xf32, #tpu.memory_space<vmem>>, vector<1x8x32xf32>,
    %218 = arith.index_cast %c1_i32 : i32 to index
    %c0_82 = arith.constant 0 : index
    %c0_83 = arith.constant 0 : index
    %219 = vector.load %arg17[%218, %c0_82, %c0_83] : memref<4x8x32xf32, #tpu.memory_space<vmem>>, vector<1x8x32xf32>
    %220 = vector.shape_cast %219 : vector<1x8x32xf32> to vector<8x32xf32>
    %221 = vector.shape_cast %213 : vector<8x32xf32> to vector<1x8x32xf32>
    tpu.vector_store %arg17[%218, %c0_82, %c0_83], %221 {strides = array<i32>} : memref<4x8x32xf32, #tpu.memory_space<vmem>>, vector<1x8x32xf32>,
    %c2_i32 = arith.constant 2 : i32
    %222 = arith.index_cast %c2_i32 : i32 to index
    %c0_84 = arith.constant 0 : index
    %c0_85 = arith.constant 0 : index
    %223 = vector.load %arg2[%222, %c0_84, %c0_85] : memref<4x8x32xf32, #tpu.memory_space<vmem>>, vector<1x8x32xf32>
    %224 = vector.shape_cast %223 : vector<1x8x32xf32> to vector<8x32xf32>
    %cst_86 = arith.constant dense<0.000000e+00> : vector<8x128xf32>
    %225 = tpu.matmul %213, %6, %cst_86 {dimension_numbers = #tpu.dot_dimension_numbers<[1], [0], [0], [1], [0, 0, 1, 1], [], []>} : vector<8x32xf32>, vector<32x128xf32>, vector<8x128xf32> -> vector<8x128xf32>
    %cst_87 = arith.constant dense<0.000000e+00> : vector<8x128xf32>
    %226 = tpu.matmul %224, %7, %cst_87 {dimension_numbers = #tpu.dot_dimension_numbers<[1], [0], [0], [1], [0, 0, 1, 1], [], []>} : vector<8x32xf32>, vector<32x128xf32>, vector<8x128xf32> -> vector<8x128xf32>
    %227 = arith.addf %225, %226 : vector<8x128xf32>
    %cst_88 = arith.constant dense<0.000000e+00> : vector<8x128xf32>
    %228 = tpu.matmul %157, %8, %cst_88 {dimension_numbers = #tpu.dot_dimension_numbers<[1], [0], [0], [1], [0, 0, 1, 1], [], []>} : vector<8x32xf32>, vector<32x128xf32>, vector<8x128xf32> -> vector<8x128xf32>
    %229 = arith.addf %227, %228 : vector<8x128xf32>
    %230 = arith.addf %229, %5 : vector<8x128xf32>
    %231 = vector.extract_strided_slice %230 {offsets = [0, 0], sizes = [8, 32], strides = [1, 1]} : vector<8x128xf32> to vector<8x32xf32>
    %232 = arith.negf %231 : vector<8x32xf32>
    %233 = math.exp %232 : vector<8x32xf32>
    %cst_89 = arith.constant 1.000000e+00 : f32
    %234 = vector.broadcast %cst_89 : f32 to vector<8x32xf32>
    %235 = arith.addf %234, %233 : vector<8x32xf32>
    %236 = arith.divf %234, %235 : vector<8x32xf32>
    %237 = vector.extract_strided_slice %230 {offsets = [0, 32], sizes = [8, 32], strides = [1, 1]} : vector<8x128xf32> to vector<8x32xf32>
    %238 = arith.negf %237 : vector<8x32xf32>
    %239 = math.exp %238 : vector<8x32xf32>
    %cst_90 = arith.constant 1.000000e+00 : f32
    %240 = vector.broadcast %cst_90 : f32 to vector<8x32xf32>
    %241 = arith.addf %240, %239 : vector<8x32xf32>
    %242 = arith.divf %240, %241 : vector<8x32xf32>
    %243 = vector.extract_strided_slice %230 {offsets = [0, 64], sizes = [8, 32], strides = [1, 1]} : vector<8x128xf32> to vector<8x32xf32>
    %244 = math.tanh %243 : vector<8x32xf32>
    %245 = vector.extract_strided_slice %230 {offsets = [0, 96], sizes = [8, 32], strides = [1, 1]} : vector<8x128xf32> to vector<8x32xf32>
    %246 = arith.negf %245 : vector<8x32xf32>
    %247 = math.exp %246 : vector<8x32xf32>
    %cst_91 = arith.constant 1.000000e+00 : f32
    %248 = vector.broadcast %cst_91 : f32 to vector<8x32xf32>
    %249 = arith.addf %248, %247 : vector<8x32xf32>
    %250 = arith.divf %248, %249 : vector<8x32xf32>
    %251 = arith.mulf %242, %155 : vector<8x32xf32>
    %252 = arith.mulf %236, %244 : vector<8x32xf32>
    %253 = arith.addf %251, %252 : vector<8x32xf32>
    %254 = math.tanh %253 : vector<8x32xf32>
    %255 = arith.mulf %250, %254 : vector<8x32xf32>
    %cst_92 = arith.constant dense<0.000000e+00> : vector<8x32xf32>
    %256 = tpu.matmul %255, %12, %cst_92 {dimension_numbers = #tpu.dot_dimension_numbers<[1], [0], [0], [1], [0, 0, 1, 1], [], []>} : vector<8x32xf32>, vector<32x32xf32>, vector<8x32xf32> -> vector<8x32xf32>
    %257 = arith.addf %256, %18 : vector<8x32xf32>
    %258 = vector.shape_cast %257 : vector<8x32xf32> to vector<8x1x32xf32>
    %259 = vector.broadcast %258 : vector<8x1x32xf32> to vector<8x8x32xf32>
    %260 = arith.addf %4, %259 : vector<8x8x32xf32>
    %261 = math.tanh %260 : vector<8x8x32xf32>
    %262 = arith.mulf %261, %21 : vector<8x8x32xf32>
    %cst_93 = arith.constant dense<0.000000e+00> : vector<8x8xf32>
    %263 = vector.multi_reduction <add>, %262, %cst_93 [2] : vector<8x8x32xf32> to vector<8x8xf32>
    %cst_94 = arith.constant dense<0xFF800000> : vector<8xf32>
    %264 = vector.multi_reduction <maximumf>, %263, %cst_94 [1] : vector<8x8xf32> to vector<8xf32>
    %265 = vector.shape_cast %264 : vector<8xf32> to vector<8x1xf32>
    %266 = vector.broadcast %265 : vector<8x1xf32> to vector<8x8xf32>
    %267 = arith.subf %263, %266 : vector<8x8xf32>
    %268 = math.exp %267 : vector<8x8xf32>
    %cst_95 = arith.constant dense<0.000000e+00> : vector<8xf32>
    %269 = vector.multi_reduction <add>, %268, %cst_95 [1] : vector<8x8xf32> to vector<8xf32>
    %270 = vector.shape_cast %269 : vector<8xf32> to vector<8x1xf32>
    %271 = tpu.reciprocal %270 {approx = true} : vector<8x1xf32> -> vector<8x1xf32>
    %272 = arith.mulf %270, %271 : vector<8x1xf32>
    %cst_96 = arith.constant 2.000000e+00 : f32
    %273 = vector.broadcast %cst_96 : f32 to vector<8x1xf32>
    %274 = arith.subf %273, %272 : vector<8x1xf32>
    %275 = arith.mulf %271, %274 : vector<8x1xf32>
    %276 = vector.broadcast %275 : vector<8x1xf32> to vector<8x8xf32>
    %277 = arith.mulf %268, %276 : vector<8x8xf32>
    %278 = vector.shape_cast %277 : vector<8x8xf32> to vector<8x1x8xf32>
    "tpu.trace_start"() <{level = 10 : i32, message = "bqr,brd->bqd"}> : () -> ()
    %cst_97 = arith.constant dense<0.000000e+00> : vector<8x1x32xf32>
    %279 = tpu.matmul %278, %3, %cst_97 {dimension_numbers = #tpu.dot_dimension_numbers<[2], [1], [1], [2], [0, 0, 0, 1, 1, 2], [0], [0]>} : vector<8x1x8xf32>, vector<8x8x32xf32>, vector<8x1x32xf32> -> vector<8x1x32xf32>
    "tpu.trace_stop"() : () -> ()
    %280 = vector.shape_cast %279 : vector<8x1x32xf32> to vector<8x32xf32>
    %cst_98 = arith.constant dense<0.000000e+00> : vector<8x128xf32>
    %281 = tpu.matmul %280, %9, %cst_98 {dimension_numbers = #tpu.dot_dimension_numbers<[1], [0], [0], [1], [0, 0, 1, 1], [], []>} : vector<8x32xf32>, vector<32x128xf32>, vector<8x128xf32> -> vector<8x128xf32>
    %cst_99 = arith.constant dense<0.000000e+00> : vector<8x128xf32>
    %282 = tpu.matmul %255, %10, %cst_99 {dimension_numbers = #tpu.dot_dimension_numbers<[1], [0], [0], [1], [0, 0, 1, 1], [], []>} : vector<8x32xf32>, vector<32x128xf32>, vector<8x128xf32> -> vector<8x128xf32>
    %283 = arith.addf %281, %282 : vector<8x128xf32>
    %cst_100 = arith.constant dense<0.000000e+00> : vector<8x128xf32>
    %284 = tpu.matmul %213, %11, %cst_100 {dimension_numbers = #tpu.dot_dimension_numbers<[1], [0], [0], [1], [0, 0, 1, 1], [], []>} : vector<8x32xf32>, vector<32x128xf32>, vector<8x128xf32> -> vector<8x128xf32>
    %285 = arith.addf %283, %284 : vector<8x128xf32>
    %286 = arith.addf %285, %15 : vector<8x128xf32>
    %287 = vector.extract_strided_slice %286 {offsets = [0, 0], sizes = [8, 32], strides = [1, 1]} : vector<8x128xf32> to vector<8x32xf32>
    %288 = arith.negf %287 : vector<8x32xf32>
    %289 = math.exp %288 : vector<8x32xf32>
    %cst_101 = arith.constant 1.000000e+00 : f32
    %290 = vector.broadcast %cst_101 : f32 to vector<8x32xf32>
    %291 = arith.addf %290, %289 : vector<8x32xf32>
    %292 = arith.divf %290, %291 : vector<8x32xf32>
    %293 = vector.extract_strided_slice %286 {offsets = [0, 32], sizes = [8, 32], strides = [1, 1]} : vector<8x128xf32> to vector<8x32xf32>
    %294 = arith.negf %293 : vector<8x32xf32>
    %295 = math.exp %294 : vector<8x32xf32>
    %cst_102 = arith.constant 1.000000e+00 : f32
    %296 = vector.broadcast %cst_102 : f32 to vector<8x32xf32>
    %297 = arith.addf %296, %295 : vector<8x32xf32>
    %298 = arith.divf %296, %297 : vector<8x32xf32>
    %299 = vector.extract_strided_slice %286 {offsets = [0, 64], sizes = [8, 32], strides = [1, 1]} : vector<8x128xf32> to vector<8x32xf32>
    %300 = math.tanh %299 : vector<8x32xf32>
    %301 = vector.extract_strided_slice %286 {offsets = [0, 96], sizes = [8, 32], strides = [1, 1]} : vector<8x128xf32> to vector<8x32xf32>
    %302 = arith.negf %301 : vector<8x32xf32>
    %303 = math.exp %302 : vector<8x32xf32>
    %cst_103 = arith.constant 1.000000e+00 : f32
    %304 = vector.broadcast %cst_103 : f32 to vector<8x32xf32>
    %305 = arith.addf %304, %303 : vector<8x32xf32>
    %306 = arith.divf %304, %305 : vector<8x32xf32>
    %307 = arith.mulf %298, %211 : vector<8x32xf32>
    %308 = arith.mulf %292, %300 : vector<8x32xf32>
    %309 = arith.addf %307, %308 : vector<8x32xf32>
    %310 = math.tanh %309 : vector<8x32xf32>
    %311 = arith.mulf %306, %310 : vector<8x32xf32>
    %312 = arith.index_cast %c2_i32 : i32 to index
    %c0_104 = arith.constant 0 : index
    %c0_105 = arith.constant 0 : index
    %313 = vector.load %arg16[%312, %c0_104, %c0_105] : memref<4x8x32xf32, #tpu.memory_space<vmem>>, vector<1x8x32xf32>
    %314 = vector.shape_cast %313 : vector<1x8x32xf32> to vector<8x32xf32>
    %315 = vector.shape_cast %255 : vector<8x32xf32> to vector<1x8x32xf32>
    tpu.vector_store %arg16[%312, %c0_104, %c0_105], %315 {strides = array<i32>} : memref<4x8x32xf32, #tpu.memory_space<vmem>>, vector<1x8x32xf32>,
    %316 = arith.index_cast %c2_i32 : i32 to index
    %c0_106 = arith.constant 0 : index
    %c0_107 = arith.constant 0 : index
    %317 = vector.load %arg17[%316, %c0_106, %c0_107] : memref<4x8x32xf32, #tpu.memory_space<vmem>>, vector<1x8x32xf32>
    %318 = vector.shape_cast %317 : vector<1x8x32xf32> to vector<8x32xf32>
    %319 = vector.shape_cast %311 : vector<8x32xf32> to vector<1x8x32xf32>
    tpu.vector_store %arg17[%316, %c0_106, %c0_107], %319 {strides = array<i32>} : memref<4x8x32xf32, #tpu.memory_space<vmem>>, vector<1x8x32xf32>,
    %c3_i32 = arith.constant 3 : i32
    %320 = arith.index_cast %c3_i32 : i32 to index
    %c0_108 = arith.constant 0 : index
    %c0_109 = arith.constant 0 : index
    %321 = vector.load %arg2[%320, %c0_108, %c0_109] : memref<4x8x32xf32, #tpu.memory_space<vmem>>, vector<1x8x32xf32>
    %322 = vector.shape_cast %321 : vector<1x8x32xf32> to vector<8x32xf32>
    %cst_110 = arith.constant dense<0.000000e+00> : vector<8x128xf32>
    %323 = tpu.matmul %311, %6, %cst_110 {dimension_numbers = #tpu.dot_dimension_numbers<[1], [0], [0], [1], [0, 0, 1, 1], [], []>} : vector<8x32xf32>, vector<32x128xf32>, vector<8x128xf32> -> vector<8x128xf32>
    %cst_111 = arith.constant dense<0.000000e+00> : vector<8x128xf32>
    %324 = tpu.matmul %322, %7, %cst_111 {dimension_numbers = #tpu.dot_dimension_numbers<[1], [0], [0], [1], [0, 0, 1, 1], [], []>} : vector<8x32xf32>, vector<32x128xf32>, vector<8x128xf32> -> vector<8x128xf32>
    %325 = arith.addf %323, %324 : vector<8x128xf32>
    %cst_112 = arith.constant dense<0.000000e+00> : vector<8x128xf32>
    %326 = tpu.matmul %255, %8, %cst_112 {dimension_numbers = #tpu.dot_dimension_numbers<[1], [0], [0], [1], [0, 0, 1, 1], [], []>} : vector<8x32xf32>, vector<32x128xf32>, vector<8x128xf32> -> vector<8x128xf32>
    %327 = arith.addf %325, %326 : vector<8x128xf32>
    %328 = arith.addf %327, %5 : vector<8x128xf32>
    %329 = vector.extract_strided_slice %328 {offsets = [0, 0], sizes = [8, 32], strides = [1, 1]} : vector<8x128xf32> to vector<8x32xf32>
    %330 = arith.negf %329 : vector<8x32xf32>
    %331 = math.exp %330 : vector<8x32xf32>
    %cst_113 = arith.constant 1.000000e+00 : f32
    %332 = vector.broadcast %cst_113 : f32 to vector<8x32xf32>
    %333 = arith.addf %332, %331 : vector<8x32xf32>
    %334 = arith.divf %332, %333 : vector<8x32xf32>
    %335 = vector.extract_strided_slice %328 {offsets = [0, 32], sizes = [8, 32], strides = [1, 1]} : vector<8x128xf32> to vector<8x32xf32>
    %336 = arith.negf %335 : vector<8x32xf32>
    %337 = math.exp %336 : vector<8x32xf32>
    %cst_114 = arith.constant 1.000000e+00 : f32
    %338 = vector.broadcast %cst_114 : f32 to vector<8x32xf32>
    %339 = arith.addf %338, %337 : vector<8x32xf32>
    %340 = arith.divf %338, %339 : vector<8x32xf32>
    %341 = vector.extract_strided_slice %328 {offsets = [0, 64], sizes = [8, 32], strides = [1, 1]} : vector<8x128xf32> to vector<8x32xf32>
    %342 = math.tanh %341 : vector<8x32xf32>
    %343 = vector.extract_strided_slice %328 {offsets = [0, 96], sizes = [8, 32], strides = [1, 1]} : vector<8x128xf32> to vector<8x32xf32>
    %344 = arith.negf %343 : vector<8x32xf32>
    %345 = math.exp %344 : vector<8x32xf32>
    %cst_115 = arith.constant 1.000000e+00 : f32
    %346 = vector.broadcast %cst_115 : f32 to vector<8x32xf32>
    %347 = arith.addf %346, %345 : vector<8x32xf32>
    %348 = arith.divf %346, %347 : vector<8x32xf32>
    %349 = arith.mulf %340, %253 : vector<8x32xf32>
    %350 = arith.mulf %334, %342 : vector<8x32xf32>
    %351 = arith.addf %349, %350 : vector<8x32xf32>
    %352 = math.tanh %351 : vector<8x32xf32>
    %353 = arith.mulf %348, %352 : vector<8x32xf32>
    %cst_116 = arith.constant dense<0.000000e+00> : vector<8x32xf32>
    %354 = tpu.matmul %353, %12, %cst_116 {dimension_numbers = #tpu.dot_dimension_numbers<[1], [0], [0], [1], [0, 0, 1, 1], [], []>} : vector<8x32xf32>, vector<32x32xf32>, vector<8x32xf32> -> vector<8x32xf32>
    %355 = arith.addf %354, %18 : vector<8x32xf32>
    %356 = vector.shape_cast %355 : vector<8x32xf32> to vector<8x1x32xf32>
    %357 = vector.broadcast %356 : vector<8x1x32xf32> to vector<8x8x32xf32>
    %358 = arith.addf %4, %357 : vector<8x8x32xf32>
    %359 = math.tanh %358 : vector<8x8x32xf32>
    %360 = arith.mulf %359, %21 : vector<8x8x32xf32>
    %cst_117 = arith.constant dense<0.000000e+00> : vector<8x8xf32>
    %361 = vector.multi_reduction <add>, %360, %cst_117 [2] : vector<8x8x32xf32> to vector<8x8xf32>
    %cst_118 = arith.constant dense<0xFF800000> : vector<8xf32>
    %362 = vector.multi_reduction <maximumf>, %361, %cst_118 [1] : vector<8x8xf32> to vector<8xf32>
    %363 = vector.shape_cast %362 : vector<8xf32> to vector<8x1xf32>
    %364 = vector.broadcast %363 : vector<8x1xf32> to vector<8x8xf32>
    %365 = arith.subf %361, %364 : vector<8x8xf32>
    %366 = math.exp %365 : vector<8x8xf32>
    %cst_119 = arith.constant dense<0.000000e+00> : vector<8xf32>
    %367 = vector.multi_reduction <add>, %366, %cst_119 [1] : vector<8x8xf32> to vector<8xf32>
    %368 = vector.shape_cast %367 : vector<8xf32> to vector<8x1xf32>
    %369 = tpu.reciprocal %368 {approx = true} : vector<8x1xf32> -> vector<8x1xf32>
    %370 = arith.mulf %368, %369 : vector<8x1xf32>
    %cst_120 = arith.constant 2.000000e+00 : f32
    %371 = vector.broadcast %cst_120 : f32 to vector<8x1xf32>
    %372 = arith.subf %371, %370 : vector<8x1xf32>
    %373 = arith.mulf %369, %372 : vector<8x1xf32>
    %374 = vector.broadcast %373 : vector<8x1xf32> to vector<8x8xf32>
    %375 = arith.mulf %366, %374 : vector<8x8xf32>
    %376 = vector.shape_cast %375 : vector<8x8xf32> to vector<8x1x8xf32>
    "tpu.trace_start"() <{level = 10 : i32, message = "bqr,brd->bqd"}> : () -> ()
    %cst_121 = arith.constant dense<0.000000e+00> : vector<8x1x32xf32>
    %377 = tpu.matmul %376, %3, %cst_121 {dimension_numbers = #tpu.dot_dimension_numbers<[2], [1], [1], [2], [0, 0, 0, 1, 1, 2], [0], [0]>} : vector<8x1x8xf32>, vector<8x8x32xf32>, vector<8x1x32xf32> -> vector<8x1x32xf32>
    "tpu.trace_stop"() : () -> ()
    %378 = vector.shape_cast %377 : vector<8x1x32xf32> to vector<8x32xf32>
    %cst_122 = arith.constant dense<0.000000e+00> : vector<8x128xf32>
    %379 = tpu.matmul %378, %9, %cst_122 {dimension_numbers = #tpu.dot_dimension_numbers<[1], [0], [0], [1], [0, 0, 1, 1], [], []>} : vector<8x32xf32>, vector<32x128xf32>, vector<8x128xf32> -> vector<8x128xf32>
    %cst_123 = arith.constant dense<0.000000e+00> : vector<8x128xf32>
    %380 = tpu.matmul %353, %10, %cst_123 {dimension_numbers = #tpu.dot_dimension_numbers<[1], [0], [0], [1], [0, 0, 1, 1], [], []>} : vector<8x32xf32>, vector<32x128xf32>, vector<8x128xf32> -> vector<8x128xf32>
    %381 = arith.addf %379, %380 : vector<8x128xf32>
    %cst_124 = arith.constant dense<0.000000e+00> : vector<8x128xf32>
    %382 = tpu.matmul %311, %11, %cst_124 {dimension_numbers = #tpu.dot_dimension_numbers<[1], [0], [0], [1], [0, 0, 1, 1], [], []>} : vector<8x32xf32>, vector<32x128xf32>, vector<8x128xf32> -> vector<8x128xf32>
    %383 = arith.addf %381, %382 : vector<8x128xf32>
    %384 = arith.addf %383, %15 : vector<8x128xf32>
    %385 = vector.extract_strided_slice %384 {offsets = [0, 0], sizes = [8, 32], strides = [1, 1]} : vector<8x128xf32> to vector<8x32xf32>
    %386 = arith.negf %385 : vector<8x32xf32>
    %387 = math.exp %386 : vector<8x32xf32>
    %cst_125 = arith.constant 1.000000e+00 : f32
    %388 = vector.broadcast %cst_125 : f32 to vector<8x32xf32>
    %389 = arith.addf %388, %387 : vector<8x32xf32>
    %390 = arith.divf %388, %389 : vector<8x32xf32>
    %391 = vector.extract_strided_slice %384 {offsets = [0, 32], sizes = [8, 32], strides = [1, 1]} : vector<8x128xf32> to vector<8x32xf32>
    %392 = arith.negf %391 : vector<8x32xf32>
    %393 = math.exp %392 : vector<8x32xf32>
    %cst_126 = arith.constant 1.000000e+00 : f32
    %394 = vector.broadcast %cst_126 : f32 to vector<8x32xf32>
    %395 = arith.addf %394, %393 : vector<8x32xf32>
    %396 = arith.divf %394, %395 : vector<8x32xf32>
    %397 = vector.extract_strided_slice %384 {offsets = [0, 64], sizes = [8, 32], strides = [1, 1]} : vector<8x128xf32> to vector<8x32xf32>
    %398 = math.tanh %397 : vector<8x32xf32>
    %399 = vector.extract_strided_slice %384 {offsets = [0, 96], sizes = [8, 32], strides = [1, 1]} : vector<8x128xf32> to vector<8x32xf32>
    %400 = arith.negf %399 : vector<8x32xf32>
    %401 = math.exp %400 : vector<8x32xf32>
    %cst_127 = arith.constant 1.000000e+00 : f32
    %402 = vector.broadcast %cst_127 : f32 to vector<8x32xf32>
    %403 = arith.addf %402, %401 : vector<8x32xf32>
    %404 = arith.divf %402, %403 : vector<8x32xf32>
    %405 = arith.mulf %396, %309 : vector<8x32xf32>
    %406 = arith.mulf %390, %398 : vector<8x32xf32>
    %407 = arith.addf %405, %406 : vector<8x32xf32>
    %408 = math.tanh %407 : vector<8x32xf32>
    %409 = arith.mulf %404, %408 : vector<8x32xf32>
    %410 = arith.index_cast %c3_i32 : i32 to index
    %c0_128 = arith.constant 0 : index
    %c0_129 = arith.constant 0 : index
    %411 = vector.load %arg16[%410, %c0_128, %c0_129] : memref<4x8x32xf32, #tpu.memory_space<vmem>>, vector<1x8x32xf32>
    %412 = vector.shape_cast %411 : vector<1x8x32xf32> to vector<8x32xf32>
    %413 = vector.shape_cast %353 : vector<8x32xf32> to vector<1x8x32xf32>
    tpu.vector_store %arg16[%410, %c0_128, %c0_129], %413 {strides = array<i32>} : memref<4x8x32xf32, #tpu.memory_space<vmem>>, vector<1x8x32xf32>,
    %414 = arith.index_cast %c3_i32 : i32 to index
    %c0_130 = arith.constant 0 : index
    %c0_131 = arith.constant 0 : index
    %415 = vector.load %arg17[%414, %c0_130, %c0_131] : memref<4x8x32xf32, #tpu.memory_space<vmem>>, vector<1x8x32xf32>
    %416 = vector.shape_cast %415 : vector<1x8x32xf32> to vector<8x32xf32>
    %417 = vector.shape_cast %409 : vector<8x32xf32> to vector<1x8x32xf32>
    tpu.vector_store %arg17[%414, %c0_130, %c0_131], %417 {strides = array<i32>} : memref<4x8x32xf32, #tpu.memory_space<vmem>>, vector<1x8x32xf32>,
    %c4_i32 = arith.constant 4 : i32
    %c0_132 = arith.constant 0 : index
    %c0_133 = arith.constant 0 : index
    %418 = vector.load %arg18[%c0_132, %c0_133] : memref<8x32xf32, #tpu.memory_space<vmem>>, vector<8x32xf32>
    tpu.vector_store %arg18[%c0_132, %c0_133], %353 {strides = array<i32>} : memref<8x32xf32, #tpu.memory_space<vmem>>, vector<8x32xf32>,
    %c0_134 = arith.constant 0 : index
    %c0_135 = arith.constant 0 : index
    %419 = vector.load %arg19[%c0_134, %c0_135] : memref<8x32xf32, #tpu.memory_space<vmem>>, vector<8x32xf32>
    tpu.vector_store %arg19[%c0_134, %c0_135], %351 {strides = array<i32>} : memref<8x32xf32, #tpu.memory_space<vmem>>, vector<8x32xf32>,
    %c0_136 = arith.constant 0 : index
    %c0_137 = arith.constant 0 : index
    %420 = vector.load %arg20[%c0_136, %c0_137] : memref<8x32xf32, #tpu.memory_space<vmem>>, vector<8x32xf32>
    tpu.vector_store %arg20[%c0_136, %c0_137], %409 {strides = array<i32>} : memref<8x32xf32, #tpu.memory_space<vmem>>, vector<8x32xf32>,
    %c0_138 = arith.constant 0 : index
    %c0_139 = arith.constant 0 : index
    %421 = vector.load %arg21[%c0_138, %c0_139] : memref<8x32xf32, #tpu.memory_space<vmem>>, vector<8x32xf32>
    tpu.vector_store %arg21[%c0_138, %c0_139], %407 {strides = array<i32>} : memref<8x32xf32, #tpu.memory_space<vmem>>, vector<8x32xf32>,
    return
  }
  func.func @transform_0(%arg0: i32, %arg1: i32) -> (i32, i32, i32) {
    %c0_i32 = arith.constant 0 : i32
    %c0_i32_0 = arith.constant 0 : i32
    return %arg1, %arg0, %c0_i32 : i32, i32, i32
  }
  func.func @transform_1(%arg0: i32, %arg1: i32) -> (i32, i32, i32) {
    %c0_i32 = arith.constant 0 : i32
    %c0_i32_0 = arith.constant 0 : i32
    %c0_i32_1 = arith.constant 0 : i32
    return %arg0, %c0_i32, %c0_i32_0 : i32, i32, i32
  }
  func.func @transform_2(%arg0: i32, %arg1: i32) -> (i32, i32, i32) {
    %c0_i32 = arith.constant 0 : i32
    %c0_i32_0 = arith.constant 0 : i32
    %c0_i32_1 = arith.constant 0 : i32
    return %arg0, %c0_i32, %c0_i32_0 : i32, i32, i32
  }
  func.func @transform_3(%arg0: i32, %arg1: i32) -> (i32, i32) {
    %c0_i32 = arith.constant 0 : i32
    %c0_i32_0 = arith.constant 0 : i32
    return %arg0, %c0_i32 : i32, i32
  }
  func.func @transform_4(%arg0: i32, %arg1: i32) -> (i32, i32) {
    %c0_i32 = arith.constant 0 : i32
    %c0_i32_0 = arith.constant 0 : i32
    %c0_i32_1 = arith.constant 0 : i32
    return %c0_i32, %c0_i32_0 : i32, i32
  }
  func.func @transform_5(%arg0: i32, %arg1: i32) -> (i32, i32) {
    %c0_i32 = arith.constant 0 : i32
    %c0_i32_0 = arith.constant 0 : i32
    %c0_i32_1 = arith.constant 0 : i32
    return %c0_i32, %c0_i32_0 : i32, i32
  }
  func.func @transform_6(%arg0: i32, %arg1: i32) -> (i32, i32) {
    %c0_i32 = arith.constant 0 : i32
    %c0_i32_0 = arith.constant 0 : i32
    %c0_i32_1 = arith.constant 0 : i32
    return %c0_i32, %c0_i32_0 : i32, i32
  }
  func.func @transform_7(%arg0: i32, %arg1: i32) -> (i32, i32) {
    %c0_i32 = arith.constant 0 : i32
    %c0_i32_0 = arith.constant 0 : i32
    %c0_i32_1 = arith.constant 0 : i32
    return %c0_i32, %c0_i32_0 : i32, i32
  }
  func.func @transform_8(%arg0: i32, %arg1: i32) -> (i32, i32) {
    %c0_i32 = arith.constant 0 : i32
    %c0_i32_0 = arith.constant 0 : i32
    %c0_i32_1 = arith.constant 0 : i32
    return %c0_i32, %c0_i32_0 : i32, i32
  }
  func.func @transform_9(%arg0: i32, %arg1: i32) -> (i32, i32) {
    %c0_i32 = arith.constant 0 : i32
    %c0_i32_0 = arith.constant 0 : i32
    %c0_i32_1 = arith.constant 0 : i32
    return %c0_i32, %c0_i32_0 : i32, i32
  }
  func.func @transform_10(%arg0: i32, %arg1: i32) -> (i32, i32) {
    %c0_i32 = arith.constant 0 : i32
    %c0_i32_0 = arith.constant 0 : i32
    %c0_i32_1 = arith.constant 0 : i32
    return %c0_i32, %c0_i32_0 : i32, i32
  }
  func.func @transform_11(%arg0: i32, %arg1: i32) -> (i32, i32) {
    %c0_i32 = arith.constant 0 : i32
    %c0_i32_0 = arith.constant 0 : i32
    %c0_i32_1 = arith.constant 0 : i32
    return %c0_i32, %c0_i32_0 : i32, i32
  }
  func.func @transform_12(%arg0: i32, %arg1: i32) -> (i32, i32) {
    %c0_i32 = arith.constant 0 : i32
    %c0_i32_0 = arith.constant 0 : i32
    %c0_i32_1 = arith.constant 0 : i32
    return %c0_i32, %c0_i32_0 : i32, i32
  }
  func.func @transform_13(%arg0: i32, %arg1: i32) -> (i32, i32) {
    %c0_i32 = arith.constant 0 : i32
    %c0_i32_0 = arith.constant 0 : i32
    %c0_i32_1 = arith.constant 0 : i32
    return %c0_i32, %c0_i32_0 : i32, i32
  }
  func.func @transform_14(%arg0: i32, %arg1: i32) -> (i32, i32, i32) {
    %c0_i32 = arith.constant 0 : i32
    %c0_i32_0 = arith.constant 0 : i32
    return %arg1, %arg0, %c0_i32 : i32, i32, i32
  }
  func.func @transform_15(%arg0: i32, %arg1: i32) -> (i32, i32, i32) {
    %c0_i32 = arith.constant 0 : i32
    %c0_i32_0 = arith.constant 0 : i32
    return %arg1, %arg0, %c0_i32 : i32, i32, i32
  }
}

</mosaic_0001>

<bundles_post_ra>
// kernel: decoder_topdown_forward.5
= control target key start
LH: loop header
LB: loop body
LE: loop exit
PB: predicated region body
PF: predicated region fallthrough
CT: control target
= control target key end

     0   :  { %vm35_vm0 = vcmask 261120   ;;  %s356_s1 = inlined_call_operand.vmem [shape: f32[32,128], index: 1, kind: input, shape index: {}]   ;;  %s357_s0 = inlined_call_operand.vmem [shape: f32[80,32], index: 0, kind: input, shape index: {}]   ;;  %s358_s2 = inlined_call_operand.vmem [shape: f32[1,128], index: 2, kind: input, shape index: {}]   ;;  %s359_s3 = inlined_call_operand.vmem [shape: f32[80,128], index: 3, kind: output, shape index: {}]  }
   0x1   :  { %v27_v0 = vld [vmem:[%s356_s1 + $0x18] sm:$0xff]  ;;  %v26_v1 = vld [vmem:[%s356_s1 + $0x10] sm:$0xff]  ;;  %v25_v2 = vld [vmem:[%s356_s1 + $0x8] sm:$0xff] }
   0x2   :  { %220 = vmatprep.subr.mxu0 %v27_v0  ;;  %243 = vmatprep.subr.mxu1 %v27_v0  ;;  %v24_v3 = vld [vmem:[%s356_s1] sm:$0xff]  ;;  %v15_v5 = vld [vmem:[%s357_s0 + $0x8] sm:$0xff]  ;;  %v20_v6 = vld [vmem:[%s357_s0 + $0x30] sm:$0xff] }
   0x3   :  { %221 = vmatpush3.msra.mxu0 %v27_v0  ;;  %247 = vmatpush3.msra.mxu1 %v27_v0  ;;  %v14_v4 = vld [vmem:[%s357_s0] sm:$0xff]  ;;  %v16_v7 = vld [vmem:[%s357_s0 + $0x10] sm:$0xff]  ;;  %v21_v8 = vld [vmem:[%s357_s0 + $0x38] sm:$0xff] }
   0x4   :  { %222 = vmatprep.subr.mxu0 %v26_v1  ;;  %244 = vmatprep.subr.mxu1 %v26_v1  ;;  %v22_v9 = vld [vmem:[%s357_s0 + $0x40] sm:$0xff]  ;;  %v17_v10 = vld [vmem:[%s357_s0 + $0x18] sm:$0xff]  ;;  %v23_v12 = vld [vmem:[%s357_s0 + $0x48] sm:$0xff] }
   0x5   :  { %223 = vmatpush3.msra.mxu0 %v26_v1  ;;  %248 = vmatpush3.msra.mxu1 %v26_v1  ;;  %v18_v11 = vld [vmem:[%s357_s0 + $0x20] sm:$0xff]  ;;  %v19_v13 = vld [vmem:[%s357_s0 + $0x28] sm:$0xff] }
   0x6   :  { %224 = vmatprep.subr.mxu0 %v25_v2  ;;  %245 = vmatprep.subr.mxu1 %v25_v2  ;;  %v195_v14 = vld [vmem:[%s358_s2] ss:$0 sm:$0xff] }
   0x7   :  { %225 = vmatpush3.msra.mxu0 %v25_v2  ;;  %249 = vmatpush3.msra.mxu1 %v25_v2 }
   0x8   :  { %226 = vmatprep.subr.mxu0 %v24_v3  ;;  %228 = vmatprep.mubr.msk.f32.mxu0 %vm35_vm0, %v14_v4 }
   0x9   :  { %227 = vmatpush3.msra.mxu0 %v24_v3  ;;  %246 = vmatprep.subr.mxu1 %v24_v3 }
   0xa   :  { %229 = vmatmul.mubr.msk.f32.vlgmr.msra.gmra.mxu0 %vm35_vm0, %v15_v5  ;;  %250 = vmatpush3.msra.mxu1 %v24_v3 }
   0xb   :  { %237 = vmatprep.mubr.msk.f32.mxu1 %vm35_vm0, %v20_v6  ;;  %231 = vmatprep.mubr.msk.f32.mxu0 %vm35_vm0, %v16_v7 }
   0xc   :  { %238 = vmatmul.mubr.msk.f32.vlgmr.msra.gmra.mxu1 %vm35_vm0, %v21_v8 }
   0xd   :  { %240 = vmatprep.mubr.msk.f32.mxu1 %vm35_vm0, %v22_v9 }
   0xe   :  { %232 = vmatmul.mubr.msk.f32.gmra.mxu0 %vm35_vm0, %v17_v10 }
   0xf   :  { %234 = vmatprep.mubr.msk.f32.mxu0 %vm35_vm0, %v18_v11 }
  0x10   :  { %241 = vmatmul.mubr.msk.f32.gmra.mxu1 %vm35_vm0, %v23_v12 }
  0x12   :  { %235 = vmatmul.mubr.msk.f32.gmra.mxu0 %vm35_vm0, %v19_v13 }
  0xca   :  { %v230_v15 = vpop.f32.mrf.mxu0 }
  0xcb   :  { %v138_v16 = vadd.f32 %v230_v15, %v195_v14 }
  0xcc   :  { %v132_v17 = vpop.f32.mrf.mxu0  ;;  %v239_v18 = vpop.f32.mrf.mxu1 }
  0xcd   :  { %182 = vst [vmem:[%s359_s3 + $0x8] sm:$0xff] %v138_v16  ;;  %v133_v19 = vadd.f32 %v195_v14, %v132_v17  ;;  %v168_v20 = vadd.f32 %v239_v18, %v195_v14 }
  0xce   :  { %v233_v21 = vpop.f32.mrf.mxu0  ;;  %v162_v22 = vpop.f32.mrf.mxu1 }
  0xcf   :  { %181 = vst [vmem:[%s359_s3] sm:$0xff] %v133_v19  ;;  %188 = vst [vmem:[%s359_s3 + $0x38] sm:$0xff] %v168_v20  ;;  %v148_v23 = vadd.f32 %v233_v21, %v195_v14  ;;  %v163_v24 = vadd.f32 %v195_v14, %v162_v22 }
  0xd0   :  { %v142_v25 = vpop.f32.mrf.mxu0  ;;  %v242_v26 = vpop.f32.mrf.mxu1 }
  0xd1   :  { %184 = vst [vmem:[%s359_s3 + $0x18] sm:$0xff] %v148_v23  ;;  %187 = vst [vmem:[%s359_s3 + $0x30] sm:$0xff] %v163_v24  ;;  %v143_v27 = vadd.f32 %v195_v14, %v142_v25  ;;  %v178_v28 = vadd.f32 %v242_v26, %v195_v14 }
  0xd2   :  { %v236_v29 = vpop.f32.mrf.mxu0  ;;  %v172_v30 = vpop.f32.mrf.mxu1 }
  0xd3   :  { %183 = vst [vmem:[%s359_s3 + $0x10] sm:$0xff] %v143_v27  ;;  %190 = vst [vmem:[%s359_s3 + $0x48] sm:$0xff] %v178_v28  ;;  %v158_v31 = vadd.f32 %v236_v29, %v195_v14  ;;  %v173_v32 = vadd.f32 %v195_v14, %v172_v30 }
  0xd4   :  { %v152_v33 = vpop.f32.mrf.mxu0 }
  0xd5   :  { %186 = vst [vmem:[%s359_s3 + $0x28] sm:$0xff] %v158_v31  ;;  %189 = vst [vmem:[%s359_s3 + $0x40] sm:$0xff] %v173_v32  ;;  %v153_v34 = vadd.f32 %v195_v14, %v152_v33 }
  0xd7   :  { %185 = vst [vmem:[%s359_s3 + $0x20] sm:$0xff] %v153_v34 }

// kernel: decoder_topdown_forward.3
= control target key start
LH: loop header
LB: loop body
LE: loop exit
PB: predicated region body
PF: predicated region fallthrough
CT: control target
= control target key end

     0   :  { %s8489_s18 = smov 0   ;;  %s8491_s19 = smov 0   ;;  %s10058_s0 = inlined_call_operand.vmem [shape: f32[12,8,32], index: 0, kind: input, shape index: {}]   ;;  %s10059_s1 = inlined_call_operand.vmem [shape: f32[8,8,32], index: 1, kind: input, shape index: {}]   ;;  %s10060_s2 = inlined_call_operand.vmem [shape: f32[8,8,32], index: 2, kind: input, shape index: {}]   ;;  %s10061_s3 = inlined_call_operand.vmem [shape: f32[8,128], index: 3, kind: input, shape index: {}]   ;;  %s10062_s4 = inlined_call_operand.vmem [shape: f32[32,128], index: 4, kind: input, shape index: {}]   ;;  %s10063_s5 = inlined_call_operand.vmem [shape: f32[32,128], index: 5, kind: input, shape index: {}]   ;;  %s10064_s6 = inlined_call_operand.vmem [shape: f32[32,128], index: 6, kind: input, shape index: {}]   ;;  %s10065_s7 = inlined_call_operand.vmem [shape: f32[32,128], index: 7, kind: input, shape index: {}]   ;;  %s10066_s8 = inlined_call_operand.vmem [shape: f32[32,128], index: 8, kind: input, shape index: {}]   ;;  %s10067_s9 = inlined_call_operand.vmem [shape: f32[32,128], index: 9, kind: input, shape index: {}]   ;;  %s10068_s10 = inlined_call_operand.vmem [shape: f32[1,128], index: 10, kind: input, shape index: {}]   ;;  %s10069_s11 = inlined_call_operand.vmem [shape: f32[32,32], index: 11, kind: input, shape index: {}]   ;;  %s10070_s12 = inlined_call_operand.vmem [shape: f32[1,32], index: 12, kind: input, shape index: {}]   ;;  %s10071_s13 = inlined_call_operand.vmem [shape: f32[1,32], index: 13, kind: input, shape index: {}]   ;;  %s10072_s14 = inlined_call_operand.vmem [shape: f32[12,8,32], index: 14, kind: output, shape index: {0}]   ;;  %s10073_s15 = inlined_call_operand.vmem [shape: f32[12,8,32], index: 15, kind: output, shape index: {1}]  }
   0x1   :  { %s8493_s20 = smov 0  }
   0x2 LB: > { %s35_s21 = sadd.s32 1, %s8395_s19  ;;  %p7333_p0 = scmp.ge.s32.totalorder %s8399_s20, 1  ;;  %s8399_s20 = sphi %s8493_s20, %s26_s20   ;;  %s8395_s19 = sphi %s8491_s19, %s10158_s19   ;;  %s8391_s18 = sphi %s8489_s18, %s10157_s18  }
   0x3   : > { %p36_p1 = scmp.ge.s32.totalorder %s35_s21, 3  ;;  %p493_p2 = scmp.lt.s32.totalorder %s8399_s20, 4 }
   0x5   : > { %s10160_s21 = smov (%p36_p1, %s35_s21), 0  ;;  %p494_p3 = pnand %p7333_p0, %p493_p2 }
   0x7   : > { %497 = sbr.rel (%p494_p3) target bundleno = 10361 (0x2879), region = 76 }
   0xc   : > { %s7334_s22 = sshll.u32 %s8391_s18, 2  ;;  %p7340_p5 = scmp.ne.s32.totalorder %s8391_s18, 0 }
   0xd   : > { %p570_p4 = scmp.lt.s32.totalorder %s7334_s22, 11 }
   0xe   : > { %615 = sbr.rel (%p7340_p5) target bundleno = 22 (0x16), region = 80 }
   0xf   : > { %s10162_s22 = smov (!%p570_p4, %s7334_s22), 11 }
  0x10   : > { %s7335_s23 = sshll.u32 %s10162_s22, 3 }
  0x11   : > { %s8510_s26 = scalar_lea.vmem %s10058_s0, %s7335_s23  ;;  %s8515_s29 = scalar_lea.vmem %s10072_s14, %s7335_s23 }
  0x12   : > { %s8520_s17 = scalar_lea.vmem %s10073_s15, %s7335_s23 }
  0x13   : > { %vm616_vm0 = vcmask 261120   ;;  %v8401_v0 = vmov 0.0  }
  0x14   : > { %617 = vst.msk [vmem:[#allocation2] sm:$0xff] %vm616_vm0, %v8401_v0  ;;  %618 = vst.msk [vmem:[#allocation3] sm:$0xff] %vm616_vm0, %v8401_v0 }
  0x15   : > { %619 = vst.msk [vmem:[#allocation4] sm:$0xff] %vm616_vm0, %v8401_v0  ;;  %620 = vst.msk [vmem:[#allocation5] sm:$0xff] %vm616_vm0, %v8401_v0 }
  0x16 PF: > { %v8525_v1 = vld [vmem:[%s10063_s5 + $0x18] sm:$0xff]  ;;  %v10076_v3 = vmov 0.0   ;;  %v8537_v4 = vld [vmem:[%s10063_s5 + $0x10] sm:$0xff]  ;;  %v8551_v6 = vld [vmem:[%s10063_s5 + $0x8] sm:$0xff]  ;;  %vm692_vm1 = vcmask 261120   ;;  %vm8403_vm2 = vmmov 0   ;;  %v1022_v49 = vlaneseq }
  0x17   : > { %v8530_v2 = vld [vmem:[%s10062_s4 + $0x18] sm:$0xff]  ;;  %7627 = vmatprep.subr.mxu0 %v10076_v3  ;;  %7638 = vmatprep.subr.mxu1 %v10076_v3  ;;  %v8542_v5 = vld [vmem:[%s10062_s4 + $0x10] sm:$0xff]  ;;  %v8556_v7 = vld [vmem:[%s10062_s4 + $0x8] sm:$0xff]  ;;  %s10074_s16 = smov 64   ;;  %s8405_s22 = smov 32   ;;  %vm1197_vm3 = vcmask 1041409  }
  0x18   : > { %7628 = vmatpush3.msra.mxu0 %v8525_v1  ;;  %7639 = vmatpush3.msra.mxu1 %v8530_v2  ;;  %v8565_v8 = vld [vmem:[%s10063_s5] sm:$0xff]  ;;  %v8585_v12 = vld [vmem:[%s10064_s6 + $0x18] sm:$0xff]  ;;  %v8595_v13 = vld [vmem:[%s10064_s6 + $0x10] sm:$0xff]  ;;  %v8406_v47 = vmov 1966171168   ;;  %v8677_v51 = vshrl.u32 %v1022_v49, 7 }
  0x19   : > { %7629 = vmatprep.subr.mxu0 %v10076_v3  ;;  %7640 = vmatprep.subr.mxu1 %v10076_v3  ;;  %v691_v9 = vld [vmem:[%s8510_s26] sm:$0xff]  ;;  %v8604_v14 = vld [vmem:[%s10064_s6 + $0x8] sm:$0xff]  ;;  %v8640_v39 = vld [vmem:[%s10069_s11 + $0x18] sm:$0xff]  ;;  %v1020_v48 = vunpack.c.l.s4 %v8406_v47  ;;  %vm1199_vm4 = vcmask 1042434   ;;  %vm1201_vm5 = vcmask 1043459   ;;  %vm1203_vm6 = vcmask 1044484  }
  0x1a   : > { %7630 = vmatpush3.msra.mxu0 %v8537_v4  ;;  %7641 = vmatpush3.msra.mxu1 %v8542_v5  ;;  %v8573_v10 = vld [vmem:[%s10062_s4] sm:$0xff]  ;;  %v8645_v40 = vld [vmem:[%s10069_s11 + $0x10] sm:$0xff]  ;;  %v8652_v41 = vld [vmem:[%s10069_s11 + $0x8] sm:$0xff]  ;;  %v8690_v59 = vsub.s32 0, %v8677_v51  ;;  %vm1205_vm7 = vcmask 1045509   ;;  %vm1207_vm8 = vcmask 1046534  }
  0x1b   : > { %7631 = vmatprep.subr.mxu0 %v10076_v3  ;;  %7642 = vmatprep.subr.mxu1 %v10076_v3  ;;  %v8614_v15 = vld [vmem:[%s10064_s6] sm:$0xff]  ;;  %v688_v28 = vld [vmem:[#allocation3] sm:$0xff]  ;;  %v1021_v50 = vunpack.c.0.s8 %v1020_v48  ;;  %vm1209_vm9 = vcmask 1047559   ;;  %vm1212_vm10 = vcmask 64512  }
  0x1c   : > { %7632 = vmatpush3.msra.mxu0 %v8551_v6  ;;  %7643 = vmatpush3.msra.mxu1 %v8556_v7  ;;  %v8580_v11 = vld [vmem:[#allocation4] sm:$0xff]  ;;  %v687_v16 = vld [vmem:[#allocation2] sm:$0xff] }
  0x1d   : > { %7633 = vmatprep.subr.mxu0 %v10076_v3  ;;  %7635 = vmatprep.mubr.msk.f32.mxu0 %vm8403_vm2, %v10076_v3  ;;  %v8628_v22 = vld [vmem:[%s10061_s3] sm:$0xff]  ;;  %v8685_v53 = vsub.s32 %v1021_v50, %v8677_v51  ;;  %v8749_v50 = vld [vmem:[%s10060_s2 + $0x30] sm:$0xff] }
  0x1e   : > { %7634 = vmatpush3.msra.mxu0 %v8565_v8  ;;  %7644 = vmatprep.subr.mxu1 %v10076_v3  ;;  %v8659_v42 = vld [vmem:[%s10069_s11] sm:$0xff] }
  0x1f   : > { %7636 = vmatmul.mubr.msk.f32.vlgmr.msra.gmra.mxu0 %vm692_vm1, %v691_v9  ;;  %7645 = vmatpush3.msra.mxu1 %v8573_v10  ;;  %v8682_v52 = vld [vmem:[%s10070_s12] ss:$0 sm:$0xff] }
  0x20   : > { %7646 = vmatprep.mubr.msk.f32.mxu1 %vm8403_vm2, %v10076_v3  ;;  %7649 = vmatprep.subr.mxu0 %v10076_v3  ;;  %v8697_v63 = vld [vmem:[%s10060_s2] sm:$0xff] }
  0x21   : > { %7647 = vmatmul.mubr.msk.f32.vlgmr.msra.gmra.mxu1 %vm692_vm1, %v8580_v11  ;;  %7650 = vmatpush3.msra.mxu0 %v8585_v12 }
  0x22   : > { %7651 = vmatprep.subr.mxu0 %v10076_v3  ;;  %7657 = vmatprep.mubr.msk.f32.mxu0 %vm8403_vm2, %v10076_v3 }
  0x23   : > { %7652 = vmatpush3.msra.mxu0 %v8595_v13  ;;  %7660 = vmatprep.subr.mxu1 %v10076_v3 }
  0x24   : > { %7653 = vmatprep.subr.mxu0 %v10076_v3  ;;  %7668 = vmatprep.mubr.msk.f32.mxu1 %vm8403_vm2, %v10076_v3 }
  0x25   : > { %7654 = vmatpush3.msra.mxu0 %v8604_v14  ;;  %7661 = vmatpush3.msra.mxu1 %v8640_v39 }
  0x26   : > { %7655 = vmatprep.subr.mxu0 %v10076_v3  ;;  %7662 = vmatprep.subr.mxu1 %v10076_v3 }
  0x27   : > { %7656 = vmatpush3.msra.mxu0 %v8614_v15  ;;  %7663 = vmatpush3.msra.mxu1 %v8645_v40 }
  0x28   : > { %7658 = vmatmul.mubr.msk.f32.vlgmr.msra.gmra.mxu0 %vm692_vm1, %v687_v16  ;;  %7681 = vmatprep.subr.mxu0 %v10076_v3 }
  0x29   : > { %7683 = vmatprep.mubr.msk.f32.mxu0 %vm8403_vm2, %v10076_v3  ;;  %7664 = vmatprep.subr.mxu1 %v10076_v3 }
  0x2a   : > { %7665 = vmatpush3.msra.mxu1 %v8652_v41 }
  0x2b   : > { %7666 = vmatprep.subr.mxu1 %v10076_v3 }
  0x2c   : > { %7667 = vmatpush3.msra.mxu1 %v8659_v42 }
  0x2d   : > { %7671 = vmatprep.subr.mxu1 %v10076_v3 }
  0xdf   : > { %v762_v17 = vpop.f32.mrf.mxu0 }
  0xe1   : > { %v835_v18 = vpop.f32.mrf.mxu1  ;;  %v7637_v19 = vpop.f32.mrf.mxu0 }
  0xe2   : > { %v836_v21 = vadd.f32 %v835_v18, %v762_v17  ;;  %v8705_v19 = vld [vmem:[%s10060_s2 + $0x8] sm:$0xff] }
  0xe3   : > { %v7648_v20 = vpop.f32.mrf.mxu1 }
  0xe4   : > { %v8710_v20 = vld [vmem:[%s10060_s2 + $0x10] sm:$0xff] }
  0xe8   : > { %v908_v23 = vpop.f32.mrf.mxu0 }
  0xe9   : > { %v912_v24 = vadd.f32 %v908_v23, %v836_v21 }
  0xea   : > { %v7659_v25 = vpop.f32.mrf.mxu0 }
  0xeb   : > { %v913_v26 = vadd.f32 %v912_v24, %v8628_v22  ;;  %v8717_v25 = vld [vmem:[%s10060_s2 + $0x18] sm:$0xff] }
  0xed   : > { %8129 = vtanh.f32 %v913_v26  ;;  %v7347_v29 = vmul.f32 -1.442695, %v913_v26  ;;  %v8722_v26 = vld [vmem:[%s10060_s2 + $0x20] sm:$0xff] }
  0xef   : > { %8131 = vpow2.f32 %v7347_v29 }
  0xfa   : > { %v8130_v27 = vpop.eup %8129 }
  0xfb   : > { %927 = vrot.lane.b32.xlu0 %v8130_v27, %s10074_s16 }
  0xfc   : > { %v8132_v30 = vpop.eup %8131 }
  0xfd   : > { %v917_v31 = vadd.f32 1.0, %v8132_v30 }
  0xff   : > { %922 = vrot.lane.b32.xlu0 %v688_v28, %s8405_s22  ;;  %8133 = vrcp.f32 %v917_v31  ;;  %v8730_v31 = vld [vmem:[%s10060_s2 + $0x28] sm:$0xff] }
 0x10c   : > { %v8134_v32 = vpop.eup %8133 }
 0x16d   : > { %v928_v33 = vpop.permute.xlu0 %927 }
 0x16e   : > { %v930_v34 = vmul.f32 %v8134_v32, %v928_v33 }
 0x170   : > { %932 = vrot.lane.b32.xlu1 %v930_v34, %s8405_s22 }
 0x171   : > { %v923_v35 = vpop.permute.xlu0 %922 }
 0x172   : > { %v925_v36 = vmul.f32 %v8134_v32, %v923_v35 }
 0x1e2   : > { %v933_v37 = vpop.permute.xlu1 %932 }
 0x1e3   : > { %v8634_v38 = vadd.f32 %v933_v37, %v925_v36  ;;  %v8739_v37 = vld [vmem:[%s10060_s2 + $0x38] sm:$0xff] }
 0x1e4   : > { %10105 = vst [vmem:[#allocation6_spill] sm:$0xff] %v8739_v37 }
 0x1e5   : > { %8135 = vtanh.f32 %v8634_v38 }
 0x1f2   : > { %v8136_v43 = vpop.eup %8135 }
 0x1f3   : > { %938 = vrot.lane.b32.xlu1 %v8136_v43, %s10074_s16  ;;  %s10118_s16 = smov 64  }
 0x265   : > { %v939_v44 = vpop.permute.xlu1 %938 }
 0x266   : > { %v941_v45 = vmul.f32 %v8134_v32, %v939_v44 }
 0x268   : > { %943 = vrot.lane.b32.xlu0 %v941_v45, %s8405_s22 }
 0x2da   : > { %v8667_v46 = vpop.permute.xlu0 %943 }
 0x2db   : > { %2314 = vst.msk [vmem:[%s8515_s29] sm:$0xff] %vm692_vm1, %v8667_v46  ;;  %7669 = vmatmul.mubr.msk.f32.vlgmr.msra.gmra.mxu1 %vm692_vm1, %v8667_v46 }
 0x2dc   : > { %7673 = vmatprep.mubr.msk.f32.mxu1 %vm8403_vm2, %v10076_v3 }
 0x39b   : > { %v1013_v54 = vpop.f32.mrf.mxu1 }
 0x39c   : > { %v1014_v55 = vadd.f32 %v8682_v52, %v1013_v54 }
 0x39d   : > { %v7670_v56 = vpop.f32.mrf.mxu1 }
 0x39e   : > { %v1018_v57 = vcombine.high %v1014_v55, %v1014_v55  ;;  %v1025_v58 = vrot.slane %v1014_v55, %v8685_v53  ;;  %v8756_v56 = vld [vmem:[%s10071_s13] ss:$0 sm:$0xff] }
 0x39f   : > { %10106 = vst [vmem:[#allocation7_spill] sm:$0xff] %v8756_v56 }
 0x3a0   : > { %v1032_v60 = vrot.slane %v1018_v57, %v8685_v53  ;;  %v1033_v61 = vcombine.high %v1025_v58, %v1025_v58  ;;  %v1041_v62 = vrot.slane %v1025_v58, %v8685_v53 }
 0x3a2   : > { %v1034_v0 = vcombine.high %v1032_v60, %v1032_v60  ;;  %v1048_v9 = vrot.slane %v1032_v60, %v8685_v53  ;;  %v1055_v16 = vrot.slane %v1033_v61, %v8685_v53  ;;  %v1063_v17 = vcombine.high %v1041_v62, %v1041_v62 }
 0x3a3   : > { %v1070_v18 = vrot.slane %v1041_v62, %v8690_v59 }
 0x3a4   : > { %v1062_v21 = vrot.slane %v1034_v0, %v8685_v53  ;;  %v1065_v23 = vcombine.high %v1055_v16, %v1055_v16  ;;  %v1074_v24 = vrot.slane %v1055_v16, %v8690_v59  ;;  %v1064_v27 = vcombine.high %v1048_v9, %v1048_v9 }
 0x3a5   : > { %v1078_v28 = vrot.slane %v1063_v17, %v8690_v59  ;;  %v1086_v29 = vrot.slane %v1048_v9, %v8690_v59  ;;  %v1107_v30 = vadd.f32 %v1070_v18, %v8697_v63 }
 0x3a6   : > { %v1066_v32 = vcombine.high %v1062_v21, %v1062_v21  ;;  %v1082_v33 = vrot.slane %v1065_v23, %v8690_v59  ;;  %v1090_v34 = vrot.slane %v1062_v21, %v8690_v59  ;;  %v1108_v35 = vadd.f32 %v1074_v24, %v8705_v19 }
 0x3a7   : > { %v1109_v36 = vadd.f32 %v1078_v28, %v8710_v20  ;;  %8137 = vtanh.f32 %v1107_v30  ;;  %v1111_v45 = vadd.f32 %v1086_v29, %v8722_v26  ;;  %v1094_v47 = vrot.slane %v1064_v27, %v8690_v59 }
 0x3a8   : > { %v1098_v43 = vrot.slane %v1066_v32, %v8690_v59  ;;  %v1110_v44 = vadd.f32 %v1082_v33, %v8717_v25  ;;  %v1112_v48 = vadd.f32 %v1090_v34, %v8730_v31  ;;  %8139 = vtanh.f32 %v1108_v35 }
 0x3a9   : > { %8141 = vtanh.f32 %v1109_v36  ;;  %v1113_v55 = vadd.f32 %v1094_v47, %v8749_v50 }
 0x3aa   : > { %v1114_v54 = vadd.f32 %v1098_v43, %v8739_v37  ;;  %8143 = vtanh.f32 %v1110_v44 }
 0x3ab   : > { %8145 = vtanh.f32 %v1111_v45  ;;  %v1164_v45 = vand.u32 127, %v1022_v49 }
 0x3ac   : > { %8147 = vtanh.f32 %v1112_v48 }
 0x3ad   : > { %8149 = vtanh.f32 %v1114_v54  ;;  %v8776_v48 = vsub.s32 %v1164_v45, %v8677_v51 }
 0x3ae   : > { %8151 = vtanh.f32 %v1113_v55 }
 0x3b4   : > { %v8138_v57 = vpop.eup %8137 }
 0x3b5   : > { %v1123_v58 = vmul.f32 %v8138_v57, %v8756_v56  ;;  %v8140_v60 = vpop.eup %8139 }
 0x3b6   : > { %v8142_v61 = vpop.eup %8141  ;;  %v1124_v0 = vmul.f32 %v8140_v60, %v8756_v56 }
 0x3b7   : > { %v1131_v62 = vsel %vm692_vm1, %v1123_v58, 0.0  ;;  %v8144_v9 = vpop.eup %8143  ;;  %v1125_v21 = vmul.f32 %v8142_v61, %v8756_v56 }
 0x3b8   : > { %1132 = vadd.xlane.f32.xlu1 %v1131_v62  ;;  %v8146_v16 = vpop.eup %8145  ;;  %v1134_v17 = vsel %vm692_vm1, %v1124_v0, 0.0  ;;  %v1126_v18 = vmul.f32 %v8144_v9, %v8756_v56 }
 0x3b9   : > { %v8148_v23 = vpop.eup %8147  ;;  %1135 = vadd.xlane.f32.xlu0 %v1134_v17  ;;  %v1137_v29 = vsel %vm692_vm1, %v1125_v21, 0.0  ;;  %v1127_v30 = vmul.f32 %v8146_v16, %v8756_v56 }
 0x3ba   : > { %v1140_v24 = vsel %vm692_vm1, %v1126_v18, 0.0  ;;  %v1128_v27 = vmul.f32 %v8148_v23, %v8756_v56  ;;  %v8150_v28 = vpop.eup %8149 }
 0x3bb   : > { %v8152_v32 = vpop.eup %8151  ;;  %v1130_v34 = vmul.f32 %v8150_v28, %v8756_v56  ;;  %v1143_v35 = vsel %vm692_vm1, %v1127_v30, 0.0 }
 0x3bc   : > { %1141 = vadd.xlane.f32.xlu1 %v1140_v24  ;;  %v1146_v33 = vsel %vm692_vm1, %v1128_v27, 0.0  ;;  %v1129_v36 = vmul.f32 %v8152_v32, %v8756_v56 }
 0x3bd   : > { %1138 = vadd.xlane.f32.xlu0 %v1137_v29  ;;  %v1152_v43 = vsel %vm692_vm1, %v1130_v34, 0.0 }
 0x3be   : > { %v1149_v44 = vsel %vm692_vm1, %v1129_v36, 0.0  ;;  %v8795_v36 = vsub.s32 1, %v8677_v51 }
 0x3c0   : > { %1147 = vadd.xlane.f32.xlu1 %v1146_v33 }
 0x3c1   : > { %1144 = vadd.xlane.f32.xlu0 %v1143_v35  ;;  %v8407_v35 = vmov 0  }
 0x3c2   : > { %8128 = vset.pattern.permute.xlu0 %v8407_v35  ;;  %8127 = vset.pattern.permute.xlu1 %v8407_v35 }
 0x3c4   : > { %1153 = vadd.xlane.f32.xlu1 %v1152_v43  ;;  %v8798_v43 = vsub.s32 2, %v8677_v51 }
 0x3c5   : > { %1150 = vadd.xlane.f32.xlu0 %v1149_v44  ;;  %v8801_v44 = vsub.s32 3, %v8677_v51 }
 0x441   : > { %v1133_v47 = vpop.xlane.xlu1 %1132 }
 0x442   : > { %v1136_v54 = vpop.xlane.xlu0 %1135  ;;  %v1168_v58 = vrot.slane %v1133_v47, %v8776_v48 }
 0x443   : > { %v1172_v55 = vrot.slane %v1136_v54, %v8776_v48 }
 0x445   : > { %v1142_v57 = vpop.xlane.xlu1 %1141  ;;  %v1198_v62 = vsel %vm1197_vm3, %v1172_v55, %v1168_v58 }
 0x446   : > { %v1139_v60 = vpop.xlane.xlu0 %1138  ;;  %v1180_v9 = vrot.slane %v1142_v57, %v8776_v48 }
 0x447   : > { %v1176_v61 = vrot.slane %v1139_v60, %v8776_v48 }
 0x449   : > { %v1148_v0 = vpop.xlane.xlu1 %1147  ;;  %v1200_v49 = vsel %vm1199_vm4, %v1176_v61, %v1198_v62  ;;  %v8807_v62 = vsub.s32 4, %v8677_v51 }
 0x44a   : > { %v1145_v16 = vpop.xlane.xlu0 %1144  ;;  %v1202_v18 = vsel %vm1201_vm5, %v1180_v9, %v1200_v49  ;;  %v1188_v24 = vrot.slane %v1148_v0, %v8776_v48 }
 0x44b   : > { %v1184_v17 = vrot.slane %v1145_v16, %v8776_v48 }
 0x44d   : > { %v1204_v21 = vsel %vm1203_vm6, %v1184_v17, %v1202_v18  ;;  %v1154_v23 = vpop.xlane.xlu1 %1153 }
 0x44e   : > { %v1151_v27 = vpop.xlane.xlu0 %1150  ;;  %v1196_v29 = vrot.slane %v1154_v23, %v8776_v48  ;;  %v1206_v30 = vsel %vm1205_vm7, %v1188_v24, %v1204_v21 }
 0x44f   : > { %v1192_v28 = vrot.slane %v1151_v27, %v8776_v48 }
 0x451   : > { %v1208_v32 = vsel %vm1207_vm8, %v1192_v28, %v1206_v30  ;;  %v8811_v28 = vsub.s32 5, %v8677_v51 }
 0x452   : > { %v1210_v33 = vsel %vm1209_vm9, %v1196_v29, %v1208_v32 }
 0x453   : > { %v1213_v34 = vsel %vm1212_vm10, %v1210_v33, -inf  ;;  %v8815_v33 = vsub.s32 6, %v8677_v51 }
 0x454   : > { %1214 = vmax.xlane.f32.xlu0 %v1213_v34 }
 0x4dd   : > { %v1215_v45 = vpop.xlane.xlu0 %1214 }
 0x4de   : > { %v1220_v55 = vrot.slane %v1215_v45, %v8690_v59  ;;  %v1224_v58 = vrot.slane %v1215_v45, %v8795_v36  ;;  %v1228_v61 = vrot.slane %v1215_v45, %v8798_v43  ;;  %v1232_v49 = vrot.slane %v1215_v45, %v8801_v44 }
 0x4df   : > { %v1236_v29 = vrot.slane %v1215_v45, %v8807_v62  ;;  %v1240_v34 = vrot.slane %v1215_v45, %v8811_v28 }
 0x4e0   : > { %v1257_v9 = vsub.f32 %v1133_v47, %v1220_v55  ;;  %v1258_v17 = vsub.f32 %v1136_v54, %v1224_v58  ;;  %v1259_v18 = vsub.f32 %v1139_v60, %v1228_v61  ;;  %v1260_v30 = vsub.f32 %v1142_v57, %v1232_v49 }
 0x4e1   : > { %v1261_v35 = vsub.f32 %v1145_v16, %v1236_v29  ;;  %v8819_v54 = vsub.s32 7, %v8677_v51  ;;  %v1244_v60 = vrot.slane %v1215_v45, %v8815_v33  ;;  %v1262_v55 = vsub.f32 %v1148_v0, %v1240_v34 }
 0x4e2   : > { %v1265_v21 = vmul.f32 1.442695, %v1257_v9  ;;  %v1267_v24 = vmul.f32 1.442695, %v1258_v17  ;;  %v1269_v32 = vmul.f32 1.442695, %v1259_v18 }
 0x4e3   : > { %v1271_v47 = vmul.f32 1.442695, %v1260_v30  ;;  %v1273_v58 = vmul.f32 1.442695, %v1261_v35  ;;  %v1248_v57 = vrot.slane %v1215_v45, %v8819_v54  ;;  %v1263_v61 = vsub.f32 %v1151_v27, %v1244_v60 }
 0x4e4   : > { %8153 = vpow2.f32 %v1265_v21  ;;  %v1275_v49 = vmul.f32 1.442695, %v1262_v55 }
 0x4e5   : > { %8155 = vpow2.f32 %v1267_v24  ;;  %v1264_v16 = vsub.f32 %v1154_v23, %v1248_v57  ;;  %v1277_v18 = vmul.f32 1.442695, %v1263_v61 }
 0x4e6   : > { %8157 = vpow2.f32 %v1269_v32 }
 0x4e7   : > { %8159 = vpow2.f32 %v1271_v47  ;;  %v1279_v51 = vmul.f32 1.442695, %v1264_v16 }
 0x4e8   : > { %8161 = vpow2.f32 %v1273_v58 }
 0x4e9   : > { %8163 = vpow2.f32 %v1275_v49 }
 0x4ea   : > { %8165 = vpow2.f32 %v1277_v18 }
 0x4eb   : > { %8167 = vpow2.f32 %v1279_v51 }
 0x4f1   : > { %v8154_v9 = vpop.eup %8153 }
 0x4f2   : > { %v8156_v17 = vpop.eup %8155  ;;  %1290 = vperm.xlu1 %8127, %v8154_v9  }
 0x4f3   : > { %1293 = vperm.xlu0 %8128, %v8156_v17   ;;  %v8158_v21 = vpop.eup %8157 }
 0x4f4   : > { %v8160_v24 = vpop.eup %8159 }
 0x4f5   : > { %v8162_v0 = vpop.eup %8161 }
 0x4f6   : > { %1296 = vperm.xlu1 %8127, %v8158_v21   ;;  %v8164_v45 = vpop.eup %8163 }
 0x4f7   : > { %v8166_v27 = vpop.eup %8165 }
 0x4f8   : > { %v8168_v29 = vpop.eup %8167 }
 0x4fa   : > { %1299 = vperm.xlu1 %8127, %v8160_v24  }
 0x4fe   : > { %1302 = vperm.xlu1 %8127, %v8162_v0  }
 0x502   : > { %1305 = vperm.xlu1 %8127, %v8164_v45  }
 0x506   : > { %1308 = vperm.xlu1 %8127, %v8166_v27  }
 0x50a   : > { %1311 = vperm.xlu1 %8127, %v8168_v29  }
 0x56d   : > { %v1291_v30 = vpop.permute.xlu1 %1290 }
 0x56e   : > { %v1294_v35 = vpop.permute.xlu0 %1293  ;;  %v1316_v55 = vrot.slane %v1291_v30, %v8776_v48 }
 0x56f   : > { %v1320_v60 = vrot.slane %v1294_v35, %v8776_v48 }
 0x571   : > { %v1297_v32 = vpop.permute.xlu1 %1296  ;;  %v1345_v16 = vsel %vm1197_vm3, %v1320_v60, %v1316_v55 }
 0x572   : > { %v1324_v58 = vrot.slane %v1297_v32, %v8776_v48 }
 0x574   : > { %v1346_v51 = vsel %vm1199_vm4, %v1324_v58, %v1345_v16 }
 0x575   : > { %v1300_v23 = vpop.permute.xlu1 %1299 }
 0x576   : > { %v1328_v57 = vrot.slane %v1300_v23, %v8776_v48 }
 0x578   : > { %v1347_v56 = vsel %vm1201_vm5, %v1328_v57, %v1346_v51 }
 0x579   : > { %v1303_v34 = vpop.permute.xlu1 %1302 }
 0x57a   : > { %v1332_v61 = vrot.slane %v1303_v34, %v8776_v48 }
 0x57c   : > { %v1348_v35 = vsel %vm1203_vm6, %v1332_v61, %v1347_v56  ;;  %v8843_v61 = vld [vmem:[%s10059_s1] sm:$0xff] }
 0x57d   : > { %v1306_v47 = vpop.permute.xlu1 %1305  ;;  %7672 = vmatpush3.msra.mxu1 %v8843_v61 }
 0x57e   : > { %v1336_v18 = vrot.slane %v1306_v47, %v8776_v48 }
 0x580   : > { %v1349_v23 = vsel %vm1205_vm7, %v1336_v18, %v1348_v35  ;;  %v8852_v35 = vld [vmem:[%s10059_s1 + $0x10] sm:$0xff] }
 0x581   : > { %v1309_v49 = vpop.permute.xlu1 %1308  ;;  %7682 = vmatpush3.msra.mxu0 %v8852_v35 }
 0x582   : > { %v1340_v3 = vrot.slane %v1309_v49, %v8776_v48 }
 0x584   : > { %v1350_v34 = vsel %vm1207_vm8, %v1340_v3, %v1349_v23 }
 0x585   : > { %v1312_v30 = vpop.permute.xlu1 %1311 }
 0x586   : > { %v1344_v32 = vrot.slane %v1312_v30, %v8776_v48 }
 0x588   : > { %v1351_v37 = vsel %vm1209_vm9, %v1344_v32, %v1350_v34 }
 0x589   : > { %v1353_v60 = vsel %vm1212_vm10, %v1351_v37, 0.0  ;;  %v10107_v37 = vmov 0.0  }
 0x58a   : > { %1354 = vadd.xlane.f32.xlu1 %v1353_v60  ;;  %7676 = vmatprep.subr.mxu1 %v10107_v37 }
 0x58b   : > { %7691 = vmatprep.subr.mxu0 %v10107_v37 }
 0x613   : > { %v1355_v47 = vpop.xlane.xlu1 %1354 }
 0x614   : > { %8169 = vrcp.f32 %v1355_v47 }
 0x621   : > { %v8170_v55 = vpop.eup %8169 }
 0x622   : > { %v1357_v58 = vmul.f32 %v8170_v55, %v1355_v47 }
 0x624   : > { %v1358_v49 = vsub.f32 2.0, %v1357_v58 }
 0x626   : > { %v1359_v57 = vmul.f32 %v8170_v55, %v1358_v49 }
 0x628   : > { %v1364_v56 = vrot.slane %v1359_v57, %v8690_v59  ;;  %v1368_v16 = vrot.slane %v1359_v57, %v8795_v36  ;;  %v1372_v51 = vrot.slane %v1359_v57, %v8798_v43  ;;  %v1376_v32 = vrot.slane %v1359_v57, %v8801_v44 }
 0x629   : > { %v1380_v23 = vrot.slane %v1359_v57, %v8807_v62  ;;  %v1384_v34 = vrot.slane %v1359_v57, %v8811_v28  ;;  %v1388_v47 = vrot.slane %v1359_v57, %v8815_v33 }
 0x62a   : > { %v1401_v3 = vmul.f32 %v8154_v9, %v1364_v56  ;;  %v1402_v18 = vmul.f32 %v8156_v17, %v1368_v16  ;;  %v1403_v30 = vmul.f32 %v8158_v21, %v1372_v51  ;;  %v1404_v9 = vmul.f32 %v8160_v24, %v1376_v32  ;;  %v8897_v51 = vld [vmem:[%s10059_s1 + $0x28] sm:$0xff] }
 0x62b   : > { %v1405_v17 = vmul.f32 %v8162_v0, %v1380_v23  ;;  %v1406_v60 = vmul.f32 %v8164_v45, %v1384_v34  ;;  %v1407_v55 = vmul.f32 %v8166_v27, %v1388_v47  ;;  %v1392_v21 = vrot.slane %v1359_v57, %v8819_v54  ;;  %v8865_v0 = vld [vmem:[%s10059_s1 + $0x8] sm:$0xff]  ;;  %v8920_v34 = vld [vmem:[%s10059_s1 + $0x38] sm:$0xff] }
 0x62c   : > { %1411 = vperm.xlu0 %8128, %v1401_v3   ;;  %v8886_v3 = vld [vmem:[%s10059_s1 + $0x20] sm:$0xff] }
 0x62d   : > { %v1408_v58 = vmul.f32 %v8168_v29, %v1392_v21  ;;  %v8876_v29 = vld [vmem:[%s10059_s1 + $0x18] sm:$0xff]  ;;  %v8937_v21 = vld [vmem:[%s10066_s8 + $0x10] sm:$0xff] }
 0x62e   : > { %10108 = vst [vmem:[#allocation8_spill] sm:$0xff] %v8937_v21 }
 0x630   : > { %1491 = vperm.xlu0 %8128, %v1402_v18  }
 0x634   : > { %1571 = vperm.xlu0 %8128, %v1403_v30  }
 0x638   : > { %1651 = vperm.xlu0 %8128, %v1404_v9   ;;  %v8908_v9 = vld [vmem:[%s10059_s1 + $0x30] sm:$0xff] }
 0x63c   : > { %1731 = vperm.xlu0 %8128, %v1405_v17  }
 0x640   : > { %1811 = vperm.xlu0 %8128, %v1406_v60  }
 0x644   : > { %1891 = vperm.xlu0 %8128, %v1407_v55   ;;  %v8930_v55 = vld [vmem:[%s10066_s8 + $0x18] sm:$0xff] }
 0x648   : > { %1971 = vperm.xlu0 %8128, %v1408_v58  }
 0x6a7   : > { %v1412_v49 = vpop.permute.xlu0 %1411 }
 0x6a8   : > { %v1416_v24 = vrot.slane %v1412_v49, %v8776_v48 }
 0x6aa   : > { %7674 = vmatmul.mubr.msk.f32.vlgmr.msra.gmra.mxu1 %vm1212_vm10, %v1416_v24  ;;  %v8947_v24 = vld [vmem:[%s10066_s8 + $0x8] sm:$0xff] }
 0x6ab   : > { %v1492_v45 = vpop.permute.xlu0 %1491  ;;  %7677 = vmatpush3.msra.mxu1 %v8865_v0  ;;  %7678 = vmatprep.mubr.msk.f32.mxu1 %vm8403_vm2, %v10107_v37  ;;  %10109 = vst [vmem:[#allocation9_spill] sm:$0xff] %v8947_v24 }
 0x6ac   : > { %v1496_v27 = vrot.slane %v1492_v45, %v8776_v48  ;;  %7686 = vmatprep.subr.mxu1 %v10107_v37  ;;  %v8955_v45 = vld [vmem:[%s10066_s8] sm:$0xff] }
 0x6ad   : > { %10110 = vst [vmem:[#allocation10_spill] sm:$0xff] %v8955_v45 }
 0x6ae   : > { %7679 = vmatmul.mubr.msk.f32.vlgmr.msra.gmra.mxu1 %vm1212_vm10, %v1496_v27  ;;  %v8970_v27 = vld [vmem:[%s10065_s7 + $0x18] sm:$0xff] }
 0x6af   : > { %v1572_v57 = vpop.permute.xlu0 %1571  ;;  %7687 = vmatpush3.msra.mxu1 %v8876_v29  ;;  %7688 = vmatprep.mubr.msk.f32.mxu1 %vm8403_vm2, %v10107_v37 }
 0x6b0   : > { %v1576_v56 = vrot.slane %v1572_v57, %v8776_v48  ;;  %7696 = vmatprep.subr.mxu1 %v10107_v37  ;;  %v8975_v57 = vld [vmem:[%s10067_s9 + $0x18] sm:$0xff] }
 0x6b1   : > { %10111 = vst [vmem:[#allocation11_spill] sm:$0xff] %v8975_v57 }
 0x6b2   : > { %7684 = vmatmul.mubr.msk.f32.vlgmr.msra.gmra.mxu0 %vm1212_vm10, %v1576_v56  ;;  %v8980_v56 = vld [vmem:[%s10065_s7 + $0x10] sm:$0xff] }
 0x6b3   : > { %v1652_v16 = vpop.permute.xlu0 %1651  ;;  %7692 = vmatpush3.msra.mxu0 %v8886_v3  ;;  %7693 = vmatprep.mubr.msk.f32.mxu0 %vm8403_vm2, %v10107_v37  ;;  %10112 = vst [vmem:[#allocation12_spill] sm:$0xff] %v8980_v56 }
 0x6b4   : > { %v1656_v18 = vrot.slane %v1652_v16, %v8776_v48  ;;  %7701 = vmatprep.subr.mxu0 %v10107_v37  ;;  %v8987_v16 = vld [vmem:[%s10067_s9 + $0x10] sm:$0xff] }
 0x6b5   : > { %10113 = vst [vmem:[#allocation13_spill] sm:$0xff] %v8987_v16 }
 0x6b6   : > { %7689 = vmatmul.mubr.msk.f32.vlgmr.msra.gmra.mxu1 %vm1212_vm10, %v1656_v18  ;;  %v8997_v18 = vld [vmem:[%s10065_s7 + $0x8] sm:$0xff] }
 0x6b7   : > { %v1732_v30 = vpop.permute.xlu0 %1731  ;;  %7697 = vmatpush3.msra.mxu1 %v8897_v51  ;;  %7698 = vmatprep.mubr.msk.f32.mxu1 %vm8403_vm2, %v10107_v37  ;;  %10114 = vst [vmem:[#allocation14_spill] sm:$0xff] %v8997_v18 }
 0x6b8   : > { %v1736_v32 = vrot.slane %v1732_v30, %v8776_v48  ;;  %7706 = vmatprep.subr.mxu1 %v10107_v37  ;;  %v9003_v30 = vld [vmem:[%s10067_s9 + $0x8] sm:$0xff] }
 0x6b9   : > { %10115 = vst [vmem:[#allocation15_spill] sm:$0xff] %v9003_v30 }
 0x6ba   : > { %7694 = vmatmul.mubr.msk.f32.vlgmr.msra.gmra.mxu0 %vm1212_vm10, %v1736_v32  ;;  %v9008_v32 = vld [vmem:[%s10065_s7] sm:$0xff] }
 0x6bb   : > { %v1812_v23 = vpop.permute.xlu0 %1811  ;;  %7702 = vmatpush3.msra.mxu0 %v8908_v9  ;;  %7703 = vmatprep.mubr.msk.f32.mxu0 %vm8403_vm2, %v10107_v37  ;;  %10116 = vst [vmem:[#allocation16_spill] sm:$0xff] %v9008_v32 }
 0x6bc   : > { %v1816_v17 = vrot.slane %v1812_v23, %v8776_v48  ;;  %7711 = vmatprep.subr.mxu0 %v10107_v37  ;;  %v9015_v23 = vld [vmem:[%s10067_s9] sm:$0xff] }
 0x6bd   : > { %10117 = vst [vmem:[#allocation17_spill] sm:$0xff] %v9015_v23 }
 0x6be   : > { %7699 = vmatmul.mubr.msk.f32.vlgmr.msra.gmra.mxu1 %vm1212_vm10, %v1816_v17 }
 0x6bf   : > { %v1892_v60 = vpop.permute.xlu0 %1891  ;;  %7707 = vmatpush3.msra.mxu1 %v8920_v34  ;;  %7708 = vmatprep.mubr.msk.f32.mxu1 %vm8403_vm2, %v10107_v37 }
 0x6c0   : > { %v1896_v47 = vrot.slane %v1892_v60, %v8776_v48  ;;  %7722 = vmatprep.subr.mxu1 %v10107_v37 }
 0x6c2   : > { %7704 = vmatmul.mubr.msk.f32.vlgmr.msra.gmra.mxu0 %vm1212_vm10, %v1896_v47 }
 0x6c3   : > { %7712 = vmatpush3.msra.mxu0 %v8930_v55  ;;  %v1972_v58 = vpop.permute.xlu0 %1971  ;;  %7719 = vmatprep.mubr.msk.f32.mxu0 %vm8403_vm2, %v10107_v37 }
 0x6c4   : > { %v1976_v49 = vrot.slane %v1972_v58, %v8776_v48  ;;  %7713 = vmatprep.subr.mxu0 %v10107_v37 }
 0x6c5   : > { %7714 = vmatpush3.msra.mxu0 %v8937_v21 }
 0x6c6   : > { %7715 = vmatprep.subr.mxu0 %v10107_v37  ;;  %7709 = vmatmul.mubr.msk.f32.vlgmr.msra.gmra.mxu1 %vm1212_vm10, %v1976_v49 }
 0x6c7   : > { %7716 = vmatpush3.msra.mxu0 %v8947_v24  ;;  %7730 = vmatprep.mubr.msk.f32.mxu1 %vm8403_vm2, %v10107_v37 }
 0x6c8   : > { %7717 = vmatprep.subr.mxu0 %v10107_v37  ;;  %7723 = vmatpush3.msra.mxu1 %v8970_v27 }
 0x6c9   : > { %7718 = vmatpush3.msra.mxu0 %v8955_v45  ;;  %7724 = vmatprep.subr.mxu1 %v10107_v37 }
 0x6ca   : > { %7720 = vmatmul.mubr.msk.f32.vlgmr.msra.gmra.mxu0 %vm692_vm1, %v8667_v46  ;;  %7733 = vmatprep.subr.mxu0 %v10107_v37 }
 0x6cb   : > { %7741 = vmatprep.mubr.msk.f32.mxu0 %vm8403_vm2, %v10107_v37  ;;  %7734 = vmatpush3.msra.mxu0 %v8975_v57 }
 0x6cc   : > { %7735 = vmatprep.subr.mxu0 %v10107_v37  ;;  %7725 = vmatpush3.msra.mxu1 %v8980_v56 }
 0x6cd   : > { %7736 = vmatpush3.msra.mxu0 %v8987_v16  ;;  %7726 = vmatprep.subr.mxu1 %v10107_v37 }
 0x6ce   : > { %7737 = vmatprep.subr.mxu0 %v10107_v37  ;;  %7727 = vmatpush3.msra.mxu1 %v8997_v18 }
 0x6cf   : > { %7738 = vmatpush3.msra.mxu0 %v9003_v30  ;;  %7728 = vmatprep.subr.mxu1 %v10107_v37 }
 0x6d0   : > { %7739 = vmatprep.subr.mxu0 %v10107_v37  ;;  %7729 = vmatpush3.msra.mxu1 %v9008_v32 }
 0x6d1   : > { %7740 = vmatpush3.msra.mxu0 %v9015_v23  ;;  %7744 = vmatprep.subr.mxu1 %v10107_v37 }
 0x6d2   : > { %7742 = vmatmul.mubr.msk.f32.vlgmr.msra.gmra.mxu0 %vm692_vm1, %v8580_v11  ;;  %7755 = vmatprep.subr.mxu0 %v10107_v37  ;;  %v690_v11 = vld [vmem:[#allocation5] sm:$0xff] }
 0x6d3   : > { %7763 = vmatprep.mubr.msk.f32.mxu0 %vm8403_vm2, %v10107_v37  ;;  %7756 = vmatpush3.msra.mxu0 %v8530_v2 }
 0x6d4   : > { %7757 = vmatprep.subr.mxu0 %v10107_v37  ;;  %2293 = vrot.lane.b32.xlu0 %v690_v11, %s8405_s22 }
 0x6d5   : > { %7758 = vmatpush3.msra.mxu0 %v8542_v5 }
 0x6d6   : > { %7759 = vmatprep.subr.mxu0 %v10107_v37 }
 0x6d7   : > { %7760 = vmatpush3.msra.mxu0 %v8556_v7 }
 0x6d8   : > { %7761 = vmatprep.subr.mxu0 %v10107_v37 }
 0x6d9   : > { %7762 = vmatpush3.msra.mxu0 %v8573_v10 }
 0x6da   : > { %7777 = vmatprep.subr.mxu0 %v10107_v37 }
 0x76a   : > { %v1485_v17 = vpop.f32.mrf.mxu1 }
 0x76c   : > { %v7675_v60 = vpop.f32.mrf.mxu1 }
 0x76e   : > { %v1565_v2 = vpop.f32.mrf.mxu1 }
 0x76f   : > { %v2127_v32 = vrot.slane %v1565_v2, 7 }
 0x770   : > { %v7680_v47 = vpop.f32.mrf.mxu1 }
 0x771   : > { %v2128_v56 = vsel %vm1197_vm3, %v2127_v32, %v1485_v17 }
 0x772   : > { %v1645_v58 = vpop.f32.mrf.mxu0 }
 0x773   : > { %v2129_v57 = vrot.slane %v1645_v58, 6 }
 0x774   : > { %v7685_v49 = vpop.f32.mrf.mxu0 }
 0x775   : > { %v2130_v60 = vsel %vm1199_vm4, %v2129_v57, %v2128_v56 }
 0x776   : > { %v1725_v5 = vpop.f32.mrf.mxu1 }
 0x777   : > { %v2131_v10 = vrot.slane %v1725_v5, 5 }
 0x778   : > { %v7690_v23 = vpop.f32.mrf.mxu1 }
 0x779   : > { %v2132_v49 = vsel %vm1201_vm5, %v2131_v10, %v2130_v60 }
 0x77a   : > { %v1805_v30 = vpop.f32.mrf.mxu0 }
 0x77b   : > { %v2133_v18 = vrot.slane %v1805_v30, 4 }
 0x77c   : > { %v7695_v16 = vpop.f32.mrf.mxu0 }
 0x77d   : > { %v2134_v23 = vsel %vm1203_vm6, %v2133_v18, %v2132_v49  ;;  %v2294_v49 = vpop.permute.xlu0 %2293 }
 0x77e   : > { %v1885_v7 = vpop.f32.mrf.mxu1 }
 0x77f   : > { %v2135_v11 = vrot.slane %v1885_v7, 3 }
 0x780   : > { %v7700_v45 = vpop.f32.mrf.mxu1 }
 0x781   : > { %v2136_v2 = vsel %vm1205_vm7, %v2135_v11, %v2134_v23 }
 0x782   : > { %v1965_v24 = vpop.f32.mrf.mxu0 }
 0x783   : > { %v2137_v21 = vrot.slane %v1965_v24, 2 }
 0x784   : > { %v7705_v47 = vpop.f32.mrf.mxu0 }
 0x785   : > { %v2138_v45 = vsel %vm1207_vm8, %v2137_v21, %v2136_v2  ;;  %v7361_v21 = vld [vmem:[%s8510_s26 + $0x8] sm:$0xff] }
 0x786   : > { %v2045_v16 = vpop.f32.mrf.mxu1 }
 0x787   : > { %v2139_v58 = vrot.slane %v2045_v16, 1 }
 0x788   : > { %v7710_v30 = vpop.f32.mrf.mxu1 }
 0x789   : > { %v2140_v5 = vsel %vm1209_vm9, %v2139_v58, %v2138_v45 }
 0x78a   : > { %v2115_v32 = vpop.f32.mrf.mxu0  ;;  %7731 = vmatmul.mubr.msk.f32.vlgmr.msra.gmra.mxu1 %vm692_vm1, %v2140_v5 }
 0x78b   : > { %7745 = vmatpush3.msra.mxu1 %v8525_v1  ;;  %7752 = vmatprep.mubr.msk.f32.mxu1 %vm8403_vm2, %v10107_v37 }
 0x78c   : > { %v7721_v24 = vpop.f32.mrf.mxu0  ;;  %7746 = vmatprep.subr.mxu1 %v10107_v37 }
 0x78d   : > { %7747 = vmatpush3.msra.mxu1 %v8537_v4 }
 0x78e   : > { %7748 = vmatprep.subr.mxu1 %v10107_v37 }
 0x78f   : > { %7749 = vmatpush3.msra.mxu1 %v8551_v6 }
 0x790   : > { %7750 = vmatprep.subr.mxu1 %v10107_v37 }
 0x791   : > { %7751 = vmatpush3.msra.mxu1 %v8565_v8 }
 0x792   : > { %7766 = vmatprep.subr.mxu1 %v10107_v37  ;;  %7753 = vmatmul.mubr.msk.f32.vlgmr.msra.gmra.mxu1 %vm692_vm1, %v7361_v21  ;;  %v2279_v1 = vpop.f32.mrf.mxu0 }
 0x793   : > { %7767 = vmatpush3.msra.mxu1 %v8585_v12  ;;  %7774 = vmatprep.mubr.msk.f32.mxu1 %vm8403_vm2, %v10107_v37  ;;  %v9075_v12 = vld [vmem:[%s10068_s10] ss:$0 sm:$0xff] }
 0x794   : > { %7768 = vmatprep.subr.mxu1 %v10107_v37  ;;  %v7743_v4 = vpop.f32.mrf.mxu0 }
 0x795   : > { %7769 = vmatpush3.msra.mxu1 %v8595_v13 }
 0x796   : > { %7770 = vmatprep.subr.mxu1 %v10107_v37 }
 0x797   : > { %7771 = vmatpush3.msra.mxu1 %v8604_v14 }
 0x798   : > { %7772 = vmatprep.subr.mxu1 %v10107_v37 }
 0x799   : > { %7773 = vmatpush3.msra.mxu1 %v8614_v15 }
 0x79a   : > { %7775 = vmatmul.mubr.msk.f32.vlgmr.msra.gmra.mxu1 %vm692_vm1, %v8667_v46  ;;  %7788 = vmatprep.subr.mxu1 %v10107_v37 }
 0x79b   : > { %7789 = vmatpush3.msra.mxu1 %v8843_v61  ;;  %7790 = vmatprep.mubr.msk.f32.mxu1 %vm8403_vm2, %v10107_v37 }
 0x79c   : > { %7793 = vmatprep.subr.mxu1 %v10107_v37 }
 0x84a   : > { %v2209_v6 = vpop.f32.mrf.mxu1 }
 0x84b   : > { %v2210_v8 = vadd.f32 %v2209_v6, %v2115_v32 }
 0x84c   : > { %v7732_v13 = vpop.f32.mrf.mxu1 }
 0x84d   : > { %v2283_v14 = vadd.f32 %v2279_v1, %v2210_v8 }
 0x84f   : > { %v2284_v15 = vadd.f32 %v9075_v12, %v2283_v14 }
 0x851   : > { %8171 = vtanh.f32 %v2284_v15  ;;  %v7360_v17 = vmul.f32 -1.442695, %v2284_v15 }
 0x852   : > { %v2391_v46 = vpop.f32.mrf.mxu1 }
 0x853   : > { %8173 = vpow2.f32 %v7360_v17 }
 0x854   : > { %v7754_v61 = vpop.f32.mrf.mxu1 }
 0x85a   : > { %v2533_v57 = vpop.f32.mrf.mxu1 }
 0x85c   : > { %v7776_v56 = vpop.f32.mrf.mxu1 }
 0x85e   : > { %v8172_v18 = vpop.eup %8171 }
 0x85f   : > { %2298 = vrot.lane.b32.xlu1 %v8172_v18, %s10118_s16 }
 0x860   : > { %v8174_v7 = vpop.eup %8173 }
 0x861   : > { %v2288_v10 = vadd.f32 1.0, %v8174_v7 }
 0x863   : > { %8175 = vrcp.f32 %v2288_v10 }
 0x870   : > { %v8176_v11 = vpop.eup %8175 }
 0x871   : > { %v2296_v23 = vmul.f32 %v8176_v11, %v2294_v49 }
 0x8d1   : > { %v2299_v60 = vpop.permute.xlu1 %2298 }
 0x8d2   : > { %v2301_v47 = vmul.f32 %v8176_v11, %v2299_v60 }
 0x8d4   : > { %2303 = vrot.lane.b32.xlu0 %v2301_v47, %s8405_s22 }
 0x946   : > { %v2304_v16 = vpop.permute.xlu0 %2303 }
 0x947   : > { %v9080_v2 = vadd.f32 %v2304_v16, %v2296_v23 }
 0x949   : > { %8177 = vtanh.f32 %v9080_v2 }
 0x956   : > { %v8178_v58 = vpop.eup %8177 }
 0x957   : > { %2309 = vrot.lane.b32.xlu0 %v8178_v58, %s10118_s16 }
 0x9c9   : > { %v2310_v45 = vpop.permute.xlu0 %2309 }
 0x9ca   : > { %v2312_v30 = vmul.f32 %v8176_v11, %v2310_v45 }
 0x9cc   : > { %2316 = vrot.lane.b32.xlu0 %v2312_v30, %s8405_s22 }
 0xa3e   : > { %v9085_v5 = vpop.permute.xlu0 %2316 }
 0xa3f   : > { %2319 = vst.msk [vmem:[%s8520_s17] sm:$0xff] %vm692_vm1, %v9085_v5  ;;  %7764 = vmatmul.mubr.msk.f32.vlgmr.msra.gmra.mxu0 %vm692_vm1, %v9085_v5 }
 0xa40   : > { %7778 = vmatpush3.msra.mxu0 %v8640_v39  ;;  %7785 = vmatprep.mubr.msk.f32.mxu0 %vm8403_vm2, %v10107_v37 }
 0xa41   : > { %7779 = vmatprep.subr.mxu0 %v10107_v37 }
 0xa42   : > { %7780 = vmatpush3.msra.mxu0 %v8645_v40 }
 0xa43   : > { %7781 = vmatprep.subr.mxu0 %v10107_v37 }
 0xa44   : > { %7782 = vmatpush3.msra.mxu0 %v8652_v41 }
 0xa45   : > { %7783 = vmatprep.subr.mxu0 %v10107_v37 }
 0xa46   : > { %7784 = vmatpush3.msra.mxu0 %v8659_v42 }
 0xa47   : > { %7798 = vmatprep.subr.mxu0 %v10107_v37 }
 0xaff   : > { %v2463_v32 = vpop.f32.mrf.mxu0 }
 0xb00   : > { %v2464_v24 = vadd.f32 %v2463_v32, %v2391_v46 }
 0xb01   : > { %v7765_v39 = vpop.f32.mrf.mxu0 }
 0xb02   : > { %v2537_v21 = vadd.f32 %v2533_v57, %v2464_v24 }
 0xb04   : > { %v2538_v1 = vadd.f32 %v2537_v21, %v8628_v22 }
 0xb06   : > { %8179 = vtanh.f32 %v2538_v1  ;;  %v7365_v40 = vmul.f32 -1.442695, %v2538_v1 }
 0xb08   : > { %8181 = vpow2.f32 %v7365_v40 }
 0xb13   : > { %v8180_v4 = vpop.eup %8179 }
 0xb14   : > { %2548 = vrot.lane.b32.xlu1 %v8180_v4, %s10118_s16 }
 0xb15   : > { %v8182_v6 = vpop.eup %8181 }
 0xb16   : > { %v2542_v41 = vadd.f32 1.0, %v8182_v6 }
 0xb18   : > { %8183 = vrcp.f32 %v2542_v41 }
 0xb25   : > { %v8184_v8 = vpop.eup %8183 }
 0xb26   : > { %v2546_v14 = vmul.f32 %v8184_v8, %v8634_v38 }
 0xb86   : > { %v2549_v42 = vpop.permute.xlu1 %2548 }
 0xb87   : > { %v2551_v13 = vmul.f32 %v8184_v8, %v2549_v42 }
 0xb89   : > { %2553 = vrot.lane.b32.xlu0 %v2551_v13, %s8405_s22 }
 0xbfb   : > { %v2554_v15 = vpop.permute.xlu0 %2553 }
 0xbfc   : > { %v9106_v46 = vadd.f32 %v2554_v15, %v2546_v14 }
 0xbfe   : > { %8185 = vtanh.f32 %v9106_v46 }
 0xc0b   : > { %v8186_v22 = vpop.eup %8185 }
 0xc0c   : > { %2559 = vrot.lane.b32.xlu1 %v8186_v22, %s10118_s16  ;;  %v10120_v22 = vld [vmem:[#allocation7_spill] sm:$0xff] }
 0xc7e   : > { %v2560_v61 = vpop.permute.xlu1 %2559 }
 0xc7f   : > { %v2562_v57 = vmul.f32 %v8184_v8, %v2560_v61 }
 0xc81   : > { %2564 = vrot.lane.b32.xlu0 %v2562_v57, %s8405_s22 }
 0xcf3   : > { %v9111_v56 = vpop.permute.xlu0 %2564 }
 0xcf4   : > { %7379 = vst.msk [vmem:[%s8515_s29 + $0x8] sm:$0xff] %vm692_vm1, %v9111_v56  ;;  %7786 = vmatmul.mubr.msk.f32.vlgmr.msra.gmra.mxu0 %vm692_vm1, %v9111_v56 }
 0xcf5   : > { %7799 = vmatpush3.msra.mxu0 %v8852_v35  ;;  %7800 = vmatprep.mubr.msk.f32.mxu0 %vm8403_vm2, %v10107_v37 }
 0xcf6   : > { %7808 = vmatprep.subr.mxu0 %v10107_v37 }
 0xdb4   : > { %v2634_v38 = vpop.f32.mrf.mxu0 }
 0xdb5   : > { %v2635_v18 = vadd.f32 %v8682_v52, %v2634_v38 }
 0xdb6   : > { %v7787_v17 = vpop.f32.mrf.mxu0 }
 0xdb7   : > { %v2639_v7 = vcombine.high %v2635_v18, %v2635_v18  ;;  %v2646_v10 = vrot.slane %v2635_v18, %v8685_v53 }
 0xdb9   : > { %v2653_v11 = vrot.slane %v2639_v7, %v8685_v53  ;;  %v2654_v60 = vcombine.high %v2646_v10, %v2646_v10  ;;  %v2662_v47 = vrot.slane %v2646_v10, %v8685_v53 }
 0xdbb   : > { %v2655_v49 = vcombine.high %v2653_v11, %v2653_v11  ;;  %v2669_v35 = vrot.slane %v2653_v11, %v8685_v53  ;;  %v2676_v23 = vrot.slane %v2654_v60, %v8685_v53  ;;  %v2684_v16 = vcombine.high %v2662_v47, %v2662_v47 }
 0xdbc   : > { %v2691_v58 = vrot.slane %v2662_v47, %v8690_v59 }
 0xdbd   : > { %v2685_v45 = vcombine.high %v2669_v35, %v2669_v35  ;;  %v2686_v30 = vcombine.high %v2676_v23, %v2676_v23  ;;  %v2695_v52 = vrot.slane %v2676_v23, %v8690_v59  ;;  %v2683_v32 = vrot.slane %v2655_v49, %v8685_v53 }
 0xdbe   : > { %v2699_v24 = vrot.slane %v2684_v16, %v8690_v59  ;;  %v2707_v39 = vrot.slane %v2669_v35, %v8690_v59  ;;  %v2728_v21 = vadd.f32 %v2691_v58, %v8697_v63 }
 0xdbf   : > { %v2703_v1 = vrot.slane %v2686_v30, %v8690_v59  ;;  %v2715_v4 = vrot.slane %v2685_v45, %v8690_v59  ;;  %v2729_v40 = vadd.f32 %v2695_v52, %v8705_v19  ;;  %v2687_v8 = vcombine.high %v2683_v32, %v2683_v32  ;;  %v10119_v19 = vld [vmem:[#allocation6_spill] sm:$0xff] }
 0xdc0   : > { %v2730_v6 = vadd.f32 %v2699_v24, %v8710_v20  ;;  %8187 = vtanh.f32 %v2728_v21  ;;  %v2732_v41 = vadd.f32 %v2707_v39, %v8722_v26  ;;  %v2711_v42 = vrot.slane %v2683_v32, %v8690_v59 }
 0xdc1   : > { %v2731_v13 = vadd.f32 %v2703_v1, %v8717_v25  ;;  %8189 = vtanh.f32 %v2729_v40  ;;  %v2734_v14 = vadd.f32 %v2715_v4, %v8749_v50  ;;  %v2719_v63 = vrot.slane %v2687_v8, %v8690_v59 }
 0xdc2   : > { %8191 = vtanh.f32 %v2730_v6  ;;  %v2733_v15 = vadd.f32 %v2711_v42, %v8730_v31 }
 0xdc3   : > { %8193 = vtanh.f32 %v2732_v41  ;;  %v2735_v20 = vadd.f32 %v2719_v63, %v10119_v19 }
 0xdc4   : > { %8195 = vtanh.f32 %v2731_v13 }
 0xdc5   : > { %8197 = vtanh.f32 %v2734_v14 }
 0xdc6   : > { %8199 = vtanh.f32 %v2733_v15 }
 0xdc7   : > { %8201 = vtanh.f32 %v2735_v20 }
 0xdcd   : > { %v8188_v26 = vpop.eup %8187 }
 0xdce   : > { %v2744_v61 = vmul.f32 %v8188_v26, %v10120_v22  ;;  %v8190_v57 = vpop.eup %8189 }
 0xdcf   : > { %v8192_v25 = vpop.eup %8191  ;;  %v2745_v50 = vmul.f32 %v8190_v57, %v10120_v22 }
 0xdd0   : > { %v2752_v38 = vsel %vm692_vm1, %v2744_v61, 0.0  ;;  %v8194_v18 = vpop.eup %8193  ;;  %v2746_v31 = vmul.f32 %v8192_v25, %v10120_v22 }
 0xdd1   : > { %2753 = vadd.xlane.f32.xlu1 %v2752_v38  ;;  %v2755_v17 = vsel %vm692_vm1, %v2745_v50, 0.0  ;;  %v8196_v7 = vpop.eup %8195  ;;  %v2748_v10 = vmul.f32 %v8194_v18, %v10120_v22 }
 0xdd2   : > { %2756 = vadd.xlane.f32.xlu0 %v2755_v17  ;;  %v8198_v11 = vpop.eup %8197  ;;  %v2758_v49 = vsel %vm692_vm1, %v2746_v31, 0.0  ;;  %v2747_v35 = vmul.f32 %v8196_v7, %v10120_v22 }
 0xdd3   : > { %v2764_v60 = vsel %vm692_vm1, %v2748_v10, 0.0  ;;  %v2750_v47 = vmul.f32 %v8198_v11, %v10120_v22  ;;  %v8200_v23 = vpop.eup %8199 }
 0xdd4   : > { %v2761_v58 = vsel %vm692_vm1, %v2747_v35, 0.0  ;;  %v2749_v45 = vmul.f32 %v8200_v23, %v10120_v22  ;;  %v8202_v30 = vpop.eup %8201 }
 0xdd5   : > { %2765 = vadd.xlane.f32.xlu1 %v2764_v60  ;;  %v2770_v16 = vsel %vm692_vm1, %v2750_v47, 0.0  ;;  %v2751_v32 = vmul.f32 %v8202_v30, %v10120_v22 }
 0xdd6   : > { %2759 = vadd.xlane.f32.xlu0 %v2758_v49  ;;  %v2767_v52 = vsel %vm692_vm1, %v2749_v45, 0.0 }
 0xdd7   : > { %v2773_v24 = vsel %vm692_vm1, %v2751_v32, 0.0 }
 0xdd9   : > { %2771 = vadd.xlane.f32.xlu1 %v2770_v16 }
 0xdda   : > { %2762 = vadd.xlane.f32.xlu0 %v2761_v58 }
 0xdde   : > { %2768 = vadd.xlane.f32.xlu0 %v2767_v52 }
 0xde2   : > { %2774 = vadd.xlane.f32.xlu0 %v2773_v24 }
 0xe5a   : > { %v2754_v21 = vpop.xlane.xlu1 %2753 }
 0xe5b   : > { %v2757_v39 = vpop.xlane.xlu0 %2756  ;;  %v2787_v6 = vrot.slane %v2754_v21, %v8776_v48 }
 0xe5c   : > { %v2791_v4 = vrot.slane %v2757_v39, %v8776_v48 }
 0xe5e   : > { %v2766_v41 = vpop.xlane.xlu1 %2765  ;;  %v2816_v42 = vsel %vm1197_vm3, %v2791_v4, %v2787_v6 }
 0xe5f   : > { %v2760_v1 = vpop.xlane.xlu0 %2759  ;;  %v2803_v15 = vrot.slane %v2766_v41, %v8776_v48 }
 0xe60   : > { %v2795_v40 = vrot.slane %v2760_v1, %v8776_v48 }
 0xe62   : > { %v2817_v14 = vsel %vm1199_vm4, %v2795_v40, %v2816_v42  ;;  %v2772_v20 = vpop.xlane.xlu1 %2771 }
 0xe63   : > { %v2763_v8 = vpop.xlane.xlu0 %2762  ;;  %v2811_v57 = vrot.slane %v2772_v20, %v8776_v48 }
 0xe64   : > { %v2799_v13 = vrot.slane %v2763_v8, %v8776_v48 }
 0xe66   : > { %v2818_v63 = vsel %vm1201_vm5, %v2799_v13, %v2817_v14 }
 0xe67   : > { %v2769_v19 = vpop.xlane.xlu0 %2768  ;;  %v2819_v22 = vsel %vm1203_vm6, %v2803_v15, %v2818_v63 }
 0xe68   : > { %v2807_v26 = vrot.slane %v2769_v19, %v8776_v48 }
 0xe6a   : > { %v2820_v61 = vsel %vm1205_vm7, %v2807_v26, %v2819_v22 }
 0xe6b   : > { %v2775_v25 = vpop.xlane.xlu0 %2774  ;;  %v2821_v50 = vsel %vm1207_vm8, %v2811_v57, %v2820_v61 }
 0xe6c   : > { %v2815_v38 = vrot.slane %v2775_v25, %v8776_v48 }
 0xe6e   : > { %v2822_v18 = vsel %vm1209_vm9, %v2815_v38, %v2821_v50 }
 0xe6f   : > { %v2824_v17 = vsel %vm1212_vm10, %v2822_v18, -inf }
 0xe70   : > { %2825 = vmax.xlane.f32.xlu1 %v2824_v17 }
 0xef9   : > { %v2826_v31 = vpop.xlane.xlu1 %2825 }
 0xefa   : > { %v2831_v7 = vrot.slane %v2826_v31, %v8690_v59  ;;  %v2835_v10 = vrot.slane %v2826_v31, %v8795_v36  ;;  %v2839_v11 = vrot.slane %v2826_v31, %v8798_v43  ;;  %v2847_v60 = vrot.slane %v2826_v31, %v8807_v62 }
 0xefb   : > { %v2855_v47 = vrot.slane %v2826_v31, %v8815_v33  ;;  %v2843_v23 = vrot.slane %v2826_v31, %v8801_v44  ;;  %v2851_v24 = vrot.slane %v2826_v31, %v8811_v28  ;;  %v2859_v42 = vrot.slane %v2826_v31, %v8819_v54 }
 0xefc   : > { %v2868_v49 = vsub.f32 %v2754_v21, %v2831_v7  ;;  %v2869_v35 = vsub.f32 %v2757_v39, %v2835_v10  ;;  %v2870_v16 = vsub.f32 %v2760_v1, %v2839_v11  ;;  %v2872_v58 = vsub.f32 %v2766_v41, %v2847_v60 }
 0xefd   : > { %v2874_v52 = vsub.f32 %v2772_v20, %v2855_v47  ;;  %v2871_v4 = vsub.f32 %v2763_v8, %v2843_v23  ;;  %v2873_v21 = vsub.f32 %v2769_v19, %v2851_v24  ;;  %v2875_v1 = vsub.f32 %v2775_v25, %v2859_v42 }
 0xefe   : > { %v2876_v45 = vmul.f32 1.442695, %v2868_v49  ;;  %v2878_v30 = vmul.f32 1.442695, %v2869_v35  ;;  %v2884_v32 = vmul.f32 1.442695, %v2872_v58 }
 0xeff   : > { %v2880_v40 = vmul.f32 1.442695, %v2870_v16  ;;  %v2888_v6 = vmul.f32 1.442695, %v2874_v52  ;;  %v2882_v39 = vmul.f32 1.442695, %v2871_v4 }
 0xf00   : > { %8203 = vpow2.f32 %v2876_v45  ;;  %v2886_v41 = vmul.f32 1.442695, %v2873_v21  ;;  %v2890_v14 = vmul.f32 1.442695, %v2875_v1 }
 0xf01   : > { %8205 = vpow2.f32 %v2878_v30 }
 0xf02   : > { %8207 = vpow2.f32 %v2884_v32 }
 0xf03   : > { %8209 = vpow2.f32 %v2880_v40 }
 0xf04   : > { %8211 = vpow2.f32 %v2888_v6 }
 0xf05   : > { %8213 = vpow2.f32 %v2882_v39 }
 0xf06   : > { %8215 = vpow2.f32 %v2886_v41 }
 0xf07   : > { %8217 = vpow2.f32 %v2890_v14 }
 0xf0d   : > { %v8204_v13 = vpop.eup %8203 }
 0xf0e   : > { %v8206_v63 = vpop.eup %8205  ;;  %2901 = vperm.xlu0 %8128, %v8204_v13  }
 0xf0f   : > { %2904 = vperm.xlu1 %8127, %v8206_v63   ;;  %v8208_v8 = vpop.eup %8207 }
 0xf10   : > { %v8210_v15 = vpop.eup %8209 }
 0xf11   : > { %v8212_v20 = vpop.eup %8211 }
 0xf12   : > { %2913 = vperm.xlu0 %8128, %v8208_v8   ;;  %v8214_v26 = vpop.eup %8213 }
 0xf13   : > { %2907 = vperm.xlu1 %8127, %v8210_v15   ;;  %v8216_v19 = vpop.eup %8215 }
 0xf14   : > { %v8218_v22 = vpop.eup %8217 }
 0xf16   : > { %2919 = vperm.xlu0 %8128, %v8212_v20  }
 0xf17   : > { %2910 = vperm.xlu1 %8127, %v8214_v26  }
 0xf1b   : > { %2916 = vperm.xlu1 %8127, %v8216_v19  }
 0xf1f   : > { %2922 = vperm.xlu1 %8127, %v8218_v22  }
 0xf89   : > { %v2902_v57 = vpop.permute.xlu0 %2901 }
 0xf8a   : > { %v2905_v61 = vpop.permute.xlu1 %2904  ;;  %v2927_v50 = vrot.slane %v2902_v57, %v8776_v48 }
 0xf8b   : > { %v2931_v38 = vrot.slane %v2905_v61, %v8776_v48 }
 0xf8d   : > { %v2914_v17 = vpop.permute.xlu0 %2913  ;;  %v2956_v7 = vsel %vm1197_vm3, %v2931_v38, %v2927_v50 }
 0xf8e   : > { %v2908_v25 = vpop.permute.xlu1 %2907  ;;  %v2943_v47 = vrot.slane %v2914_v17, %v8776_v48 }
 0xf8f   : > { %v2935_v18 = vrot.slane %v2908_v25, %v8776_v48 }
 0xf91   : > { %v2957_v11 = vsel %vm1199_vm4, %v2935_v18, %v2956_v7  ;;  %v2920_v35 = vpop.permute.xlu0 %2919 }
 0xf92   : > { %v2911_v31 = vpop.permute.xlu1 %2910  ;;  %v2951_v45 = vrot.slane %v2920_v35, %v8776_v48 }
 0xf93   : > { %v2939_v10 = vrot.slane %v2911_v31, %v8776_v48 }
 0xf95   : > { %v2958_v60 = vsel %vm1201_vm5, %v2939_v10, %v2957_v11 }
 0xf96   : > { %v2917_v49 = vpop.permute.xlu1 %2916  ;;  %v2959_v16 = vsel %vm1203_vm6, %v2943_v47, %v2958_v60 }
 0xf97   : > { %v2947_v23 = vrot.slane %v2917_v49, %v8776_v48 }
 0xf99   : > { %v2960_v58 = vsel %vm1205_vm7, %v2947_v23, %v2959_v16  ;;  %v10122_v16 = vld [vmem:[#allocation12_spill] sm:$0xff] }
 0xf9a   : > { %v2923_v30 = vpop.permute.xlu1 %2922  ;;  %v2961_v32 = vsel %vm1207_vm8, %v2951_v45, %v2960_v58  ;;  %v10123_v58 = vld [vmem:[#allocation9_spill] sm:$0xff]  ;;  %v10125_v45 = vld [vmem:[#allocation10_spill] sm:$0xff] }
 0xf9b   : > { %v2955_v52 = vrot.slane %v2923_v30, %v8776_v48  ;;  %v10127_v30 = vld [vmem:[#allocation16_spill] sm:$0xff] }
 0xf9d   : > { %v2962_v24 = vsel %vm1209_vm9, %v2955_v52, %v2961_v32  ;;  %v10128_v52 = vld [vmem:[#allocation13_spill] sm:$0xff]  ;;  %v10129_v32 = vld [vmem:[#allocation15_spill] sm:$0xff] }
 0xf9e   : > { %v2964_v4 = vsel %vm1212_vm10, %v2962_v24, 0.0  ;;  %v10130_v24 = vld [vmem:[#allocation17_spill] sm:$0xff] }
 0xf9f   : > { %2965 = vadd.xlane.f32.xlu0 %v2964_v4  ;;  %v9286_v4 = vld [vmem:[%s10062_s4 + $0x18] sm:$0xff] }
0x1028   : > { %v2966_v40 = vpop.xlane.xlu0 %2965 }
0x1029   : > { %8219 = vrcp.f32 %v2966_v40 }
0x1036   : > { %v8220_v6 = vpop.eup %8219 }
0x1037   : > { %v2968_v42 = vmul.f32 %v8220_v6, %v2966_v40  ;;  %v9295_v40 = vld [vmem:[%s10062_s4 + $0x10] sm:$0xff] }
0x1039   : > { %v2969_v21 = vsub.f32 2.0, %v2968_v42 }
0x103b   : > { %v2970_v39 = vmul.f32 %v8220_v6, %v2969_v21  ;;  %v9309_v6 = vld [vmem:[%s10062_s4] sm:$0xff] }
0x103d   : > { %v3003_v1 = vrot.slane %v2970_v39, %v8819_v54  ;;  %v2975_v41 = vrot.slane %v2970_v39, %v8690_v59  ;;  %v2979_v57 = vrot.slane %v2970_v39, %v8795_v36  ;;  %v2983_v38 = vrot.slane %v2970_v39, %v8798_v43 }
0x103e   : > { %v2987_v18 = vrot.slane %v2970_v39, %v8801_v44  ;;  %v2991_v31 = vrot.slane %v2970_v39, %v8807_v62  ;;  %v2999_v10 = vrot.slane %v2970_v39, %v8815_v33 }
0x103f   : > { %v3019_v14 = vmul.f32 %v8218_v22, %v3003_v1  ;;  %v3012_v61 = vmul.f32 %v8204_v13, %v2975_v41  ;;  %v3013_v25 = vmul.f32 %v8206_v63, %v2979_v57  ;;  %v3014_v50 = vmul.f32 %v8210_v15, %v2983_v38 }
0x1040   : > { %v3015_v17 = vmul.f32 %v8214_v26, %v2987_v18  ;;  %v3016_v7 = vmul.f32 %v8208_v8, %v2991_v31  ;;  %v2995_v22 = vrot.slane %v2970_v39, %v8811_v28  ;;  %v3018_v63 = vmul.f32 %v8212_v20, %v2999_v10 }
0x1041   : > { %3582 = vperm.xlu0 %8128, %v3019_v14   ;;  %3022 = vperm.xlu1 %8127, %v3012_v61  }
0x1042   : > { %v3017_v13 = vmul.f32 %v8216_v19, %v2995_v22 }
0x1045   : > { %3102 = vperm.xlu1 %8127, %v3013_v25  }
0x1049   : > { %3182 = vperm.xlu1 %8127, %v3014_v50  }
0x104d   : > { %3262 = vperm.xlu1 %8127, %v3015_v17  }
0x1051   : > { %3342 = vperm.xlu1 %8127, %v3016_v7  }
0x1055   : > { %3422 = vperm.xlu1 %8127, %v3017_v13  }
0x1059   : > { %3502 = vperm.xlu1 %8127, %v3018_v63  }
0x10bc   : > { %v3023_v11 = vpop.permute.xlu1 %3022 }
0x10bd   : > { %v3027_v15 = vrot.slane %v3023_v11, %v8776_v48 }
0x10bf   : > { %7791 = vmatmul.mubr.msk.f32.vlgmr.msra.gmra.mxu1 %vm1212_vm10, %v3027_v15 }
0x10c0   : > { %v3103_v60 = vpop.permute.xlu1 %3102  ;;  %7794 = vmatpush3.msra.mxu1 %v8865_v0  ;;  %7795 = vmatprep.mubr.msk.f32.mxu1 %vm8403_vm2, %v10107_v37 }
0x10c1   : > { %v3107_v8 = vrot.slane %v3103_v60, %v8776_v48  ;;  %7803 = vmatprep.subr.mxu1 %v10107_v37 }
0x10c3   : > { %7796 = vmatmul.mubr.msk.f32.vlgmr.msra.gmra.mxu1 %vm1212_vm10, %v3107_v8 }
0x10c4   : > { %v3183_v26 = vpop.permute.xlu1 %3182  ;;  %7804 = vmatpush3.msra.mxu1 %v8876_v29  ;;  %7805 = vmatprep.mubr.msk.f32.mxu1 %vm8403_vm2, %v10107_v37 }
0x10c5   : > { %v3187_v20 = vrot.slane %v3183_v26, %v8776_v48  ;;  %7813 = vmatprep.subr.mxu1 %v10107_v37 }
0x10c7   : > { %7801 = vmatmul.mubr.msk.f32.vlgmr.msra.gmra.mxu0 %vm1212_vm10, %v3187_v20 }
0x10c8   : > { %v3263_v0 = vpop.permute.xlu1 %3262  ;;  %7809 = vmatpush3.msra.mxu0 %v8886_v3  ;;  %7810 = vmatprep.mubr.msk.f32.mxu0 %vm8403_vm2, %v10107_v37 }
0x10c9   : > { %v3267_v19 = vrot.slane %v3263_v0, %v8776_v48  ;;  %7818 = vmatprep.subr.mxu0 %v10107_v37 }
0x10cb   : > { %7806 = vmatmul.mubr.msk.f32.vlgmr.msra.gmra.mxu1 %vm1212_vm10, %v3267_v19 }
0x10cc   : > { %v3343_v29 = vpop.permute.xlu1 %3342  ;;  %7814 = vmatpush3.msra.mxu1 %v8897_v51  ;;  %7815 = vmatprep.mubr.msk.f32.mxu1 %vm8403_vm2, %v10107_v37  ;;  %v3583_v51 = vpop.permute.xlu0 %3582 }
0x10cd   : > { %v3347_v47 = vrot.slane %v3343_v29, %v8776_v48  ;;  %7823 = vmatprep.subr.mxu1 %v10107_v37  ;;  %v3587_v23 = vrot.slane %v3583_v51, %v8776_v48 }
0x10cf   : > { %7811 = vmatmul.mubr.msk.f32.vlgmr.msra.gmra.mxu0 %vm1212_vm10, %v3347_v47 }
0x10d0   : > { %v3423_v3 = vpop.permute.xlu1 %3422  ;;  %7819 = vmatpush3.msra.mxu0 %v8908_v9  ;;  %7820 = vmatprep.mubr.msk.f32.mxu0 %vm8403_vm2, %v10107_v37 }
0x10d1   : > { %v3427_v49 = vrot.slane %v3423_v3, %v8776_v48  ;;  %7828 = vmatprep.subr.mxu0 %v10107_v37 }
0x10d3   : > { %7816 = vmatmul.mubr.msk.f32.vlgmr.msra.gmra.mxu1 %vm1212_vm10, %v3427_v49  ;;  %v9324_v49 = vld [vmem:[%s10063_s5 + $0x18] sm:$0xff] }
0x10d4   : > { %7824 = vmatpush3.msra.mxu1 %v8920_v34  ;;  %v3503_v35 = vpop.permute.xlu1 %3502  ;;  %7825 = vmatprep.mubr.msk.f32.mxu1 %vm8403_vm2, %v10107_v37  ;;  %v10121_v34 = vld [vmem:[#allocation8_spill] sm:$0xff] }
0x10d5   : > { %v3507_v9 = vrot.slane %v3503_v35, %v8776_v48  ;;  %7839 = vmatprep.subr.mxu1 %v10107_v37  ;;  %v9333_v35 = vld [vmem:[%s10063_s5 + $0x10] sm:$0xff] }
0x10d7   : > { %7821 = vmatmul.mubr.msk.f32.vlgmr.msra.gmra.mxu0 %vm1212_vm10, %v3507_v9  ;;  %7826 = vmatmul.mubr.msk.f32.vlgmr.msra.gmra.mxu1 %vm1212_vm10, %v3587_v23  ;;  %v9340_v9 = vld [vmem:[%s10063_s5 + $0x8] sm:$0xff] }
0x10d8   : > { %7829 = vmatpush3.msra.mxu0 %v8930_v55  ;;  %7836 = vmatprep.mubr.msk.f32.mxu0 %vm8403_vm2, %v10107_v37  ;;  %v10124_v55 = vld [vmem:[#allocation14_spill] sm:$0xff] }
0x10d9   : > { %7830 = vmatprep.subr.mxu0 %v10107_v37  ;;  %7840 = vmatpush3.msra.mxu1 %v8970_v27  ;;  %v10126_v27 = vld [vmem:[#allocation11_spill] sm:$0xff] }
0x10da   : > { %7831 = vmatpush3.msra.mxu0 %v10121_v34  ;;  %7841 = vmatprep.subr.mxu1 %v10107_v37  ;;  %v7381_v34 = vld [vmem:[%s8510_s26 + $0x10] sm:$0xff] }
0x10db   : > { %7832 = vmatprep.subr.mxu0 %v10107_v37  ;;  %7842 = vmatpush3.msra.mxu1 %v10122_v16  ;;  %v9348_v16 = vld [vmem:[%s10063_s5] sm:$0xff] }
0x10dc   : > { %7833 = vmatpush3.msra.mxu0 %v10123_v58  ;;  %7843 = vmatprep.subr.mxu1 %v10107_v37  ;;  %v9356_v58 = vld [vmem:[%s10064_s6 + $0x18] sm:$0xff] }
0x10dd   : > { %7834 = vmatprep.subr.mxu0 %v10107_v37  ;;  %7844 = vmatpush3.msra.mxu1 %v10124_v55 }
0x10de   : > { %7835 = vmatpush3.msra.mxu0 %v10125_v45  ;;  %7845 = vmatprep.subr.mxu1 %v10107_v37  ;;  %v9365_v45 = vld [vmem:[%s10064_s6 + $0x10] sm:$0xff] }
0x10df   : > { %7837 = vmatmul.mubr.msk.f32.vlgmr.msra.gmra.mxu0 %vm692_vm1, %v9111_v56  ;;  %7850 = vmatprep.subr.mxu0 %v10107_v37 }
0x10e0   : > { %7851 = vmatpush3.msra.mxu0 %v10126_v27  ;;  %7858 = vmatprep.mubr.msk.f32.mxu0 %vm8403_vm2, %v10107_v37 }
0x10e1   : > { %7852 = vmatprep.subr.mxu0 %v10107_v37  ;;  %7846 = vmatpush3.msra.mxu1 %v10127_v30  ;;  %v9372_v30 = vld [vmem:[%s10064_s6 + $0x8] sm:$0xff] }
0x10e2   : > { %7853 = vmatpush3.msra.mxu0 %v10128_v52  ;;  %7847 = vmatprep.mubr.msk.f32.mxu1 %vm8403_vm2, %v10107_v37  ;;  %v9379_v52 = vld [vmem:[%s10064_s6] sm:$0xff] }
0x10e3   : > { %7854 = vmatprep.subr.mxu0 %v10107_v37  ;;  %7861 = vmatprep.subr.mxu1 %v10107_v37 }
0x10e4   : > { %7855 = vmatpush3.msra.mxu0 %v10129_v32  ;;  %v9388_v32 = vld [vmem:[%s10059_s1] sm:$0xff] }
0x10e5   : > { %7856 = vmatprep.subr.mxu0 %v10107_v37 }
0x10e6   : > { %7857 = vmatpush3.msra.mxu0 %v10130_v24 }
0x10e7   : > { %7859 = vmatmul.mubr.msk.f32.vlgmr.msra.gmra.mxu0 %vm692_vm1, %v9085_v5  ;;  %7872 = vmatprep.subr.mxu0 %v10107_v37  ;;  %v9302_v5 = vld [vmem:[%s10062_s4 + $0x8] sm:$0xff] }
0x10e8   : > { %7873 = vmatpush3.msra.mxu0 %v9286_v4  ;;  %7880 = vmatprep.mubr.msk.f32.mxu0 %vm8403_vm2, %v10107_v37 }
0x10e9   : > { %7874 = vmatprep.subr.mxu0 %v10107_v37 }
0x10ea   : > { %7875 = vmatpush3.msra.mxu0 %v9295_v40 }
0x10eb   : > { %7876 = vmatprep.subr.mxu0 %v10107_v37 }
0x10ec   : > { %7877 = vmatpush3.msra.mxu0 %v9302_v5 }
0x10ed   : > { %7878 = vmatprep.subr.mxu0 %v10107_v37 }
0x10ee   : > { %7879 = vmatpush3.msra.mxu0 %v9309_v6 }
0x10ef   : > { %7894 = vmatprep.subr.mxu0 %v10107_v37 }
0x117f   : > { %v3096_v42 = vpop.f32.mrf.mxu1 }
0x1181   : > { %v7792_v21 = vpop.f32.mrf.mxu1 }
0x1183   : > { %v3176_v39 = vpop.f32.mrf.mxu1 }
0x1184   : > { %v3738_v38 = vrot.slane %v3176_v39, 7 }
0x1185   : > { %v7797_v1 = vpop.f32.mrf.mxu1 }
0x1186   : > { %v3739_v22 = vsel %vm1197_vm3, %v3738_v38, %v3096_v42 }
0x1187   : > { %v3256_v41 = vpop.f32.mrf.mxu0 }
0x1188   : > { %v3740_v18 = vrot.slane %v3256_v41, 6 }
0x1189   : > { %v7802_v14 = vpop.f32.mrf.mxu0 }
0x118a   : > { %v3741_v63 = vsel %vm1199_vm4, %v3740_v18, %v3739_v22 }
0x118b   : > { %v3336_v61 = vpop.f32.mrf.mxu1 }
0x118c   : > { %v3742_v17 = vrot.slane %v3336_v61, 5 }
0x118d   : > { %v7807_v57 = vpop.f32.mrf.mxu1 }
0x118e   : > { %v3743_v11 = vsel %vm1201_vm5, %v3742_v17, %v3741_v63 }
0x118f   : > { %v3416_v25 = vpop.f32.mrf.mxu0 }
0x1190   : > { %v3744_v7 = vrot.slane %v3416_v25, 4 }
0x1191   : > { %v7812_v50 = vpop.f32.mrf.mxu0 }
0x1192   : > { %v3745_v8 = vsel %vm1203_vm6, %v3744_v7, %v3743_v11 }
0x1193   : > { %v3496_v31 = vpop.f32.mrf.mxu1 }
0x1194   : > { %v3746_v13 = vrot.slane %v3496_v31, 3 }
0x1195   : > { %v7817_v10 = vpop.f32.mrf.mxu1 }
0x1196   : > { %v3747_v0 = vsel %vm1205_vm7, %v3746_v13, %v3745_v8  ;;  %v9436_v8 = vld [vmem:[%s10069_s11] sm:$0xff] }
0x1197   : > { %v3576_v15 = vpop.f32.mrf.mxu0  ;;  %v3656_v60 = vpop.f32.mrf.mxu1 }
0x1198   : > { %v3748_v26 = vrot.slane %v3576_v15, 2  ;;  %v3750_v20 = vrot.slane %v3656_v60, 1  ;;  %v9422_v15 = vld [vmem:[%s10069_s11 + $0x10] sm:$0xff]  ;;  %v9429_v60 = vld [vmem:[%s10069_s11 + $0x8] sm:$0xff] }
0x1199   : > { %v7822_v19 = vpop.f32.mrf.mxu0  ;;  %v7827_v29 = vpop.f32.mrf.mxu1 }
0x119a   : > { %v3749_v47 = vsel %vm1207_vm8, %v3748_v26, %v3747_v0  ;;  %v9443_v29 = vld [vmem:[%s10061_s3] sm:$0xff] }
0x119b   : > { %v3751_v3 = vsel %vm1209_vm9, %v3750_v20, %v3749_v47 }
0x119c   : > { %7848 = vmatmul.mubr.msk.f32.vlgmr.msra.gmra.mxu1 %vm692_vm1, %v3751_v3 }
0x119d   : > { %7862 = vmatpush3.msra.mxu1 %v9324_v49  ;;  %7869 = vmatprep.mubr.msk.f32.mxu1 %vm8403_vm2, %v10107_v37 }
0x119e   : > { %7863 = vmatprep.subr.mxu1 %v10107_v37 }
0x119f   : > { %v3726_v51 = vpop.f32.mrf.mxu0  ;;  %7864 = vmatpush3.msra.mxu1 %v9333_v35 }
0x11a0   : > { %7865 = vmatprep.subr.mxu1 %v10107_v37 }
0x11a1   : > { %v7838_v23 = vpop.f32.mrf.mxu0  ;;  %7866 = vmatpush3.msra.mxu1 %v9340_v9 }
0x11a2   : > { %7867 = vmatprep.subr.mxu1 %v10107_v37 }
0x11a3   : > { %7868 = vmatpush3.msra.mxu1 %v9348_v16 }
0x11a4   : > { %7883 = vmatprep.subr.mxu1 %v10107_v37  ;;  %7870 = vmatmul.mubr.msk.f32.vlgmr.msra.gmra.mxu1 %vm692_vm1, %v7381_v34 }
0x11a5   : > { %7884 = vmatpush3.msra.mxu1 %v9356_v58  ;;  %7891 = vmatprep.mubr.msk.f32.mxu1 %vm8403_vm2, %v10107_v37 }
0x11a6   : > { %7885 = vmatprep.subr.mxu1 %v10107_v37 }
0x11a7   : > { %v3890_v55 = vpop.f32.mrf.mxu0  ;;  %7886 = vmatpush3.msra.mxu1 %v9365_v45 }
0x11a8   : > { %7887 = vmatprep.subr.mxu1 %v10107_v37 }
0x11a9   : > { %v7860_v27 = vpop.f32.mrf.mxu0  ;;  %7888 = vmatpush3.msra.mxu1 %v9372_v30 }
0x11aa   : > { %7889 = vmatprep.subr.mxu1 %v10107_v37 }
0x11ab   : > { %7890 = vmatpush3.msra.mxu1 %v9379_v52 }
0x11ac   : > { %7892 = vmatmul.mubr.msk.f32.vlgmr.msra.gmra.mxu1 %vm692_vm1, %v9111_v56  ;;  %7905 = vmatprep.subr.mxu1 %v10107_v37 }
0x11ad   : > { %7906 = vmatpush3.msra.mxu1 %v9388_v32  ;;  %7907 = vmatprep.mubr.msk.f32.mxu1 %vm8403_vm2, %v10107_v37 }
0x11ae   : > { %7910 = vmatprep.subr.mxu1 %v10107_v37 }
0x125c   : > { %v3820_v24 = vpop.f32.mrf.mxu1 }
0x125d   : > { %v3821_v42 = vadd.f32 %v3820_v24, %v3726_v51 }
0x125e   : > { %v7849_v21 = vpop.f32.mrf.mxu1 }
0x125f   : > { %v3894_v39 = vadd.f32 %v3890_v55, %v3821_v42 }
0x1261   : > { %v3895_v56 = vadd.f32 %v9075_v12, %v3894_v39 }
0x1263   : > { %8221 = vtanh.f32 %v3895_v56  ;;  %v7378_v25 = vmul.f32 -1.442695, %v3895_v56 }
0x1264   : > { %v4000_v1 = vpop.f32.mrf.mxu1 }
0x1265   : > { %8223 = vpow2.f32 %v7378_v25 }
0x1266   : > { %v7871_v41 = vpop.f32.mrf.mxu1 }
0x126c   : > { %v4142_v14 = vpop.f32.mrf.mxu1 }
0x126e   : > { %v7893_v61 = vpop.f32.mrf.mxu1 }
0x1270   : > { %v8222_v57 = vpop.eup %8221 }
0x1271   : > { %3905 = vrot.lane.b32.xlu1 %v8222_v57, %s10118_s16  ;;  %v9473_v57 = vld [vmem:[%s10070_s12] ss:$0 sm:$0xff] }
0x1272   : > { %v8224_v38 = vpop.eup %8223 }
0x1273   : > { %v3899_v50 = vadd.f32 1.0, %v8224_v38 }
0x1275   : > { %8225 = vrcp.f32 %v3899_v50 }
0x1282   : > { %v8226_v18 = vpop.eup %8225 }
0x1283   : > { %v3903_v12 = vmul.f32 %v8226_v18, %v9080_v2  ;;  %v9413_v2 = vld [vmem:[%s10069_s11 + $0x18] sm:$0xff] }
0x12e3   : > { %v3906_v17 = vpop.permute.xlu1 %3905 }
0x12e4   : > { %v3908_v31 = vmul.f32 %v8226_v18, %v3906_v17 }
0x12e6   : > { %3910 = vrot.lane.b32.xlu1 %v3908_v31, %s8405_s22 }
0x1358   : > { %v3911_v7 = vpop.permute.xlu1 %3910 }
0x1359   : > { %v9398_v22 = vadd.f32 %v3911_v7, %v3903_v12 }
0x135b   : > { %8227 = vtanh.f32 %v9398_v22 }
0x1368   : > { %v8228_v13 = vpop.eup %8227 }
0x1369   : > { %3916 = vrot.lane.b32.xlu1 %v8228_v13, %s10118_s16 }
0x13db   : > { %v3917_v10 = vpop.permute.xlu1 %3916 }
0x13dc   : > { %v3919_v63 = vmul.f32 %v8226_v18, %v3917_v10 }
0x13de   : > { %3924 = vrot.lane.b32.xlu1 %v3919_v63, %s8405_s22 }
0x1450   : > { %v9403_v11 = vpop.permute.xlu1 %3924 }
0x1451   : > { %7380 = vst.msk [vmem:[%s8520_s17 + $0x8] sm:$0xff] %vm692_vm1, %v9403_v11  ;;  %7881 = vmatmul.mubr.msk.f32.vlgmr.msra.gmra.mxu0 %vm692_vm1, %v9403_v11 }
0x1452   : > { %7895 = vmatpush3.msra.mxu0 %v9413_v2  ;;  %7902 = vmatprep.mubr.msk.f32.mxu0 %vm8403_vm2, %v10107_v37 }
0x1453   : > { %7896 = vmatprep.subr.mxu0 %v10107_v37 }
0x1454   : > { %7897 = vmatpush3.msra.mxu0 %v9422_v15 }
0x1455   : > { %7898 = vmatprep.subr.mxu0 %v10107_v37 }
0x1456   : > { %7899 = vmatpush3.msra.mxu0 %v9429_v60 }
0x1457   : > { %7900 = vmatprep.subr.mxu0 %v10107_v37 }
0x1458   : > { %7901 = vmatpush3.msra.mxu0 %v9436_v8 }
0x1459   : > { %7915 = vmatprep.subr.mxu0 %v10107_v37 }
0x1511   : > { %v4072_v26 = vpop.f32.mrf.mxu0 }
0x1512   : > { %v4073_v20 = vadd.f32 %v4072_v26, %v4000_v1 }
0x1513   : > { %v7882_v0 = vpop.f32.mrf.mxu0 }
0x1514   : > { %v4146_v19 = vadd.f32 %v4142_v14, %v4073_v20 }
0x1516   : > { %v4147_v47 = vadd.f32 %v9443_v29, %v4146_v19 }
0x1518   : > { %8229 = vtanh.f32 %v4147_v47  ;;  %v7385_v51 = vmul.f32 -1.442695, %v4147_v47 }
0x151a   : > { %8231 = vpow2.f32 %v7385_v51 }
0x1525   : > { %v8230_v3 = vpop.eup %8229 }
0x1526   : > { %4157 = vrot.lane.b32.xlu1 %v8230_v3, %s10118_s16 }
0x1527   : > { %v8232_v23 = vpop.eup %8231 }
0x1528   : > { %v4151_v34 = vadd.f32 1.0, %v8232_v23  ;;  %v9489_v23 = vld [vmem:[%s10060_s2] sm:$0xff] }
0x152a   : > { %8233 = vrcp.f32 %v4151_v34 }
0x1537   : > { %v8234_v55 = vpop.eup %8233 }
0x1538   : > { %v4155_v42 = vmul.f32 %v8234_v55, %v9106_v46  ;;  %v9464_v46 = vld [vmem:[%s10059_s1 + $0x10] sm:$0xff] }
0x1598   : > { %v4158_v27 = vpop.permute.xlu1 %4157 }
0x1599   : > { %v4160_v24 = vmul.f32 %v8234_v55, %v4158_v27 }
0x159b   : > { %4162 = vrot.lane.b32.xlu1 %v4160_v24, %s8405_s22 }
0x160d   : > { %v4163_v21 = vpop.permute.xlu1 %4162 }
0x160e   : > { %v9449_v39 = vadd.f32 %v4163_v21, %v4155_v42  ;;  %v9498_v21 = vld [vmem:[%s10060_s2 + $0x8] sm:$0xff] }
0x160f   : > { %10131 = vst [vmem:[#allocation6_spill] sm:$0xff] %v9498_v21 }
0x1610   : > { %8235 = vtanh.f32 %v9449_v39 }
0x161d   : > { %v8236_v56 = vpop.eup %8235 }
0x161e   : > { %4168 = vrot.lane.b32.xlu0 %v8236_v56, %s10118_s16 }
0x1690   : > { %v4169_v1 = vpop.permute.xlu0 %4168 }
0x1691   : > { %v4171_v41 = vmul.f32 %v8234_v55, %v4169_v1  ;;  %v9504_v1 = vld [vmem:[%s10060_s2 + $0x10] sm:$0xff] }
0x1692   : > { %10132 = vst [vmem:[#allocation7_spill] sm:$0xff] %v9504_v1 }
0x1693   : > { %4173 = vrot.lane.b32.xlu1 %v4171_v41, %s8405_s22 }
0x1705   : > { %v9454_v14 = vpop.permute.xlu1 %4173 }
0x1706   : > { %7399 = vst.msk [vmem:[%s8515_s29 + $0x10] sm:$0xff] %vm692_vm1, %v9454_v14  ;;  %7903 = vmatmul.mubr.msk.f32.vlgmr.msra.gmra.mxu0 %vm692_vm1, %v9454_v14 }
0x1707   : > { %7916 = vmatpush3.msra.mxu0 %v9464_v46  ;;  %7917 = vmatprep.mubr.msk.f32.mxu0 %vm8403_vm2, %v10107_v37 }
0x1708   : > { %7925 = vmatprep.subr.mxu0 %v10107_v37 }
0x17c6   : > { %v4243_v61 = vpop.f32.mrf.mxu0 }
0x17c7   : > { %v4244_v25 = vadd.f32 %v9473_v57, %v4243_v61  ;;  %v9510_v61 = vld [vmem:[%s10060_s2 + $0x18] sm:$0xff] }
0x17c8   : > { %v7904_v38 = vpop.f32.mrf.mxu0  ;;  %10133 = vst [vmem:[#allocation8_spill] sm:$0xff] %v9510_v61 }
0x17c9   : > { %v4248_v50 = vcombine.high %v4244_v25, %v4244_v25  ;;  %v4255_v18 = vrot.slane %v4244_v25, %v8685_v53  ;;  %v9516_v38 = vld [vmem:[%s10060_s2 + $0x20] sm:$0xff] }
0x17ca   : > { %10134 = vst [vmem:[#allocation12_spill] sm:$0xff] %v9516_v38 }
0x17cb   : > { %v4262_v17 = vrot.slane %v4248_v50, %v8685_v53  ;;  %v4263_v31 = vcombine.high %v4255_v18, %v4255_v18  ;;  %v4271_v12 = vrot.slane %v4255_v18, %v8685_v53  ;;  %v9522_v18 = vld [vmem:[%s10060_s2 + $0x30] sm:$0xff] }
0x17cc   : > { %10135 = vst [vmem:[#allocation9_spill] sm:$0xff] %v9522_v18 }
0x17cd   : > { %v4264_v7 = vcombine.high %v4262_v17, %v4262_v17  ;;  %v4278_v13 = vrot.slane %v4262_v17, %v8685_v53  ;;  %v4285_v10 = vrot.slane %v4263_v31, %v8685_v53  ;;  %v4293_v63 = vcombine.high %v4271_v12, %v4271_v12 }
0x17ce   : > { %v4300_v26 = vrot.slane %v4271_v12, %v8690_v59  ;;  %v9529_v12 = vld [vmem:[%s10060_s2 + $0x28] sm:$0xff] }
0x17cf   : > { %v4292_v20 = vrot.slane %v4264_v7, %v8685_v53  ;;  %v4294_v0 = vcombine.high %v4278_v13, %v4278_v13  ;;  %v4295_v19 = vcombine.high %v4285_v10, %v4285_v10  ;;  %v4304_v47 = vrot.slane %v4285_v10, %v8690_v59  ;;  %10136 = vst [vmem:[#allocation14_spill] sm:$0xff] %v9529_v12 }
0x17d0   : > { %v4308_v3 = vrot.slane %v4293_v63, %v8690_v59  ;;  %v4316_v51 = vrot.slane %v4278_v13, %v8690_v59  ;;  %v4337_v34 = vadd.f32 %v9489_v23, %v4300_v26  ;;  %v9535_v13 = vld [vmem:[%s10060_s2 + $0x38] sm:$0xff]  ;;  %v9541_v26 = vld [vmem:[%s10071_s13] ss:$0 sm:$0xff] }
0x17d1   : > { %v4296_v55 = vcombine.high %v4292_v20, %v4292_v20  ;;  %v4312_v27 = vrot.slane %v4295_v19, %v8690_v59  ;;  %v4324_v24 = vrot.slane %v4294_v0, %v8690_v59  ;;  %v4320_v42 = vrot.slane %v4292_v20, %v8690_v59  ;;  %10137 = vst [vmem:[#allocation10_spill] sm:$0xff] %v9535_v13 }
0x17d2   : > { %v4338_v56 = vadd.f32 %v9498_v21, %v4304_v47  ;;  %v4339_v41 = vadd.f32 %v9504_v1, %v4308_v3  ;;  %8237 = vtanh.f32 %v4337_v34  ;;  %v4341_v50 = vadd.f32 %v9516_v38, %v4316_v51  ;;  %10138 = vst [vmem:[#allocation11_spill] sm:$0xff] %v9541_v26 }
0x17d3   : > { %v4340_v25 = vadd.f32 %v9510_v61, %v4312_v27  ;;  %v4343_v17 = vadd.f32 %v9522_v18, %v4324_v24  ;;  %v4328_v31 = vrot.slane %v4296_v55, %v8690_v59  ;;  %v4342_v7 = vadd.f32 %v9529_v12, %v4320_v42 }
0x17d4   : > { %8239 = vtanh.f32 %v4338_v56 }
0x17d5   : > { %8241 = vtanh.f32 %v4339_v41  ;;  %v4344_v10 = vadd.f32 %v9535_v13, %v4328_v31 }
0x17d6   : > { %8243 = vtanh.f32 %v4340_v25 }
0x17d7   : > { %8245 = vtanh.f32 %v4341_v50 }
0x17d8   : > { %8247 = vtanh.f32 %v4343_v17 }
0x17d9   : > { %8249 = vtanh.f32 %v4342_v7 }
0x17da   : > { %8251 = vtanh.f32 %v4344_v10 }
0x17df   : > { %v8238_v63 = vpop.eup %8237 }
0x17e0   : > { %v4353_v20 = vmul.f32 %v9541_v26, %v8238_v63 }
0x17e1   : > { %v8240_v0 = vpop.eup %8239 }
0x17e2   : > { %v8242_v19 = vpop.eup %8241  ;;  %v4361_v47 = vsel %vm692_vm1, %v4353_v20, 0.0  ;;  %v4354_v3 = vmul.f32 %v9541_v26, %v8240_v0 }
0x17e3   : > { %v8244_v51 = vpop.eup %8243  ;;  %4362 = vadd.xlane.f32.xlu0 %v4361_v47  ;;  %v4355_v34 = vmul.f32 %v9541_v26, %v8242_v19 }
0x17e4   : > { %v8246_v55 = vpop.eup %8245  ;;  %v4364_v27 = vsel %vm692_vm1, %v4354_v3, 0.0  ;;  %v4356_v41 = vmul.f32 %v9541_v26, %v8244_v51 }
0x17e5   : > { %4365 = vadd.xlane.f32.xlu1 %v4364_v27  ;;  %v4357_v24 = vmul.f32 %v9541_v26, %v8246_v55  ;;  %v8248_v42 = vpop.eup %8247  ;;  %v4367_v56 = vsel %vm692_vm1, %v4355_v34, 0.0 }
0x17e6   : > { %v8250_v25 = vpop.eup %8249  ;;  %v4359_v17 = vmul.f32 %v9541_v26, %v8248_v42  ;;  %v4370_v31 = vsel %vm692_vm1, %v4356_v41, 0.0 }
0x17e7   : > { %4368 = vadd.xlane.f32.xlu0 %v4367_v56  ;;  %v4373_v50 = vsel %vm692_vm1, %v4357_v24, 0.0  ;;  %v4358_v7 = vmul.f32 %v9541_v26, %v8250_v25  ;;  %v8252_v10 = vpop.eup %8251 }
0x17e8   : > { %v4379_v63 = vsel %vm692_vm1, %v4359_v17, 0.0  ;;  %v4360_v0 = vmul.f32 %v9541_v26, %v8252_v10 }
0x17e9   : > { %4374 = vadd.xlane.f32.xlu1 %v4373_v50  ;;  %v4376_v20 = vsel %vm692_vm1, %v4358_v7, 0.0 }
0x17ea   : > { %v4382_v19 = vsel %vm692_vm1, %v4360_v0, 0.0 }
0x17eb   : > { %4371 = vadd.xlane.f32.xlu0 %v4370_v31 }
0x17ed   : > { %4380 = vadd.xlane.f32.xlu1 %v4379_v63 }
0x17ef   : > { %4377 = vadd.xlane.f32.xlu0 %v4376_v20 }
0x17f3   : > { %4383 = vadd.xlane.f32.xlu0 %v4382_v19 }
0x186c   : > { %v4363_v47 = vpop.xlane.xlu0 %4362 }
0x186d   : > { %v4396_v55 = vrot.slane %v4363_v47, %v8776_v48 }
0x186e   : > { %v4366_v3 = vpop.xlane.xlu1 %4365 }
0x186f   : > { %v4400_v51 = vrot.slane %v4366_v3, %v8776_v48 }
0x1870   : > { %v4369_v34 = vpop.xlane.xlu0 %4368 }
0x1871   : > { %v4404_v27 = vrot.slane %v4369_v34, %v8776_v48  ;;  %v4425_v24 = vsel %vm1197_vm3, %v4400_v51, %v4396_v55 }
0x1872   : > { %v4375_v42 = vpop.xlane.xlu1 %4374 }
0x1873   : > { %v4426_v25 = vsel %vm1199_vm4, %v4404_v27, %v4425_v24  ;;  %v4412_v17 = vrot.slane %v4375_v42, %v8776_v48 }
0x1874   : > { %v4372_v56 = vpop.xlane.xlu0 %4371 }
0x1875   : > { %v4408_v41 = vrot.slane %v4372_v56, %v8776_v48 }
0x1876   : > { %v4381_v7 = vpop.xlane.xlu1 %4380 }
0x1877   : > { %v4427_v50 = vsel %vm1201_vm5, %v4408_v41, %v4426_v25  ;;  %v4420_v0 = vrot.slane %v4381_v7, %v8776_v48 }
0x1878   : > { %v4378_v31 = vpop.xlane.xlu0 %4377  ;;  %v4428_v63 = vsel %vm1203_vm6, %v4412_v17, %v4427_v50 }
0x1879   : > { %v4416_v10 = vrot.slane %v4378_v31, %v8776_v48 }
0x187b   : > { %v4429_v20 = vsel %vm1205_vm7, %v4416_v10, %v4428_v63 }
0x187c   : > { %v4384_v19 = vpop.xlane.xlu0 %4383  ;;  %v4430_v55 = vsel %vm1207_vm8, %v4420_v0, %v4429_v20 }
0x187d   : > { %v4424_v51 = vrot.slane %v4384_v19, %v8776_v48 }
0x187f   : > { %v4431_v27 = vsel %vm1209_vm9, %v4424_v51, %v4430_v55 }
0x1880   : > { %v4433_v24 = vsel %vm1212_vm10, %v4431_v27, -inf }
0x1881   : > { %4434 = vmax.xlane.f32.xlu1 %v4433_v24 }
0x190a   : > { %v4435_v41 = vpop.xlane.xlu1 %4434 }
0x190b   : > { %v4440_v25 = vrot.slane %v4435_v41, %v8690_v59  ;;  %v4444_v26 = vrot.slane %v4435_v41, %v8795_v36  ;;  %v4448_v50 = vrot.slane %v4435_v41, %v8798_v43  ;;  %v4452_v17 = vrot.slane %v4435_v41, %v8801_v44 }
0x190c   : > { %v4460_v10 = vrot.slane %v4435_v41, %v8811_v28  ;;  %v4456_v20 = vrot.slane %v4435_v41, %v8807_v62  ;;  %v4468_v27 = vrot.slane %v4435_v41, %v8819_v54  ;;  %v4464_v61 = vrot.slane %v4435_v41, %v8815_v33 }
0x190d   : > { %v4477_v63 = vsub.f32 %v4363_v47, %v4440_v25  ;;  %v4478_v13 = vsub.f32 %v4366_v3, %v4444_v26  ;;  %v4480_v12 = vsub.f32 %v4372_v56, %v4452_v17  ;;  %v4479_v0 = vsub.f32 %v4369_v34, %v4448_v50 }
0x190e   : > { %v4482_v24 = vsub.f32 %v4378_v31, %v4460_v10  ;;  %v4481_v38 = vsub.f32 %v4375_v42, %v4456_v20  ;;  %v4484_v21 = vsub.f32 %v4384_v19, %v4468_v27  ;;  %v4483_v26 = vsub.f32 %v4381_v7, %v4464_v61 }
0x190f   : > { %v4485_v51 = vmul.f32 1.442695, %v4477_v63  ;;  %v4487_v55 = vmul.f32 1.442695, %v4478_v13  ;;  %v4491_v18 = vmul.f32 1.442695, %v4480_v12 }
0x1910   : > { %v4489_v1 = vmul.f32 1.442695, %v4479_v0  ;;  %v4495_v47 = vmul.f32 1.442695, %v4482_v24  ;;  %v4493_v3 = vmul.f32 1.442695, %v4481_v38 }
0x1911   : > { %8253 = vpow2.f32 %v4485_v51  ;;  %v4499_v34 = vmul.f32 1.442695, %v4484_v21  ;;  %v4497_v13 = vmul.f32 1.442695, %v4483_v26 }
0x1912   : > { %8255 = vpow2.f32 %v4487_v55 }
0x1913   : > { %8257 = vpow2.f32 %v4491_v18 }
0x1914   : > { %8259 = vpow2.f32 %v4489_v1 }
0x1915   : > { %8261 = vpow2.f32 %v4495_v47 }
0x1916   : > { %8263 = vpow2.f32 %v4493_v3 }
0x1917   : > { %8265 = vpow2.f32 %v4499_v34 }
0x1918   : > { %8267 = vpow2.f32 %v4497_v13 }
0x191e   : > { %v8254_v56 = vpop.eup %8253 }
0x191f   : > { %v8256_v31 = vpop.eup %8255  ;;  %4510 = vperm.xlu0 %8128, %v8254_v56  }
0x1920   : > { %4513 = vperm.xlu1 %8127, %v8256_v31   ;;  %v8258_v12 = vpop.eup %8257 }
0x1921   : > { %v8260_v42 = vpop.eup %8259 }
0x1922   : > { %v8262_v19 = vpop.eup %8261 }
0x1923   : > { %4519 = vperm.xlu0 %8128, %v8258_v12   ;;  %v8264_v18 = vpop.eup %8263 }
0x1924   : > { %4516 = vperm.xlu1 %8127, %v8260_v42   ;;  %v8266_v1 = vpop.eup %8265 }
0x1925   : > { %v8268_v61 = vpop.eup %8267 }
0x1927   : > { %4525 = vperm.xlu0 %8128, %v8262_v19  }
0x1928   : > { %4522 = vperm.xlu1 %8127, %v8264_v18  }
0x192b   : > { %4531 = vperm.xlu0 %8128, %v8266_v1  }
0x192c   : > { %4528 = vperm.xlu1 %8127, %v8268_v61  }
0x199a   : > { %v4511_v21 = vpop.permute.xlu0 %4510 }
0x199b   : > { %v4514_v38 = vpop.permute.xlu1 %4513  ;;  %v4536_v41 = vrot.slane %v4511_v21, %v8776_v48 }
0x199c   : > { %v4540_v7 = vrot.slane %v4514_v38, %v8776_v48 }
0x199e   : > { %v4520_v25 = vpop.permute.xlu0 %4519  ;;  %v4565_v10 = vsel %vm1197_vm3, %v4540_v7, %v4536_v41 }
0x199f   : > { %v4517_v50 = vpop.permute.xlu1 %4516  ;;  %v4548_v63 = vrot.slane %v4520_v25, %v8776_v48 }
0x19a0   : > { %v4544_v17 = vrot.slane %v4517_v50, %v8776_v48 }
0x19a2   : > { %v4566_v20 = vsel %vm1199_vm4, %v4544_v17, %v4565_v10  ;;  %v4526_v0 = vpop.permute.xlu0 %4525 }
0x19a3   : > { %v4523_v51 = vpop.permute.xlu1 %4522  ;;  %v4567_v27 = vsel %vm1201_vm5, %v4548_v63, %v4566_v20  ;;  %v4556_v24 = vrot.slane %v4526_v0, %v8776_v48 }
0x19a4   : > { %v4552_v55 = vrot.slane %v4523_v51, %v8776_v48 }
0x19a6   : > { %v4568_v47 = vsel %vm1203_vm6, %v4552_v55, %v4567_v27  ;;  %v4532_v26 = vpop.permute.xlu0 %4531 }
0x19a7   : > { %v4529_v3 = vpop.permute.xlu1 %4528  ;;  %v4564_v34 = vrot.slane %v4532_v26, %v8776_v48  ;;  %v4569_v21 = vsel %vm1205_vm7, %v4556_v24, %v4568_v47 }
0x19a8   : > { %v4560_v13 = vrot.slane %v4529_v3, %v8776_v48 }
0x19aa   : > { %v4570_v38 = vsel %vm1207_vm8, %v4560_v13, %v4569_v21 }
0x19ab   : > { %v4571_v7 = vsel %vm1209_vm9, %v4564_v34, %v4570_v38 }
0x19ac   : > { %v4573_v41 = vsel %vm1212_vm10, %v4571_v7, 0.0 }
0x19ad   : > { %4574 = vadd.xlane.f32.xlu1 %v4573_v41 }
0x1a36   : > { %v4575_v25 = vpop.xlane.xlu1 %4574 }
0x1a37   : > { %8269 = vrcp.f32 %v4575_v25 }
0x1a44   : > { %v8270_v50 = vpop.eup %8269 }
0x1a45   : > { %v4577_v17 = vmul.f32 %v8270_v50, %v4575_v25 }
0x1a47   : > { %v4578_v10 = vsub.f32 2.0, %v4577_v17  ;;  %v9634_v17 = vld [vmem:[%s10059_s1 + $0x20] sm:$0xff] }
0x1a49   : > { %v4579_v63 = vmul.f32 %v8270_v50, %v4578_v10 }
0x1a4b   : > { %v4584_v20 = vrot.slane %v4579_v63, %v8690_v59  ;;  %v4588_v51 = vrot.slane %v4579_v63, %v8795_v36  ;;  %v4592_v27 = vrot.slane %v4579_v63, %v8798_v43  ;;  %v4596_v47 = vrot.slane %v4579_v63, %v8801_v44 }
0x1a4c   : > { %v4600_v3 = vrot.slane %v4579_v63, %v8807_v62  ;;  %v4604_v13 = vrot.slane %v4579_v63, %v8811_v28  ;;  %v4608_v21 = vrot.slane %v4579_v63, %v8815_v33  ;;  %v4612_v38 = vrot.slane %v4579_v63, %v8819_v54 }
0x1a4d   : > { %v4621_v0 = vmul.f32 %v8254_v56, %v4584_v20  ;;  %v4622_v55 = vmul.f32 %v8256_v31, %v4588_v51  ;;  %v4623_v24 = vmul.f32 %v8260_v42, %v4592_v27  ;;  %v4624_v26 = vmul.f32 %v8258_v12, %v4596_v47  ;;  %v9645_v20 = vld [vmem:[%s10059_s1 + $0x28] sm:$0xff]  ;;  %v9667_v47 = vld [vmem:[%s10059_s1 + $0x38] sm:$0xff] }
0x1a4e   : > { %v4625_v34 = vmul.f32 %v8264_v18, %v4600_v3  ;;  %v4626_v56 = vmul.f32 %v8262_v19, %v4604_v13  ;;  %v4627_v31 = vmul.f32 %v8268_v61, %v4608_v21  ;;  %v4628_v42 = vmul.f32 %v8266_v1, %v4612_v38  ;;  %v9612_v18 = vld [vmem:[%s10059_s1 + $0x8] sm:$0xff]  ;;  %v9623_v61 = vld [vmem:[%s10059_s1 + $0x18] sm:$0xff]  ;;  %v9710_v38 = vld [vmem:[%s10066_s8] sm:$0xff] }
0x1a4f   : > { %4631 = vperm.xlu0 %8128, %v4621_v0   ;;  %v9678_v3 = vld [vmem:[%s10066_s8 + $0x18] sm:$0xff]  ;;  %v9696_v21 = vld [vmem:[%s10066_s8 + $0x8] sm:$0xff] }
0x1a53   : > { %4711 = vperm.xlu0 %8128, %v4622_v55   ;;  %v9656_v55 = vld [vmem:[%s10059_s1 + $0x30] sm:$0xff] }
0x1a57   : > { %4791 = vperm.xlu0 %8128, %v4623_v24  }
0x1a5b   : > { %4871 = vperm.xlu0 %8128, %v4624_v26  }
0x1a5f   : > { %4951 = vperm.xlu0 %8128, %v4625_v34  }
0x1a63   : > { %5031 = vperm.xlu0 %8128, %v4626_v56   ;;  %v9688_v56 = vld [vmem:[%s10066_s8 + $0x10] sm:$0xff] }
0x1a67   : > { %5111 = vperm.xlu0 %8128, %v4627_v31   ;;  %v9702_v31 = vld [vmem:[%s10065_s7 + $0x18] sm:$0xff] }
0x1a6b   : > { %5191 = vperm.xlu0 %8128, %v4628_v42   ;;  %v9716_v42 = vld [vmem:[%s10065_s7 + $0x10] sm:$0xff] }
0x1aca   : > { %v4632_v7 = vpop.permute.xlu0 %4631 }
0x1acb   : > { %v4636_v12 = vrot.slane %v4632_v7, %v8776_v48  ;;  %v9725_v7 = vld [vmem:[%s10067_s9 + $0x18] sm:$0xff] }
0x1acc   : > { %10139 = vst [vmem:[#allocation16_spill] sm:$0xff] %v9725_v7 }
0x1acd   : > { %7908 = vmatmul.mubr.msk.f32.vlgmr.msra.gmra.mxu1 %vm1212_vm10, %v4636_v12  ;;  %v9735_v12 = vld [vmem:[%s10067_s9 + $0x10] sm:$0xff] }
0x1ace   : > { %v4712_v41 = vpop.permute.xlu0 %4711  ;;  %7911 = vmatpush3.msra.mxu1 %v9612_v18  ;;  %7912 = vmatprep.mubr.msk.f32.mxu1 %vm8403_vm2, %v10107_v37  ;;  %10140 = vst [vmem:[#allocation13_spill] sm:$0xff] %v9735_v12 }
0x1acf   : > { %v4716_v19 = vrot.slane %v4712_v41, %v8776_v48  ;;  %7920 = vmatprep.subr.mxu1 %v10107_v37  ;;  %v9741_v41 = vld [vmem:[%s10065_s7 + $0x8] sm:$0xff] }
0x1ad1   : > { %7913 = vmatmul.mubr.msk.f32.vlgmr.msra.gmra.mxu1 %vm1212_vm10, %v4716_v19  ;;  %v9749_v19 = vld [vmem:[%s10067_s9 + $0x8] sm:$0xff] }
0x1ad2   : > { %v4792_v1 = vpop.permute.xlu0 %4791  ;;  %7921 = vmatpush3.msra.mxu1 %v9623_v61  ;;  %7922 = vmatprep.mubr.msk.f32.mxu1 %vm8403_vm2, %v10107_v37  ;;  %10141 = vst [vmem:[#allocation15_spill] sm:$0xff] %v9749_v19 }
0x1ad3   : > { %v4796_v25 = vrot.slane %v4792_v1, %v8776_v48  ;;  %7930 = vmatprep.subr.mxu1 %v10107_v37  ;;  %v9755_v1 = vld [vmem:[%s10065_s7] sm:$0xff] }
0x1ad4   : > { %10142 = vst [vmem:[#allocation17_spill] sm:$0xff] %v9755_v1 }
0x1ad5   : > { %7918 = vmatmul.mubr.msk.f32.vlgmr.msra.gmra.mxu0 %vm1212_vm10, %v4796_v25  ;;  %v9764_v25 = vld [vmem:[%s10067_s9] sm:$0xff] }
0x1ad6   : > { %v4872_v50 = vpop.permute.xlu0 %4871  ;;  %7926 = vmatpush3.msra.mxu0 %v9634_v17  ;;  %7927 = vmatprep.mubr.msk.f32.mxu0 %vm8403_vm2, %v10107_v37  ;;  %10143 = vst [vmem:[#allocation18_spill] sm:$0xff] %v9764_v25 }
0x1ad7   : > { %v4876_v10 = vrot.slane %v4872_v50, %v8776_v48  ;;  %7935 = vmatprep.subr.mxu0 %v10107_v37 }
0x1ad9   : > { %7923 = vmatmul.mubr.msk.f32.vlgmr.msra.gmra.mxu1 %vm1212_vm10, %v4876_v10 }
0x1ada   : > { %v4952_v63 = vpop.permute.xlu0 %4951  ;;  %7931 = vmatpush3.msra.mxu1 %v9645_v20  ;;  %7932 = vmatprep.mubr.msk.f32.mxu1 %vm8403_vm2, %v10107_v37 }
0x1adb   : > { %v4956_v0 = vrot.slane %v4952_v63, %v8776_v48  ;;  %7940 = vmatprep.subr.mxu1 %v10107_v37 }
0x1add   : > { %7928 = vmatmul.mubr.msk.f32.vlgmr.msra.gmra.mxu0 %vm1212_vm10, %v4956_v0 }
0x1ade   : > { %v5032_v51 = vpop.permute.xlu0 %5031  ;;  %7936 = vmatpush3.msra.mxu0 %v9656_v55  ;;  %7937 = vmatprep.mubr.msk.f32.mxu0 %vm8403_vm2, %v10107_v37 }
0x1adf   : > { %v5036_v27 = vrot.slane %v5032_v51, %v8776_v48  ;;  %7945 = vmatprep.subr.mxu0 %v10107_v37 }
0x1ae1   : > { %7933 = vmatmul.mubr.msk.f32.vlgmr.msra.gmra.mxu1 %vm1212_vm10, %v5036_v27 }
0x1ae2   : > { %v5112_v24 = vpop.permute.xlu0 %5111  ;;  %7941 = vmatpush3.msra.mxu1 %v9667_v47  ;;  %7942 = vmatprep.mubr.msk.f32.mxu1 %vm8403_vm2, %v10107_v37 }
0x1ae3   : > { %v5116_v26 = vrot.slane %v5112_v24, %v8776_v48  ;;  %7956 = vmatprep.subr.mxu1 %v10107_v37 }
0x1ae5   : > { %7938 = vmatmul.mubr.msk.f32.vlgmr.msra.gmra.mxu0 %vm1212_vm10, %v5116_v26 }
0x1ae6   : > { %7946 = vmatpush3.msra.mxu0 %v9678_v3  ;;  %v5192_v34 = vpop.permute.xlu0 %5191  ;;  %7953 = vmatprep.mubr.msk.f32.mxu0 %vm8403_vm2, %v10107_v37 }
0x1ae7   : > { %7947 = vmatprep.subr.mxu0 %v10107_v37  ;;  %v5196_v13 = vrot.slane %v5192_v34, %v8776_v48 }
0x1ae8   : > { %7948 = vmatpush3.msra.mxu0 %v9688_v56 }
0x1ae9   : > { %7949 = vmatprep.subr.mxu0 %v10107_v37  ;;  %7943 = vmatmul.mubr.msk.f32.vlgmr.msra.gmra.mxu1 %vm1212_vm10, %v5196_v13 }
0x1aea   : > { %7950 = vmatpush3.msra.mxu0 %v9696_v21  ;;  %7957 = vmatpush3.msra.mxu1 %v9702_v31 }
0x1aeb   : > { %7951 = vmatprep.subr.mxu0 %v10107_v37  ;;  %7958 = vmatprep.subr.mxu1 %v10107_v37 }
0x1aec   : > { %7952 = vmatpush3.msra.mxu0 %v9710_v38  ;;  %7959 = vmatpush3.msra.mxu1 %v9716_v42 }
0x1aed   : > { %7954 = vmatmul.mubr.msk.f32.vlgmr.msra.gmra.mxu0 %vm692_vm1, %v9454_v14  ;;  %7967 = vmatprep.subr.mxu0 %v10107_v37 }
0x1aee   : > { %7968 = vmatpush3.msra.mxu0 %v9725_v7  ;;  %7975 = vmatprep.mubr.msk.f32.mxu0 %vm8403_vm2, %v10107_v37 }
0x1aef   : > { %7969 = vmatprep.subr.mxu0 %v10107_v37  ;;  %7960 = vmatprep.subr.mxu1 %v10107_v37 }
0x1af0   : > { %7970 = vmatpush3.msra.mxu0 %v9735_v12  ;;  %7961 = vmatpush3.msra.mxu1 %v9741_v41 }
0x1af1   : > { %7971 = vmatprep.subr.mxu0 %v10107_v37  ;;  %7962 = vmatprep.subr.mxu1 %v10107_v37 }
0x1af2   : > { %7972 = vmatpush3.msra.mxu0 %v9749_v19  ;;  %7963 = vmatpush3.msra.mxu1 %v9755_v1 }
0x1af3   : > { %7973 = vmatprep.subr.mxu0 %v10107_v37  ;;  %7964 = vmatprep.mubr.msk.f32.mxu1 %vm8403_vm2, %v10107_v37 }
0x1af4   : > { %7974 = vmatpush3.msra.mxu0 %v9764_v25  ;;  %7978 = vmatprep.subr.mxu1 %v10107_v37 }
0x1af5   : > { %7976 = vmatmul.mubr.msk.f32.vlgmr.msra.gmra.mxu0 %vm692_vm1, %v9403_v11  ;;  %7989 = vmatprep.subr.mxu0 %v10107_v37 }
0x1af6   : > { %7990 = vmatpush3.msra.mxu0 %v9286_v4  ;;  %7997 = vmatprep.mubr.msk.f32.mxu0 %vm8403_vm2, %v10107_v37 }
0x1af7   : > { %7991 = vmatprep.subr.mxu0 %v10107_v37 }
0x1af8   : > { %7992 = vmatpush3.msra.mxu0 %v9295_v40 }
0x1af9   : > { %7993 = vmatprep.subr.mxu0 %v10107_v37 }
0x1afa   : > { %7994 = vmatpush3.msra.mxu0 %v9302_v5 }
0x1afb   : > { %7995 = vmatprep.subr.mxu0 %v10107_v37 }
0x1afc   : > { %7996 = vmatpush3.msra.mxu0 %v9309_v6 }
0x1afd   : > { %8011 = vmatprep.subr.mxu0 %v10107_v37 }
0x1b8d   : > { %v4705_v11 = vpop.f32.mrf.mxu1 }
0x1b8f   : > { %v7909_v50 = vpop.f32.mrf.mxu1 }
0x1b91   : > { %v4785_v4 = vpop.f32.mrf.mxu1 }
0x1b92   : > { %v5347_v34 = vrot.slane %v4785_v4, 7 }
0x1b93   : > { %v7914_v10 = vpop.f32.mrf.mxu1 }
0x1b94   : > { %v5348_v6 = vsel %vm1197_vm3, %v5347_v34, %v4705_v11 }
0x1b95   : > { %v4865_v63 = vpop.f32.mrf.mxu0 }
0x1b96   : > { %v5349_v13 = vrot.slane %v4865_v63, 6 }
0x1b97   : > { %v7919_v0 = vpop.f32.mrf.mxu0 }
0x1b98   : > { %v5350_v50 = vsel %vm1199_vm4, %v5349_v13, %v5348_v6 }
0x1b99   : > { %v4945_v51 = vpop.f32.mrf.mxu1 }
0x1b9a   : > { %v5351_v25 = vrot.slane %v4945_v51, 5 }
0x1b9b   : > { %v7924_v27 = vpop.f32.mrf.mxu1 }
0x1b9c   : > { %v5352_v0 = vsel %vm1201_vm5, %v5351_v25, %v5350_v50 }
0x1b9d   : > { %v5025_v24 = vpop.f32.mrf.mxu0 }
0x1b9e   : > { %v5353_v19 = vrot.slane %v5025_v24, 4 }
0x1b9f   : > { %v7929_v40 = vpop.f32.mrf.mxu0 }
0x1ba0   : > { %v5354_v27 = vsel %vm1203_vm6, %v5353_v19, %v5352_v0 }
0x1ba1   : > { %v5105_v26 = vpop.f32.mrf.mxu1 }
0x1ba2   : > { %v5355_v1 = vrot.slane %v5105_v26, 3 }
0x1ba3   : > { %v7934_v5 = vpop.f32.mrf.mxu1 }
0x1ba4   : > { %v5356_v4 = vsel %vm1205_vm7, %v5355_v1, %v5354_v27 }
0x1ba5   : > { %v5185_v12 = vpop.f32.mrf.mxu0 }
0x1ba6   : > { %v5357_v7 = vrot.slane %v5185_v12, 2 }
0x1ba7   : > { %v7939_v10 = vpop.f32.mrf.mxu0 }
0x1ba8   : > { %v5358_v51 = vsel %vm1207_vm8, %v5357_v7, %v5356_v4  ;;  %v7401_v7 = vld [vmem:[%s8510_s26 + $0x18] sm:$0xff] }
0x1ba9   : > { %v5265_v40 = vpop.f32.mrf.mxu1 }
0x1baa   : > { %v5359_v63 = vrot.slane %v5265_v40, 1 }
0x1bab   : > { %v7944_v24 = vpop.f32.mrf.mxu1 }
0x1bac   : > { %v5360_v5 = vsel %vm1209_vm9, %v5359_v63, %v5358_v51 }
0x1bad   : > { %v5335_v11 = vpop.f32.mrf.mxu0  ;;  %7965 = vmatmul.mubr.msk.f32.vlgmr.msra.gmra.mxu1 %vm692_vm1, %v5360_v5 }
0x1bae   : > { %7979 = vmatpush3.msra.mxu1 %v9324_v49  ;;  %7986 = vmatprep.mubr.msk.f32.mxu1 %vm8403_vm2, %v10107_v37 }
0x1baf   : > { %v7955_v12 = vpop.f32.mrf.mxu0  ;;  %7980 = vmatprep.subr.mxu1 %v10107_v37 }
0x1bb0   : > { %7981 = vmatpush3.msra.mxu1 %v9333_v35 }
0x1bb1   : > { %7982 = vmatprep.subr.mxu1 %v10107_v37 }
0x1bb2   : > { %7983 = vmatpush3.msra.mxu1 %v9340_v9 }
0x1bb3   : > { %7984 = vmatprep.subr.mxu1 %v10107_v37 }
0x1bb4   : > { %7985 = vmatpush3.msra.mxu1 %v9348_v16 }
0x1bb5   : > { %v5499_v19 = vpop.f32.mrf.mxu0  ;;  %8000 = vmatprep.subr.mxu1 %v10107_v37  ;;  %7987 = vmatmul.mubr.msk.f32.vlgmr.msra.gmra.mxu1 %vm692_vm1, %v7401_v7 }
0x1bb6   : > { %8001 = vmatpush3.msra.mxu1 %v9356_v58  ;;  %8008 = vmatprep.mubr.msk.f32.mxu1 %vm8403_vm2, %v10107_v37 }
0x1bb7   : > { %v7977_v49 = vpop.f32.mrf.mxu0  ;;  %8002 = vmatprep.subr.mxu1 %v10107_v37 }
0x1bb8   : > { %8003 = vmatpush3.msra.mxu1 %v9365_v45  ;;  %v9820_v45 = vld [vmem:[%s10068_s10] ss:$0 sm:$0xff] }
0x1bb9   : > { %8004 = vmatprep.subr.mxu1 %v10107_v37 }
0x1bba   : > { %8005 = vmatpush3.msra.mxu1 %v9372_v30 }
0x1bbb   : > { %8006 = vmatprep.subr.mxu1 %v10107_v37 }
0x1bbc   : > { %8007 = vmatpush3.msra.mxu1 %v9379_v52 }
0x1bbd   : > { %8009 = vmatmul.mubr.msk.f32.vlgmr.msra.gmra.mxu1 %vm692_vm1, %v9454_v14  ;;  %8022 = vmatprep.subr.mxu1 %v10107_v37 }
0x1bbe   : > { %8023 = vmatpush3.msra.mxu1 %v9388_v32  ;;  %8024 = vmatprep.mubr.msk.f32.mxu1 %vm8403_vm2, %v10107_v37 }
0x1bbf   : > { %8027 = vmatprep.subr.mxu1 %v10107_v37 }
0x1c6d   : > { %v5429_v35 = vpop.f32.mrf.mxu1 }
0x1c6e   : > { %v5430_v9 = vadd.f32 %v5429_v35, %v5335_v11 }
0x1c6f   : > { %v7966_v16 = vpop.f32.mrf.mxu1 }
0x1c70   : > { %v5503_v58 = vadd.f32 %v5499_v19, %v5430_v9 }
0x1c72   : > { %v5504_v30 = vadd.f32 %v9820_v45, %v5503_v58 }
0x1c74   : > { %8271 = vtanh.f32 %v5504_v30  ;;  %v7398_v26 = vmul.f32 -1.442695, %v5504_v30 }
0x1c75   : > { %v5609_v52 = vpop.f32.mrf.mxu1 }
0x1c76   : > { %8273 = vpow2.f32 %v7398_v26 }
0x1c77   : > { %v7988_v14 = vpop.f32.mrf.mxu1 }
0x1c7d   : > { %v5751_v32 = vpop.f32.mrf.mxu1 }
0x1c7f   : > { %v8010_v1 = vpop.f32.mrf.mxu1 }
0x1c81   : > { %v8272_v25 = vpop.eup %8271 }
0x1c82   : > { %5514 = vrot.lane.b32.xlu0 %v8272_v25, %s10118_s16 }
0x1c83   : > { %v8274_v34 = vpop.eup %8273 }
0x1c84   : > { %v5508_v13 = vadd.f32 1.0, %v8274_v34 }
0x1c86   : > { %8275 = vrcp.f32 %v5508_v13 }
0x1c93   : > { %v8276_v6 = vpop.eup %8275 }
0x1c94   : > { %v5512_v0 = vmul.f32 %v8276_v6, %v9398_v22 }
0x1cf4   : > { %v5515_v50 = vpop.permute.xlu0 %5514 }
0x1cf5   : > { %v5517_v10 = vmul.f32 %v8276_v6, %v5515_v50 }
0x1cf7   : > { %5519 = vrot.lane.b32.xlu1 %v5517_v10, %s8405_s22 }
0x1d69   : > { %v5520_v27 = vpop.permute.xlu1 %5519 }
0x1d6a   : > { %v9826_v40 = vadd.f32 %v5520_v27, %v5512_v0 }
0x1d6c   : > { %8277 = vtanh.f32 %v9826_v40 }
0x1d79   : > { %v8278_v4 = vpop.eup %8277 }
0x1d7a   : > { %5525 = vrot.lane.b32.xlu0 %v8278_v4, %s10118_s16 }
0x1dec   : > { %v5526_v63 = vpop.permute.xlu0 %5525 }
0x1ded   : > { %v5528_v51 = vmul.f32 %v8276_v6, %v5526_v63 }
0x1def   : > { %5533 = vrot.lane.b32.xlu0 %v5528_v51, %s8405_s22 }
0x1e61   : > { %v9831_v24 = vpop.permute.xlu0 %5533 }
0x1e62   : > { %7400 = vst.msk [vmem:[%s8520_s17 + $0x10] sm:$0xff] %vm692_vm1, %v9831_v24  ;;  %7998 = vmatmul.mubr.msk.f32.vlgmr.msra.gmra.mxu0 %vm692_vm1, %v9831_v24 }
0x1e63   : > { %8012 = vmatpush3.msra.mxu0 %v9413_v2  ;;  %8019 = vmatprep.mubr.msk.f32.mxu0 %vm8403_vm2, %v10107_v37 }
0x1e64   : > { %8013 = vmatprep.subr.mxu0 %v10107_v37 }
0x1e65   : > { %8014 = vmatpush3.msra.mxu0 %v9422_v15 }
0x1e66   : > { %8015 = vmatprep.subr.mxu0 %v10107_v37 }
0x1e67   : > { %8016 = vmatpush3.msra.mxu0 %v9429_v60 }
0x1e68   : > { %8017 = vmatprep.subr.mxu0 %v10107_v37 }
0x1e69   : > { %8018 = vmatpush3.msra.mxu0 %v9436_v8 }
0x1e6a   : > { %8032 = vmatprep.subr.mxu0 %v10107_v37 }
0x1f22   : > { %v5681_v22 = vpop.f32.mrf.mxu0 }
0x1f23   : > { %v5682_v5 = vadd.f32 %v5681_v22, %v5609_v52 }
0x1f24   : > { %v7999_v2 = vpop.f32.mrf.mxu0 }
0x1f25   : > { %v5755_v11 = vadd.f32 %v5751_v32, %v5682_v5 }
0x1f27   : > { %v5756_v12 = vadd.f32 %v9443_v29, %v5755_v11 }
0x1f29   : > { %8279 = vtanh.f32 %v5756_v12  ;;  %v7405_v15 = vmul.f32 -1.442695, %v5756_v12 }
0x1f2b   : > { %8281 = vpow2.f32 %v7405_v15 }
0x1f36   : > { %v8280_v7 = vpop.eup %8279 }
0x1f37   : > { %5766 = vrot.lane.b32.xlu0 %v8280_v7, %s10118_s16  ;;  %v10144_v7 = vld [vmem:[#allocation6_spill] sm:$0xff] }
0x1f38   : > { %v8282_v19 = vpop.eup %8281 }
0x1f39   : > { %v5760_v60 = vadd.f32 1.0, %v8282_v19  ;;  %v10145_v19 = vld [vmem:[#allocation7_spill] sm:$0xff] }
0x1f3b   : > { %8283 = vrcp.f32 %v5760_v60 }
0x1f48   : > { %v8284_v49 = vpop.eup %8283 }
0x1f49   : > { %v5764_v9 = vmul.f32 %v8284_v49, %v9449_v39 }
0x1fa9   : > { %v5767_v8 = vpop.permute.xlu0 %5766 }
0x1faa   : > { %v5769_v35 = vmul.f32 %v8284_v49, %v5767_v8 }
0x1fac   : > { %5771 = vrot.lane.b32.xlu0 %v5769_v35, %s8405_s22 }
0x201e   : > { %v5772_v16 = vpop.permute.xlu0 %5771 }
0x201f   : > { %v9852_v58 = vadd.f32 %v5772_v16, %v5764_v9  ;;  %v10147_v9 = vld [vmem:[#allocation8_spill] sm:$0xff] }
0x2021   : > { %8285 = vtanh.f32 %v9852_v58 }
0x202e   : > { %v8286_v29 = vpop.eup %8285 }
0x202f   : > { %5777 = vrot.lane.b32.xlu1 %v8286_v29, %s10118_s16  ;;  %v10148_v29 = vld [vmem:[#allocation9_spill] sm:$0xff] }
0x20a1   : > { %v5778_v30 = vpop.permute.xlu1 %5777 }
0x20a2   : > { %v5780_v52 = vmul.f32 %v8284_v49, %v5778_v30  ;;  %v10146_v49 = vld [vmem:[#allocation12_spill] sm:$0xff] }
0x20a4   : > { %5782 = vrot.lane.b32.xlu0 %v5780_v52, %s8405_s22  ;;  %v10149_v52 = vld [vmem:[#allocation14_spill] sm:$0xff] }
0x2116   : > { %v9857_v14 = vpop.permute.xlu0 %5782 }
0x2117   : > { %7419 = vst.msk [vmem:[%s8515_s29 + $0x18] sm:$0xff] %vm692_vm1, %v9857_v14  ;;  %7147 = vst.msk [vmem:[#allocation2] sm:$0xff] %vm692_vm1, %v9857_v14  ;;  %8020 = vmatmul.mubr.msk.f32.vlgmr.msra.gmra.mxu0 %vm692_vm1, %v9857_v14  ;;  %s8408_s29 = smov 96  }
0x2118   : > { %8033 = vmatpush3.msra.mxu0 %v9464_v46  ;;  %8034 = vmatprep.mubr.msk.f32.mxu0 %vm8403_vm2, %v10107_v37 }
0x2119   : > { %8042 = vmatprep.subr.mxu0 %v10107_v37 }
0x21d7   : > { %v5852_v39 = vpop.f32.mrf.mxu0 }
0x21d8   : > { %v5853_v32 = vadd.f32 %v9473_v57, %v5852_v39 }
0x21d9   : > { %v8021_v1 = vpop.f32.mrf.mxu0 }
0x21da   : > { %v5857_v25 = vcombine.high %v5853_v32, %v5853_v32  ;;  %v5864_v26 = vrot.slane %v5853_v32, %v8685_v53  ;;  %v10150_v32 = vld [vmem:[#allocation10_spill] sm:$0xff] }
0x21dc   : > { %v5871_v34 = vrot.slane %v5857_v25, %v8685_v53  ;;  %v5872_v13 = vcombine.high %v5864_v26, %v5864_v26  ;;  %v5880_v6 = vrot.slane %v5864_v26, %v8685_v53  ;;  %v10151_v26 = vld [vmem:[#allocation11_spill] sm:$0xff] }
0x21de   : > { %v5873_v50 = vcombine.high %v5871_v34, %v5871_v34  ;;  %v5887_v46 = vrot.slane %v5871_v34, %v8685_v53  ;;  %v5894_v10 = vrot.slane %v5872_v13, %v8685_v53  ;;  %v5902_v0 = vcombine.high %v5880_v6, %v5880_v6 }
0x21df   : > { %v5909_v27 = vrot.slane %v5880_v6, %v8690_v59 }
0x21e0   : > { %v5903_v4 = vcombine.high %v5887_v46, %v5887_v46  ;;  %v5904_v63 = vcombine.high %v5894_v10, %v5894_v10  ;;  %v5913_v57 = vrot.slane %v5894_v10, %v8690_v59  ;;  %v5901_v51 = vrot.slane %v5873_v50, %v8685_v53 }
0x21e1   : > { %v5917_v22 = vrot.slane %v5902_v0, %v8690_v59  ;;  %v5925_v5 = vrot.slane %v5887_v46, %v8690_v59  ;;  %v5946_v2 = vadd.f32 %v9489_v23, %v5909_v27 }
0x21e2   : > { %v5921_v11 = vrot.slane %v5904_v63, %v8690_v59  ;;  %v5933_v12 = vrot.slane %v5903_v4, %v8690_v59  ;;  %v5947_v15 = vadd.f32 %v10144_v7, %v5913_v57  ;;  %v5905_v35 = vcombine.high %v5901_v51, %v5901_v51 }
0x21e3   : > { %v5948_v60 = vadd.f32 %v10145_v19, %v5917_v22  ;;  %8287 = vtanh.f32 %v5946_v2  ;;  %v5950_v8 = vadd.f32 %v10146_v49, %v5925_v5  ;;  %v5929_v53 = vrot.slane %v5901_v51, %v8690_v59 }
0x21e4   : > { %v5949_v16 = vadd.f32 %v10147_v9, %v5921_v11  ;;  %8289 = vtanh.f32 %v5947_v15  ;;  %v5952_v30 = vadd.f32 %v10148_v29, %v5933_v12  ;;  %v5937_v23 = vrot.slane %v5905_v35, %v8690_v59 }
0x21e5   : > { %8291 = vtanh.f32 %v5948_v60  ;;  %v5951_v39 = vadd.f32 %v10149_v52, %v5929_v53 }
0x21e6   : > { %8293 = vtanh.f32 %v5950_v8  ;;  %v5953_v1 = vadd.f32 %v10150_v32, %v5937_v23 }
0x21e7   : > { %8295 = vtanh.f32 %v5949_v16 }
0x21e8   : > { %8297 = vtanh.f32 %v5952_v30 }
0x21e9   : > { %8299 = vtanh.f32 %v5951_v39 }
0x21ea   : > { %8301 = vtanh.f32 %v5953_v1 }
0x21f0   : > { %v8288_v25 = vpop.eup %8287 }
0x21f1   : > { %v5962_v34 = vmul.f32 %v10151_v26, %v8288_v25  ;;  %v8290_v13 = vpop.eup %8289 }
0x21f2   : > { %v8292_v6 = vpop.eup %8291  ;;  %v5963_v46 = vmul.f32 %v10151_v26, %v8290_v13 }
0x21f3   : > { %v5970_v50 = vsel %vm692_vm1, %v5962_v34, 0.0  ;;  %v8294_v10 = vpop.eup %8293  ;;  %v5964_v27 = vmul.f32 %v10151_v26, %v8292_v6 }
0x21f4   : > { %5971 = vadd.xlane.f32.xlu1 %v5970_v50  ;;  %v5973_v0 = vsel %vm692_vm1, %v5963_v46, 0.0  ;;  %v8296_v4 = vpop.eup %8295  ;;  %v5966_v63 = vmul.f32 %v10151_v26, %v8294_v10 }
0x21f5   : > { %5974 = vadd.xlane.f32.xlu0 %v5973_v0  ;;  %v8298_v57 = vpop.eup %8297  ;;  %v5976_v5 = vsel %vm692_vm1, %v5964_v27, 0.0  ;;  %v5965_v2 = vmul.f32 %v10151_v26, %v8296_v4 }
0x21f6   : > { %v5982_v51 = vsel %vm692_vm1, %v5966_v63, 0.0  ;;  %v5968_v22 = vmul.f32 %v10151_v26, %v8298_v57  ;;  %v8300_v11 = vpop.eup %8299 }
0x21f7   : > { %v5979_v7 = vsel %vm692_vm1, %v5965_v2, 0.0  ;;  %v5967_v15 = vmul.f32 %v10151_v26, %v8300_v11  ;;  %v8302_v19 = vpop.eup %8301 }
0x21f8   : > { %5983 = vadd.xlane.f32.xlu1 %v5982_v51  ;;  %v5988_v12 = vsel %vm692_vm1, %v5968_v22, 0.0  ;;  %v5969_v49 = vmul.f32 %v10151_v26, %v8302_v19 }
0x21f9   : > { %5977 = vadd.xlane.f32.xlu0 %v5976_v5  ;;  %v5985_v60 = vsel %vm692_vm1, %v5967_v15, 0.0 }
0x21fa   : > { %v5991_v8 = vsel %vm692_vm1, %v5969_v49, 0.0 }
0x21fc   : > { %5989 = vadd.xlane.f32.xlu1 %v5988_v12 }
0x21fd   : > { %5980 = vadd.xlane.f32.xlu0 %v5979_v7 }
0x2201   : > { %5986 = vadd.xlane.f32.xlu0 %v5985_v60 }
0x2205   : > { %5992 = vadd.xlane.f32.xlu0 %v5991_v8 }
0x227d   : > { %v5972_v53 = vpop.xlane.xlu1 %5971 }
0x227e   : > { %v5975_v35 = vpop.xlane.xlu0 %5974  ;;  %v6005_v30 = vrot.slane %v5972_v53, %v8776_v48 }
0x227f   : > { %v6009_v16 = vrot.slane %v5975_v35, %v8776_v48 }
0x2281   : > { %v5984_v23 = vpop.xlane.xlu1 %5983  ;;  %v6034_v39 = vsel %vm1197_vm3, %v6009_v16, %v6005_v30 }
0x2282   : > { %v5978_v9 = vpop.xlane.xlu0 %5977  ;;  %v6021_v26 = vrot.slane %v5984_v23, %v8776_v48 }
0x2283   : > { %v6013_v29 = vrot.slane %v5978_v9, %v8776_v48 }
0x2285   : > { %v6035_v1 = vsel %vm1199_vm4, %v6013_v29, %v6034_v39  ;;  %v5990_v13 = vpop.xlane.xlu1 %5989 }
0x2286   : > { %v5981_v52 = vpop.xlane.xlu0 %5980  ;;  %v6029_v10 = vrot.slane %v5990_v13, %v8776_v48 }
0x2287   : > { %v6017_v32 = vrot.slane %v5981_v52, %v8776_v48 }
0x2289   : > { %v6036_v25 = vsel %vm1201_vm5, %v6017_v32, %v6035_v1 }
0x228a   : > { %v5987_v34 = vpop.xlane.xlu0 %5986  ;;  %v6037_v50 = vsel %vm1203_vm6, %v6021_v26, %v6036_v25 }
0x228b   : > { %v6025_v6 = vrot.slane %v5987_v34, %v8776_v48 }
0x228d   : > { %v6038_v46 = vsel %vm1205_vm7, %v6025_v6, %v6037_v50 }
0x228e   : > { %v5993_v0 = vpop.xlane.xlu0 %5992  ;;  %v6039_v4 = vsel %vm1207_vm8, %v6029_v10, %v6038_v46 }
0x228f   : > { %v6033_v27 = vrot.slane %v5993_v0, %v8776_v48 }
0x2291   : > { %v6040_v63 = vsel %vm1209_vm9, %v6033_v27, %v6039_v4 }
0x2292   : > { %v6042_v57 = vsel %vm1212_vm10, %v6040_v63, -inf }
0x2293   : > { %6043 = vmax.xlane.f32.xlu1 %v6042_v57 }
0x231c   : > { %v6044_v51 = vpop.xlane.xlu1 %6043 }
0x231d   : > { %v6049_v22 = vrot.slane %v6044_v51, %v8690_v59  ;;  %v6053_v5 = vrot.slane %v6044_v51, %v8795_v36  ;;  %v6057_v2 = vrot.slane %v6044_v51, %v8798_v43  ;;  %v6065_v11 = vrot.slane %v6044_v51, %v8807_v62 }
0x231e   : > { %v6073_v12 = vrot.slane %v6044_v51, %v8815_v33  ;;  %v6061_v19 = vrot.slane %v6044_v51, %v8801_v44  ;;  %v6069_v39 = vrot.slane %v6044_v51, %v8811_v28  ;;  %v6077_v26 = vrot.slane %v6044_v51, %v8819_v54 }
0x231f   : > { %v6086_v7 = vsub.f32 %v5972_v53, %v6049_v22  ;;  %v6087_v15 = vsub.f32 %v5975_v35, %v6053_v5  ;;  %v6088_v60 = vsub.f32 %v5978_v9, %v6057_v2  ;;  %v6090_v49 = vsub.f32 %v5984_v23, %v6065_v11 }
0x2320   : > { %v6092_v29 = vsub.f32 %v5990_v13, %v6073_v12  ;;  %v6089_v32 = vsub.f32 %v5981_v52, %v6061_v19  ;;  %v6091_v53 = vsub.f32 %v5987_v34, %v6069_v39  ;;  %v6093_v9 = vsub.f32 %v5993_v0, %v6077_v26 }
0x2321   : > { %v6094_v8 = vmul.f32 1.442695, %v6086_v7  ;;  %v6096_v16 = vmul.f32 1.442695, %v6087_v15  ;;  %v6102_v30 = vmul.f32 1.442695, %v6090_v49 }
0x2322   : > { %v6098_v1 = vmul.f32 1.442695, %v6088_v60  ;;  %v6106_v25 = vmul.f32 1.442695, %v6092_v29  ;;  %v6100_v35 = vmul.f32 1.442695, %v6089_v32 }
0x2323   : > { %8303 = vpow2.f32 %v6094_v8  ;;  %v6104_v23 = vmul.f32 1.442695, %v6091_v53  ;;  %v6108_v13 = vmul.f32 1.442695, %v6093_v9 }
0x2324   : > { %8305 = vpow2.f32 %v6096_v16 }
0x2325   : > { %8307 = vpow2.f32 %v6102_v30 }
0x2326   : > { %8309 = vpow2.f32 %v6098_v1 }
0x2327   : > { %8311 = vpow2.f32 %v6106_v25 }
0x2328   : > { %8313 = vpow2.f32 %v6100_v35 }
0x2329   : > { %8315 = vpow2.f32 %v6104_v23 }
0x232a   : > { %8317 = vpow2.f32 %v6108_v13 }
0x2330   : > { %v8304_v6 = vpop.eup %8303 }
0x2331   : > { %v8306_v50 = vpop.eup %8305  ;;  %6119 = vperm.xlu0 %8128, %v8304_v6  }
0x2332   : > { %6122 = vperm.xlu1 %8127, %v8306_v50   ;;  %v8308_v52 = vpop.eup %8307 }
0x2333   : > { %v8310_v46 = vpop.eup %8309 }
0x2334   : > { %v8312_v10 = vpop.eup %8311 }
0x2335   : > { %6131 = vperm.xlu0 %8128, %v8308_v52   ;;  %v8314_v27 = vpop.eup %8313 }
0x2336   : > { %6125 = vperm.xlu1 %8127, %v8310_v46   ;;  %v8316_v34 = vpop.eup %8315 }
0x2337   : > { %v8318_v0 = vpop.eup %8317 }
0x2339   : > { %6137 = vperm.xlu0 %8128, %v8312_v10  }
0x233a   : > { %6128 = vperm.xlu1 %8127, %v8314_v27  }
0x233e   : > { %6134 = vperm.xlu1 %8127, %v8316_v34  }
0x2342   : > { %6140 = vperm.xlu1 %8127, %v8318_v0  }
0x23ac   : > { %v6120_v63 = vpop.permute.xlu0 %6119 }
0x23ad   : > { %v6123_v4 = vpop.permute.xlu1 %6122  ;;  %v6145_v22 = vrot.slane %v6120_v63, %v8776_v48 }
0x23ae   : > { %v6149_v51 = vrot.slane %v6123_v4, %v8776_v48 }
0x23b0   : > { %v6132_v2 = vpop.permute.xlu0 %6131  ;;  %v6174_v12 = vsel %vm1197_vm3, %v6149_v51, %v6145_v22 }
0x23b1   : > { %v6126_v57 = vpop.permute.xlu1 %6125  ;;  %v6161_v60 = vrot.slane %v6132_v2, %v8776_v48 }
0x23b2   : > { %v6153_v5 = vrot.slane %v6126_v57, %v8776_v48 }
0x23b4   : > { %v6175_v15 = vsel %vm1199_vm4, %v6153_v5, %v6174_v12  ;;  %v6138_v8 = vpop.permute.xlu0 %6137 }
0x23b5   : > { %v6129_v11 = vpop.permute.xlu1 %6128  ;;  %v6169_v39 = vrot.slane %v6138_v8, %v8776_v48 }
0x23b6   : > { %v6157_v7 = vrot.slane %v6129_v11, %v8776_v48 }
0x23b8   : > { %v6176_v19 = vsel %vm1201_vm5, %v6157_v7, %v6175_v15 }
0x23b9   : > { %v6135_v49 = vpop.permute.xlu1 %6134  ;;  %v6177_v29 = vsel %vm1203_vm6, %v6161_v60, %v6176_v19 }
0x23ba   : > { %v6165_v16 = vrot.slane %v6135_v49, %v8776_v48 }
0x23bc   : > { %v6178_v30 = vsel %vm1205_vm7, %v6165_v16, %v6177_v29 }
0x23bd   : > { %v6141_v32 = vpop.permute.xlu1 %6140  ;;  %v6179_v25 = vsel %vm1207_vm8, %v6169_v39, %v6178_v30 }
0x23be   : > { %v6173_v1 = vrot.slane %v6141_v32, %v8776_v48 }
0x23c0   : > { %v6180_v26 = vsel %vm1209_vm9, %v6173_v1, %v6179_v25 }
0x23c1   : > { %v6182_v53 = vsel %vm1212_vm10, %v6180_v26, 0.0 }
0x23c2   : > { %6183 = vadd.xlane.f32.xlu0 %v6182_v53 }
0x244b   : > { %v6184_v35 = vpop.xlane.xlu0 %6183 }
0x244c   : > { %8319 = vrcp.f32 %v6184_v35 }
0x2459   : > { %v8320_v9 = vpop.eup %8319 }
0x245a   : > { %v6186_v23 = vmul.f32 %v8320_v9, %v6184_v35 }
0x245c   : > { %v6187_v13 = vsub.f32 2.0, %v6186_v23 }
0x245e   : > { %v6188_v4 = vmul.f32 %v8320_v9, %v6187_v13 }
0x2460   : > { %v6221_v63 = vrot.slane %v6188_v4, %v8819_v54  ;;  %v6193_v57 = vrot.slane %v6188_v4, %v8690_v59  ;;  %v6197_v5 = vrot.slane %v6188_v4, %v8795_v36  ;;  %v6201_v11 = vrot.slane %v6188_v4, %v8798_v43 }
0x2461   : > { %v6205_v7 = vrot.slane %v6188_v4, %v8801_v44  ;;  %v6209_v19 = vrot.slane %v6188_v4, %v8807_v62  ;;  %v6213_v59 = vrot.slane %v6188_v4, %v8811_v28  ;;  %v6217_v36 = vrot.slane %v6188_v4, %v8815_v33 }
0x2462   : > { %v6237_v51 = vmul.f32 %v8318_v0, %v6221_v63  ;;  %v6230_v22 = vmul.f32 %v8304_v6, %v6193_v57  ;;  %v6231_v2 = vmul.f32 %v8306_v50, %v6197_v5  ;;  %v6232_v12 = vmul.f32 %v8310_v46, %v6201_v11 }
0x2463   : > { %v6233_v15 = vmul.f32 %v8314_v27, %v6205_v7  ;;  %v6234_v54 = vmul.f32 %v8308_v52, %v6209_v19  ;;  %v6235_v6 = vmul.f32 %v8316_v34, %v6213_v59  ;;  %v6236_v50 = vmul.f32 %v8312_v10, %v6217_v36 }
0x2464   : > { %6800 = vperm.xlu0 %8128, %v6237_v51   ;;  %6240 = vperm.xlu1 %8127, %v6230_v22  }
0x2468   : > { %6320 = vperm.xlu1 %8127, %v6231_v2  }
0x246c   : > { %6400 = vperm.xlu1 %8127, %v6232_v12  }
0x2470   : > { %6480 = vperm.xlu1 %8127, %v6233_v15  }
0x2474   : > { %6560 = vperm.xlu1 %8127, %v6234_v54  }
0x2478   : > { %6640 = vperm.xlu1 %8127, %v6235_v6  }
0x247c   : > { %6720 = vperm.xlu1 %8127, %v6236_v50  }
0x24df   : > { %v6241_v43 = vpop.permute.xlu1 %6240 }
0x24e0   : > { %v6245_v46 = vrot.slane %v6241_v43, %v8776_v48 }
0x24e2   : > { %8025 = vmatmul.mubr.msk.f32.vlgmr.msra.gmra.mxu1 %vm1212_vm10, %v6245_v46 }
0x24e3   : > { %v6321_v44 = vpop.permute.xlu1 %6320  ;;  %8028 = vmatpush3.msra.mxu1 %v9612_v18  ;;  %8029 = vmatprep.mubr.msk.f32.mxu1 %vm8403_vm2, %v10107_v37 }
0x24e4   : > { %v6325_v62 = vrot.slane %v6321_v44, %v8776_v48  ;;  %8037 = vmatprep.subr.mxu1 %v10107_v37 }
0x24e6   : > { %8030 = vmatmul.mubr.msk.f32.vlgmr.msra.gmra.mxu1 %vm1212_vm10, %v6325_v62 }
0x24e7   : > { %v6401_v28 = vpop.permute.xlu1 %6400  ;;  %8038 = vmatpush3.msra.mxu1 %v9623_v61  ;;  %8039 = vmatprep.mubr.msk.f32.mxu1 %vm8403_vm2, %v10107_v37 }
0x24e8   : > { %v6405_v33 = vrot.slane %v6401_v28, %v8776_v48  ;;  %8047 = vmatprep.subr.mxu1 %v10107_v37 }
0x24ea   : > { %8035 = vmatmul.mubr.msk.f32.vlgmr.msra.gmra.mxu0 %vm1212_vm10, %v6405_v33 }
0x24eb   : > { %v6481_v18 = vpop.permute.xlu1 %6480  ;;  %8043 = vmatpush3.msra.mxu0 %v9634_v17  ;;  %8044 = vmatprep.mubr.msk.f32.mxu0 %vm8403_vm2, %v10107_v37 }
0x24ec   : > { %v6485_v52 = vrot.slane %v6481_v18, %v8776_v48  ;;  %8052 = vmatprep.subr.mxu0 %v10107_v37 }
0x24ee   : > { %8040 = vmatmul.mubr.msk.f32.vlgmr.msra.gmra.mxu1 %vm1212_vm10, %v6485_v52 }
0x24ef   : > { %v6561_v61 = vpop.permute.xlu1 %6560  ;;  %8048 = vmatpush3.msra.mxu1 %v9645_v20  ;;  %8049 = vmatprep.mubr.msk.f32.mxu1 %vm8403_vm2, %v10107_v37  ;;  %v6801_v20 = vpop.permute.xlu0 %6800 }
0x24f0   : > { %v6565_v10 = vrot.slane %v6561_v61, %v8776_v48  ;;  %8057 = vmatprep.subr.mxu1 %v10107_v37  ;;  %v6805_v0 = vrot.slane %v6801_v20, %v8776_v48 }
0x24f2   : > { %8045 = vmatmul.mubr.msk.f32.vlgmr.msra.gmra.mxu0 %vm1212_vm10, %v6565_v10 }
0x24f3   : > { %v6641_v17 = vpop.permute.xlu1 %6640  ;;  %8053 = vmatpush3.msra.mxu0 %v9656_v55  ;;  %8054 = vmatprep.mubr.msk.f32.mxu0 %vm8403_vm2, %v10107_v37 }
0x24f4   : > { %v6645_v27 = vrot.slane %v6641_v17, %v8776_v48  ;;  %8062 = vmatprep.subr.mxu0 %v10107_v37 }
0x24f6   : > { %8050 = vmatmul.mubr.msk.f32.vlgmr.msra.gmra.mxu1 %vm1212_vm10, %v6645_v27 }
0x24f7   : > { %8058 = vmatpush3.msra.mxu1 %v9667_v47  ;;  %v6721_v34 = vpop.permute.xlu1 %6720  ;;  %8059 = vmatprep.mubr.msk.f32.mxu1 %vm8403_vm2, %v10107_v37  ;;  %v10153_v47 = vld [vmem:[#allocation17_spill] sm:$0xff] }
0x24f8   : > { %v6725_v55 = vrot.slane %v6721_v34, %v8776_v48  ;;  %8073 = vmatprep.subr.mxu1 %v10107_v37  ;;  %v10152_v48 = vld [vmem:[#allocation16_spill] sm:$0xff] }
0x24fa   : > { %8055 = vmatmul.mubr.msk.f32.vlgmr.msra.gmra.mxu0 %vm1212_vm10, %v6725_v55  ;;  %8060 = vmatmul.mubr.msk.f32.vlgmr.msra.gmra.mxu1 %vm1212_vm10, %v6805_v0 }
0x24fb   : > { %8063 = vmatpush3.msra.mxu0 %v9678_v3  ;;  %8070 = vmatprep.mubr.msk.f32.mxu0 %vm8403_vm2, %v10107_v37  ;;  %v10154_v3 = vld [vmem:[#allocation13_spill] sm:$0xff] }
0x24fc   : > { %8064 = vmatprep.subr.mxu0 %v10107_v37  ;;  %8074 = vmatpush3.msra.mxu1 %v9702_v31 }
0x24fd   : > { %8065 = vmatpush3.msra.mxu0 %v9688_v56  ;;  %8075 = vmatprep.subr.mxu1 %v10107_v37  ;;  %v10155_v56 = vld [vmem:[#allocation15_spill] sm:$0xff] }
0x24fe   : > { %8066 = vmatprep.subr.mxu0 %v10107_v37  ;;  %8076 = vmatpush3.msra.mxu1 %v9716_v42 }
0x24ff   : > { %8067 = vmatpush3.msra.mxu0 %v9696_v21  ;;  %8077 = vmatprep.subr.mxu1 %v10107_v37  ;;  %v10156_v21 = vld [vmem:[#allocation18_spill] sm:$0xff] }
0x2500   : > { %8068 = vmatprep.subr.mxu0 %v10107_v37  ;;  %8078 = vmatpush3.msra.mxu1 %v9741_v41 }
0x2501   : > { %8069 = vmatpush3.msra.mxu0 %v9710_v38  ;;  %8079 = vmatprep.subr.mxu1 %v10107_v37 }
0x2502   : > { %8071 = vmatmul.mubr.msk.f32.vlgmr.msra.gmra.mxu0 %vm692_vm1, %v9857_v14  ;;  %8084 = vmatprep.subr.mxu0 %v10107_v37 }
0x2503   : > { %8085 = vmatpush3.msra.mxu0 %v10152_v48  ;;  %8092 = vmatprep.mubr.msk.f32.mxu0 %vm8403_vm2, %v10107_v37 }
0x2504   : > { %8086 = vmatprep.subr.mxu0 %v10107_v37  ;;  %8080 = vmatpush3.msra.mxu1 %v10153_v47 }
0x2505   : > { %8087 = vmatpush3.msra.mxu0 %v10154_v3  ;;  %8081 = vmatprep.mubr.msk.f32.mxu1 %vm8403_vm2, %v10107_v37 }
0x2506   : > { %8088 = vmatprep.subr.mxu0 %v10107_v37 }
0x2507   : > { %8089 = vmatpush3.msra.mxu0 %v10155_v56 }
0x2508   : > { %8090 = vmatprep.subr.mxu0 %v10107_v37 }
0x2509   : > { %8091 = vmatpush3.msra.mxu0 %v10156_v21 }
0x250a   : > { %8093 = vmatmul.mubr.msk.f32.vlgmr.msra.gmra.mxu0 %vm692_vm1, %v9831_v24 }
0x25a2   : > { %v6314_v31 = vpop.f32.mrf.mxu1 }
0x25a4   : > { %v8026_v38 = vpop.f32.mrf.mxu1 }
0x25a6   : > { %v6394_v42 = vpop.f32.mrf.mxu1 }
0x25a7   : > { %v6956_v29 = vrot.slane %v6394_v42, 7 }
0x25a8   : > { %v8031_v41 = vpop.f32.mrf.mxu1 }
0x25a9   : > { %v6957_v25 = vsel %vm1197_vm3, %v6956_v29, %v6314_v31 }
0x25aa   : > { %v6474_v14 = vpop.f32.mrf.mxu0 }
0x25ab   : > { %v6958_v39 = vrot.slane %v6474_v14, 6 }
0x25ac   : > { %v8036_v60 = vpop.f32.mrf.mxu0 }
0x25ad   : > { %v6959_v24 = vsel %vm1199_vm4, %v6958_v39, %v6957_v25 }
0x25ae   : > { %v6554_v49 = vpop.f32.mrf.mxu1 }
0x25af   : > { %v6960_v32 = vrot.slane %v6554_v49, 5 }
0x25b0   : > { %v8041_v8 = vpop.f32.mrf.mxu1 }
0x25b1   : > { %v6961_v35 = vsel %vm1201_vm5, %v6960_v32, %v6959_v24 }
0x25b2   : > { %v6634_v16 = vpop.f32.mrf.mxu0 }
0x25b3   : > { %v6962_v37 = vrot.slane %v6634_v16, 4 }
0x25b4   : > { %v8046_v30 = vpop.f32.mrf.mxu0 }
0x25b5   : > { %v6963_v13 = vsel %vm1203_vm6, %v6962_v37, %v6961_v35 }
0x25b6   : > { %v6714_v1 = vpop.f32.mrf.mxu1 }
0x25b7   : > { %v6964_v26 = vrot.slane %v6714_v1, 3 }
0x25b8   : > { %v8051_v53 = vpop.f32.mrf.mxu1 }
0x25b9   : > { %v6965_v57 = vsel %vm1205_vm7, %v6964_v26, %v6963_v13 }
0x25ba   : > { %v6794_v9 = vpop.f32.mrf.mxu0  ;;  %v6874_v23 = vpop.f32.mrf.mxu1 }
0x25bb   : > { %v6966_v4 = vrot.slane %v6794_v9, 2  ;;  %v6968_v63 = vrot.slane %v6874_v23, 1 }
0x25bc   : > { %v8056_v51 = vpop.f32.mrf.mxu0  ;;  %v8061_v22 = vpop.f32.mrf.mxu1 }
0x25bd   : > { %v6967_v5 = vsel %vm1207_vm8, %v6966_v4, %v6965_v57 }
0x25be   : > { %v6969_v2 = vsel %vm1209_vm9, %v6968_v63, %v6967_v5 }
0x25bf   : > { %8082 = vmatmul.mubr.msk.f32.vlgmr.msra.gmra.mxu1 %vm692_vm1, %v6969_v2 }
0x25c2   : > { %v6944_v11 = vpop.f32.mrf.mxu0 }
0x25c4   : > { %v8072_v12 = vpop.f32.mrf.mxu0 }
0x25ca   : > { %v7108_v7 = vpop.f32.mrf.mxu0 }
0x25cc   : > { %v8094_v15 = vpop.f32.mrf.mxu0 }
0x267f   : > { %v7038_v19 = vpop.f32.mrf.mxu1 }
0x2680   : > { %v7039_v54 = vadd.f32 %v7038_v19, %v6944_v11 }
0x2681   : > { %v8083_v59 = vpop.f32.mrf.mxu1 }
0x2682   : > { %v7112_v6 = vadd.f32 %v7108_v7, %v7039_v54 }
0x2684   : > { %v7113_v36 = vadd.f32 %v9820_v45, %v7112_v6 }
0x2686   : > { %8321 = vtanh.f32 %v7113_v36  ;;  %v7418_v43 = vmul.f32 -1.442695, %v7113_v36 }
0x2688   : > { %8323 = vpow2.f32 %v7418_v43 }
0x2693   : > { %v8322_v50 = vpop.eup %8321 }
0x2694   : > { %7123 = vrot.lane.b32.xlu1 %v8322_v50, %s10118_s16 }
0x2695   : > { %v8324_v46 = vpop.eup %8323 }
0x2696   : > { %v7117_v44 = vadd.f32 1.0, %v8324_v46 }
0x2698   : > { %8325 = vrcp.f32 %v7117_v44 }
0x26a5   : > { %v8326_v62 = vpop.eup %8325 }
0x26a6   : > { %v7121_v18 = vmul.f32 %v8326_v62, %v9826_v40 }
0x2706   : > { %v7124_v28 = vpop.permute.xlu1 %7123 }
0x2707   : > { %v7126_v33 = vmul.f32 %v8326_v62, %v7124_v28 }
0x2709   : > { %7128 = vrot.lane.b32.xlu1 %v7126_v33, %s8405_s22 }
0x277b   : > { %v7129_v52 = vpop.permute.xlu1 %7128 }
0x277c   : > { %v7131_v61 = vadd.f32 %v7129_v52, %v7121_v18 }
0x277e   : > { %8327 = vtanh.f32 %v7131_v61 }
0x278b   : > { %v8328_v45 = vpop.eup %8327 }
0x278c   : > { %7134 = vrot.lane.b32.xlu1 %v8328_v45, %s10118_s16 }
0x2790   : > { %7149 = vrot.lane.b32.xlu1 %v9852_v58, %s8408_s29 }
0x27fe   : > { %v7135_v10 = vpop.permute.xlu1 %7134 }
0x27ff   : > { %v7137_v17 = vmul.f32 %v8326_v62, %v7135_v10 }
0x2801   : > { %7142 = vrot.lane.b32.xlu1 %v7137_v17, %s8405_s22 }
0x2802   : > { %v7150_v27 = vpop.permute.xlu1 %7149 }
0x2803   : > { %7152 = vst.msk [vmem:[#allocation3] sm:$0xff] %vm692_vm1, %v7150_v27 }
0x2805   : > { %7155 = vrot.lane.b32.xlu1 %v7131_v61, %s8408_s29 }
0x2873   : > { %v7143_v20 = vpop.permute.xlu1 %7142 }
0x2874   : > { %7420 = vst.msk [vmem:[%s8520_s17 + $0x18] sm:$0xff] %vm692_vm1, %v7143_v20  ;;  %7153 = vst.msk [vmem:[#allocation4] sm:$0xff] %vm692_vm1, %v7143_v20 }
0x2877   : > { %v7156_v40 = vpop.permute.xlu1 %7155 }
0x2878   : > { %7158 = vst.msk [vmem:[#allocation5] sm:$0xff] %vm692_vm1, %v7156_v40 }
0x2879 PF: > { %s26_s20 = sadd.s32 1, %s8399_s20   ;;  %s10157_s18 = smov %s8395_s19 }
0x287a   : > { %p23_p6 = scmp.ge.s32.totalorder %s26_s20, 5   ;;  %s10158_s19 = smov %s10160_s21 }
0x287c   :  { %25 = sbr.rel (!%p23_p6) target bundleno = 2 (0x2), region = 140 }

</bundles_post_ra>
